<compile_context>
chip_gen: v6e
topology: v6e:2x2x1
jax: 0.10.0
libtpu: 0.0.40
codegen_flags: <defaults>
</compile_context>

<pallas_src>
import jax
import jax.numpy as jnp
from jax.experimental import pallas as pl
from jax.experimental.pallas import tpu as pltpu


def _nonlocal_mp_kernel(f_ref, w1a_ref, w1b_ref, b1_ref, w2_ref, b2_ref,
                        wfa_ref, wfb_ref, scale_ref, shift_ref, o_ref):
    f32 = jnp.float32
    f = f_ref[0]                                            # [N, C] f32
    n, c = f.shape
    fb = f.astype(jnp.bfloat16)

    # Relation, first Linear decomposed over concat(F_i, F_j):
    a = jnp.dot(fb, w1a_ref[...], preferred_element_type=f32)                  # i-contribution [N, C]
    bj = jnp.dot(fb, w1b_ref[...], preferred_element_type=f32) + b1_ref[...]   # j-contribution + bias
    h1 = a[:, None, :] + bj[None, :, :]                                        # [N, N, C]
    h1 = jnp.where(h1 > 0, h1, f32(0.2) * h1)                                  # LeakyReLU(0.2)

    # Relation, second Linear + LeakyReLU over all N*N pairs in one MXU matmul.
    h1f = h1.reshape(n * n, c).astype(jnp.bfloat16)
    h2 = jnp.dot(h1f, w2_ref[...], preferred_element_type=f32) + b2_ref[...]
    h2 = jnp.where(h2 > 0, h2, f32(0.2) * h2)

    # M[i] = sum_j relation(F[i], F[j])
    m = jnp.sum(h2.reshape(n, n, c), axis=1)                                   # [N, C]

    # Fusion: Linear over concat(F, M) (decomposed), then folded BatchNorm + LeakyReLU.
    y = (jnp.dot(fb, wfa_ref[...], preferred_element_type=f32)
         + jnp.dot(m.astype(jnp.bfloat16), wfb_ref[...], preferred_element_type=f32))
    y = y * scale_ref[...] + shift_ref[...]
    y = jnp.where(y > 0, y, f32(0.2) * y)
    o_ref[0] = y.astype(o_ref.dtype)


def nonlocal_mp_forward(F, W1, b1, W2, b2, Wf, bf, gamma, beta, run_mean, run_var, eps=1e-5):
    """F: [B, N, 512] f32.  Weights in [in, out] layout: W1/Wf [1024,512], W2 [512,512]."""
    B, N, C = F.shape
    assert W1.shape == (2 * C, C) and W2.shape == (C, C) and Wf.shape == (2 * C, C)

    # bf16 weight streams (kernel is weight-DMA bound); f32 accumulation inside the kernel.
    w1a = W1[:C].astype(jnp.bfloat16)
    w1b = W1[C:].astype(jnp.bfloat16)
    w2 = W2.astype(jnp.bfloat16)
    wfa = Wf[:C].astype(jnp.bfloat16)
    wfb = Wf[C:].astype(jnp.bfloat16)

    # Fold Fusion bias + inference BatchNorm1d into one per-channel scale/shift (f32).
    inv_std = jax.lax.rsqrt(run_var.astype(jnp.float32) + eps)
    scale = (gamma * inv_std).astype(jnp.float32)
    shift = (beta + (bf - run_mean) * gamma * inv_std).astype(jnp.float32)

    wspec = pl.BlockSpec((C, C), lambda b: (0, 0))
    vspec = pl.BlockSpec((1, C), lambda b: (0, 0))

    return pl.pallas_call(
        _nonlocal_mp_kernel,
        out_shape=jax.ShapeDtypeStruct((B, N, C), jnp.float32),
        grid=(B,),
        in_specs=[
            pl.BlockSpec((1, N, C), lambda b: (b, 0, 0)),   # F[b]
            wspec, wspec, vspec,                            # W1a, W1b, b1
            wspec, vspec,                                   # W2, b2
            wspec, wspec,                                   # Wf (F-half), Wf (M-half)
            vspec, vspec,                                    # folded BN scale, shift
        ],
        out_specs=pl.BlockSpec((1, N, C), lambda b: (b, 0, 0)),
        compiler_params=pltpu.CompilerParams(
            dimension_semantics=("parallel",),
            vmem_limit_bytes=32 << 20,    # true footprint ~8 MiB; stays portable to v7x (64 MiB VMEM)
        ),
    )(F.astype(jnp.float32), w1a, w1b, b1.reshape(1, C).astype(jnp.float32),
      w2, b2.reshape(1, C).astype(jnp.float32), wfa, wfb,
      scale.reshape(1, C), shift.reshape(1, C))


def _nonlocal_mp_ref(F, W1, b1, W2, b2, Wf, bf, gamma, beta, run_mean, run_var, eps=1e-5):
    """Pure-JAX f32 reference mirroring the PyTorch module (inference-mode BN)."""
    B, N, C = F.shape
    Fi = jnp.broadcast_to(F[:, :, None, :], (B, N, N, C))
    Fj = jnp.broadcast_to(F[:, None, :, :], (B, N, N, C))
    x = jnp.concatenate([Fi, Fj], axis=-1)
    h = x @ W1 + b1
    h = jnp.where(h > 0, h, 0.2 * h)
    h = h @ W2 + b2
    h = jnp.where(h > 0, h, 0.2 * h)
    M = jnp.sum(h, axis=-2)
    y = jnp.concatenate([F, M], axis=-1) @ Wf + bf
    y = (y - run_mean) * jax.lax.rsqrt(run_var + eps) * gamma + beta
    return jnp.where(y > 0, y, 0.2 * y)


if __name__ == "__main__":
    key = jax.random.PRNGKey(0)
    B, n_view, C = 2, 8, 512          # C is fixed at 512 by the module's Linear layers

    keys = jax.random.split(key, 11)
    F = jax.random.normal(keys[0], (B, n_view, C), dtype=jnp.float32)

    W1 = 0.02 * jax.random.normal(keys[1], (2 * C, C), jnp.float32)
    b1 = 0.02 * jax.random.normal(keys[2], (C,), jnp.float32)
    W2 = 0.02 * jax.random.normal(keys[3], (C, C), jnp.float32)
    b2 = 0.02 * jax.random.normal(keys[4], (C,), jnp.float32)
    Wf = 0.02 * jax.random.normal(keys[5], (2 * C, C), jnp.float32)
    bf = 0.02 * jax.random.normal(keys[6], (C,), jnp.float32)
    gamma = 1.0 + 0.1 * jax.random.normal(keys[7], (C,), jnp.float32)
    beta = 0.1 * jax.random.normal(keys[8], (C,), jnp.float32)
    run_mean = 0.1 * jax.random.normal(keys[9], (C,), jnp.float32)
    run_var = jax.random.uniform(keys[10], (C,), jnp.float32, 0.5, 1.5)

    out = nonlocal_mp_forward(F, W1, b1, W2, b2, Wf, bf, gamma, beta, run_mean, run_var)
    out = jax.block_until_ready(out)
    assert out.shape == (B, n_view, C)

    ref = _nonlocal_mp_ref(F, W1, b1, W2, b2, Wf, bf, gamma, beta, run_mean, run_var)
    err = float(jnp.max(jnp.abs(out - ref)))
    assert err < 1e-1, f"max abs error too large: {err}"
    print("KERNEL_OK")
</pallas_src>

<mosaic_0001>
module attributes {stable_mosaic.version = 11 : i64} {
  func.func @_nonlocal_mp_kernel(%arg0: i32, %arg1: memref<1x8x512xf32, #tpu.memory_space<vmem>>, %arg2: memref<512x512xbf16, #tpu.memory_space<vmem>>, %arg3: memref<512x512xbf16, #tpu.memory_space<vmem>>, %arg4: memref<1x512xf32, #tpu.memory_space<vmem>>, %arg5: memref<512x512xbf16, #tpu.memory_space<vmem>>, %arg6: memref<1x512xf32, #tpu.memory_space<vmem>>, %arg7: memref<512x512xbf16, #tpu.memory_space<vmem>>, %arg8: memref<512x512xbf16, #tpu.memory_space<vmem>>, %arg9: memref<1x512xf32, #tpu.memory_space<vmem>>, %arg10: memref<1x512xf32, #tpu.memory_space<vmem>>, %arg11: memref<1x8x512xf32, #tpu.memory_space<vmem>>) attributes {dimension_semantics = [#tpu.dimension_semantics<parallel>], iteration_bounds = array<i64: 2>, scalar_prefetch = 0 : i64, scratch_operands = 0 : i64, tpu.core_type = #tpu.core_type<tc>, window_params = [{transform_indices = @transform_0, window_bounds = array<i64: 1, 8, 512>}, {pipeline_mode = #tpu.pipeline_mode<synchronous>, transform_indices = @transform_1, window_bounds = array<i64: 512, 512>}, {pipeline_mode = #tpu.pipeline_mode<synchronous>, transform_indices = @transform_2, window_bounds = array<i64: 512, 512>}, {pipeline_mode = #tpu.pipeline_mode<synchronous>, transform_indices = @transform_3, window_bounds = array<i64: 1, 512>}, {pipeline_mode = #tpu.pipeline_mode<synchronous>, transform_indices = @transform_4, window_bounds = array<i64: 512, 512>}, {pipeline_mode = #tpu.pipeline_mode<synchronous>, transform_indices = @transform_5, window_bounds = array<i64: 1, 512>}, {pipeline_mode = #tpu.pipeline_mode<synchronous>, transform_indices = @transform_6, window_bounds = array<i64: 512, 512>}, {pipeline_mode = #tpu.pipeline_mode<synchronous>, transform_indices = @transform_7, window_bounds = array<i64: 512, 512>}, {pipeline_mode = #tpu.pipeline_mode<synchronous>, transform_indices = @transform_8, window_bounds = array<i64: 1, 512>}, {pipeline_mode = #tpu.pipeline_mode<synchronous>, transform_indices = @transform_9, window_bounds = array<i64: 1, 512>}, {transform_indices = @transform_10, window_bounds = array<i64: 1, 8, 512>}]} {
    %c0 = arith.constant 0 : index
    %c0_0 = arith.constant 0 : index
    %c0_1 = arith.constant 0 : index
    %0 = vector.load %arg1[%c0, %c0_0, %c0_1] : memref<1x8x512xf32, #tpu.memory_space<vmem>>, vector<1x8x512xf32>
    %1 = vector.shape_cast %0 : vector<1x8x512xf32> to vector<8x512xf32>
    %2 = arith.truncf %1 : vector<8x512xf32> to vector<8x512xbf16>
    %c0_2 = arith.constant 0 : index
    %c0_3 = arith.constant 0 : index
    %3 = vector.load %arg2[%c0_2, %c0_3] : memref<512x512xbf16, #tpu.memory_space<vmem>>, vector<512x512xbf16>
    %cst = arith.constant dense<0.000000e+00> : vector<8x512xf32>
    %4 = tpu.matmul %2, %3, %cst {dimension_numbers = #tpu.dot_dimension_numbers<[1], [0], [0], [1], [0, 0, 1, 1], [], []>} : vector<8x512xbf16>, vector<512x512xbf16>, vector<8x512xf32> -> vector<8x512xf32>
    %c0_4 = arith.constant 0 : index
    %c0_5 = arith.constant 0 : index
    %5 = vector.load %arg3[%c0_4, %c0_5] : memref<512x512xbf16, #tpu.memory_space<vmem>>, vector<512x512xbf16>
    %cst_6 = arith.constant dense<0.000000e+00> : vector<8x512xf32>
    %6 = tpu.matmul %2, %5, %cst_6 {dimension_numbers = #tpu.dot_dimension_numbers<[1], [0], [0], [1], [0, 0, 1, 1], [], []>} : vector<8x512xbf16>, vector<512x512xbf16>, vector<8x512xf32> -> vector<8x512xf32>
    %c0_7 = arith.constant 0 : index
    %c0_8 = arith.constant 0 : index
    %7 = vector.load %arg4[%c0_7, %c0_8] : memref<1x512xf32, #tpu.memory_space<vmem>>, vector<1x512xf32>
    %8 = vector.broadcast %7 : vector<1x512xf32> to vector<8x512xf32>
    %9 = arith.addf %6, %8 : vector<8x512xf32>
    %10 = vector.shape_cast %4 : vector<8x512xf32> to vector<8x1x512xf32>
    %11 = vector.shape_cast %9 : vector<8x512xf32> to vector<1x8x512xf32>
    %12 = vector.broadcast %10 : vector<8x1x512xf32> to vector<8x8x512xf32>
    %13 = vector.broadcast %11 : vector<1x8x512xf32> to vector<8x8x512xf32>
    %14 = arith.addf %12, %13 : vector<8x8x512xf32>
    %cst_9 = arith.constant 0.000000e+00 : f32
    %15 = vector.broadcast %cst_9 : f32 to vector<8x8x512xf32>
    %16 = arith.cmpf ogt, %14, %15 : vector<8x8x512xf32>
    %cst_10 = arith.constant 2.000000e-01 : f32
    %17 = vector.broadcast %cst_10 : f32 to vector<8x8x512xf32>
    %18 = arith.mulf %17, %14 : vector<8x8x512xf32>
    %19 = arith.select %16, %14, %18 : vector<8x8x512xi1>, vector<8x8x512xf32>
    %20 = vector.shape_cast %19 : vector<8x8x512xf32> to vector<64x512xf32>
    %21 = arith.truncf %20 : vector<64x512xf32> to vector<64x512xbf16>
    %c0_11 = arith.constant 0 : index
    %c0_12 = arith.constant 0 : index
    %22 = vector.load %arg5[%c0_11, %c0_12] : memref<512x512xbf16, #tpu.memory_space<vmem>>, vector<512x512xbf16>
    %cst_13 = arith.constant dense<0.000000e+00> : vector<64x512xf32>
    %23 = tpu.matmul %21, %22, %cst_13 {dimension_numbers = #tpu.dot_dimension_numbers<[1], [0], [0], [1], [0, 0, 1, 1], [], []>} : vector<64x512xbf16>, vector<512x512xbf16>, vector<64x512xf32> -> vector<64x512xf32>
    %c0_14 = arith.constant 0 : index
    %c0_15 = arith.constant 0 : index
    %24 = vector.load %arg6[%c0_14, %c0_15] : memref<1x512xf32, #tpu.memory_space<vmem>>, vector<1x512xf32>
    %25 = vector.broadcast %24 : vector<1x512xf32> to vector<64x512xf32>
    %26 = arith.addf %23, %25 : vector<64x512xf32>
    %cst_16 = arith.constant 0.000000e+00 : f32
    %27 = vector.broadcast %cst_16 : f32 to vector<64x512xf32>
    %28 = arith.cmpf ogt, %26, %27 : vector<64x512xf32>
    %cst_17 = arith.constant 2.000000e-01 : f32
    %29 = vector.broadcast %cst_17 : f32 to vector<64x512xf32>
    %30 = arith.mulf %29, %26 : vector<64x512xf32>
    %31 = arith.select %28, %26, %30 : vector<64x512xi1>, vector<64x512xf32>
    %32 = vector.shape_cast %31 : vector<64x512xf32> to vector<8x8x512xf32>
    %cst_18 = arith.constant dense<0.000000e+00> : vector<8x512xf32>
    %33 = vector.multi_reduction <add>, %32, %cst_18 [1] : vector<8x8x512xf32> to vector<8x512xf32>
    %c0_19 = arith.constant 0 : index
    %c0_20 = arith.constant 0 : index
    %34 = vector.load %arg7[%c0_19, %c0_20] : memref<512x512xbf16, #tpu.memory_space<vmem>>, vector<512x512xbf16>
    %cst_21 = arith.constant dense<0.000000e+00> : vector<8x512xf32>
    %35 = tpu.matmul %2, %34, %cst_21 {dimension_numbers = #tpu.dot_dimension_numbers<[1], [0], [0], [1], [0, 0, 1, 1], [], []>} : vector<8x512xbf16>, vector<512x512xbf16>, vector<8x512xf32> -> vector<8x512xf32>
    %36 = arith.truncf %33 : vector<8x512xf32> to vector<8x512xbf16>
    %c0_22 = arith.constant 0 : index
    %c0_23 = arith.constant 0 : index
    %37 = vector.load %arg8[%c0_22, %c0_23] : memref<512x512xbf16, #tpu.memory_space<vmem>>, vector<512x512xbf16>
    %cst_24 = arith.constant dense<0.000000e+00> : vector<8x512xf32>
    %38 = tpu.matmul %36, %37, %cst_24 {dimension_numbers = #tpu.dot_dimension_numbers<[1], [0], [0], [1], [0, 0, 1, 1], [], []>} : vector<8x512xbf16>, vector<512x512xbf16>, vector<8x512xf32> -> vector<8x512xf32>
    %39 = arith.addf %35, %38 : vector<8x512xf32>
    %c0_25 = arith.constant 0 : index
    %c0_26 = arith.constant 0 : index
    %40 = vector.load %arg9[%c0_25, %c0_26] : memref<1x512xf32, #tpu.memory_space<vmem>>, vector<1x512xf32>
    %41 = vector.broadcast %40 : vector<1x512xf32> to vector<8x512xf32>
    %42 = arith.mulf %39, %41 : vector<8x512xf32>
    %c0_27 = arith.constant 0 : index
    %c0_28 = arith.constant 0 : index
    %43 = vector.load %arg10[%c0_27, %c0_28] : memref<1x512xf32, #tpu.memory_space<vmem>>, vector<1x512xf32>
    %44 = vector.broadcast %43 : vector<1x512xf32> to vector<8x512xf32>
    %45 = arith.addf %42, %44 : vector<8x512xf32>
    %cst_29 = arith.constant 0.000000e+00 : f32
    %46 = vector.broadcast %cst_29 : f32 to vector<8x512xf32>
    %47 = arith.cmpf ogt, %45, %46 : vector<8x512xf32>
    %cst_30 = arith.constant 2.000000e-01 : f32
    %48 = vector.broadcast %cst_30 : f32 to vector<8x512xf32>
    %49 = arith.mulf %48, %45 : vector<8x512xf32>
    %50 = arith.select %47, %45, %49 : vector<8x512xi1>, vector<8x512xf32>
    %c0_31 = arith.constant 0 : index
    %c0_32 = arith.constant 0 : index
    %c0_33 = arith.constant 0 : index
    %51 = vector.load %arg11[%c0_31, %c0_32, %c0_33] : memref<1x8x512xf32, #tpu.memory_space<vmem>>, vector<1x8x512xf32>
    %52 = vector.shape_cast %51 : vector<1x8x512xf32> to vector<8x512xf32>
    %53 = vector.shape_cast %50 : vector<8x512xf32> to vector<1x8x512xf32>
    tpu.vector_store %arg11[%c0_31, %c0_32, %c0_33], %53 {strides = array<i32>} : memref<1x8x512xf32, #tpu.memory_space<vmem>>, vector<1x8x512xf32>,
    return
  }
  func.func @transform_0(%arg0: i32) -> (i32, i32, i32) {
    %c0_i32 = arith.constant 0 : i32
    %c0_i32_0 = arith.constant 0 : i32
    %c0_i32_1 = arith.constant 0 : i32
    return %arg0, %c0_i32, %c0_i32_0 : i32, i32, i32
  }
  func.func @transform_1(%arg0: i32) -> (i32, i32) {
    %c0_i32 = arith.constant 0 : i32
    %c0_i32_0 = arith.constant 0 : i32
    %c0_i32_1 = arith.constant 0 : i32
    return %c0_i32, %c0_i32_0 : i32, i32
  }
  func.func @transform_2(%arg0: i32) -> (i32, i32) {
    %c0_i32 = arith.constant 0 : i32
    %c0_i32_0 = arith.constant 0 : i32
    %c0_i32_1 = arith.constant 0 : i32
    return %c0_i32, %c0_i32_0 : i32, i32
  }
  func.func @transform_3(%arg0: i32) -> (i32, i32) {
    %c0_i32 = arith.constant 0 : i32
    %c0_i32_0 = arith.constant 0 : i32
    %c0_i32_1 = arith.constant 0 : i32
    return %c0_i32, %c0_i32_0 : i32, i32
  }
  func.func @transform_4(%arg0: i32) -> (i32, i32) {
    %c0_i32 = arith.constant 0 : i32
    %c0_i32_0 = arith.constant 0 : i32
    %c0_i32_1 = arith.constant 0 : i32
    return %c0_i32, %c0_i32_0 : i32, i32
  }
  func.func @transform_5(%arg0: i32) -> (i32, i32) {
    %c0_i32 = arith.constant 0 : i32
    %c0_i32_0 = arith.constant 0 : i32
    %c0_i32_1 = arith.constant 0 : i32
    return %c0_i32, %c0_i32_0 : i32, i32
  }
  func.func @transform_6(%arg0: i32) -> (i32, i32) {
    %c0_i32 = arith.constant 0 : i32
    %c0_i32_0 = arith.constant 0 : i32
    %c0_i32_1 = arith.constant 0 : i32
    return %c0_i32, %c0_i32_0 : i32, i32
  }
  func.func @transform_7(%arg0: i32) -> (i32, i32) {
    %c0_i32 = arith.constant 0 : i32
    %c0_i32_0 = arith.constant 0 : i32
    %c0_i32_1 = arith.constant 0 : i32
    return %c0_i32, %c0_i32_0 : i32, i32
  }
  func.func @transform_8(%arg0: i32) -> (i32, i32) {
    %c0_i32 = arith.constant 0 : i32
    %c0_i32_0 = arith.constant 0 : i32
    %c0_i32_1 = arith.constant 0 : i32
    return %c0_i32, %c0_i32_0 : i32, i32
  }
  func.func @transform_9(%arg0: i32) -> (i32, i32) {
    %c0_i32 = arith.constant 0 : i32
    %c0_i32_0 = arith.constant 0 : i32
    %c0_i32_1 = arith.constant 0 : i32
    return %c0_i32, %c0_i32_0 : i32, i32
  }
  func.func @transform_10(%arg0: i32) -> (i32, i32, i32) {
    %c0_i32 = arith.constant 0 : i32
    %c0_i32_0 = arith.constant 0 : i32
    %c0_i32_1 = arith.constant 0 : i32
    return %arg0, %c0_i32, %c0_i32_0 : i32, i32, i32
  }
}

</mosaic_0001>

<bundles_post_ra>
// kernel: tpu_custom_call.1
= control target key start
LH: loop header
LB: loop body
LE: loop exit
PB: predicated region body
PF: predicated region fallthrough
CT: control target
= control target key end

     0   :  { %s9080_s0 = inlined_call_operand.hbm [shape: f32[2,8,512], index: 0, kind: input, shape index: {}]   ;;  %s9081_s1 = inlined_call_operand.hbm [shape: bf16[512,512], index: 1, kind: input, shape index: {}]   ;;  %s9082_s2 = inlined_call_operand.hbm [shape: bf16[512,512], index: 2, kind: input, shape index: {}]   ;;  %s9083_s3 = inlined_call_operand.vmem [shape: f32[1,512], index: 3, kind: input, shape index: {}]   ;;  %s9084_s4 = inlined_call_operand.hbm [shape: bf16[512,512], index: 4, kind: input, shape index: {}]   ;;  %s9085_s5 = inlined_call_operand.vmem [shape: f32[1,512], index: 5, kind: input, shape index: {}]   ;;  %s9086_s6 = inlined_call_operand.hbm [shape: bf16[512,512], index: 6, kind: input, shape index: {}]   ;;  %s9087_s7 = inlined_call_operand.hbm [shape: bf16[512,512], index: 7, kind: input, shape index: {}]   ;;  %s9088_s8 = inlined_call_operand.vmem [shape: f32[1,512], index: 8, kind: input, shape index: {}]   ;;  %s9089_s9 = inlined_call_operand.vmem [shape: f32[1,512], index: 9, kind: input, shape index: {}]   ;;  %s9090_s10 = inlined_call_operand.hbm [shape: f32[2,8,512], index: 10, kind: output, shape index: {}]  }
   0x1   :  { %9095 = sst [smem:[#allocation19_spill]] %s9081_s1 }
   0x2   :  { %9096 = sst [smem:[#allocation20_spill]] %s9082_s2 }
   0x3   :  { %9097 = sst [smem:[#allocation21_spill]] %s9084_s4 }
   0x4   :  { %9098 = sst [smem:[#allocation22_spill]] %s9086_s6 }
   0x5   :  { %9099 = sst [smem:[#allocation23_spill]] %s9087_s7 }
   0x6   :  { %15 = vsyncpa [#allocation3], 0 }
   0x7   :  { %17 = vsyncpa [#allocation3 + $0x1], 0 }
   0x8   :  { %18 = vsyncpa [#allocation6], 0 }
   0x9   :  { %19 = vsyncpa [#allocation9], 0 }
   0xa   :  { %20 = vsyncpa [#allocation12], 0 }
   0xb   :  { %21 = vsyncpa [#allocation4], 0 }
   0xc   :  { %23 = vsyncpa [#allocation4 + $0x1], 0  ;;  %s8320_s13 = smov 0   ;;  %s8322_s14 = smov 0  }
   0xd   :  { %s8324_s15 = smov 0   ;;  %s8326_s16 = smov 0  }
   0xe LB: > { %s8255_s17 = smov [#allocation5]   ;;  %s8341_s19 = sadd.s32 4294967295, %s8253_s16   ;;  %s8253_s16 = sphi %s8326_s16, %s9126_s16   ;;  %s8249_s15 = sphi %s8324_s15, %s9125_s15   ;;  %s8245_s14 = sphi %s8322_s14, %s9124_s14   ;;  %s8241_s13 = sphi %s8320_s13, %s9123_s13  }
   0xf   : > { %s287_s18 = sshll.u32 %s8255_s17, 4  ;;  %p6294_p0 = scmp.ge.s32.totalorder %s8253_s16, 1  ;;  %s288_s18 = int_to_ptr.vmem [resolvable:$true] %s287_s18 }
  0x10   : > { %p9091_p1 = scmp.eq.s32.totalorder %s8341_s19, 0  ;;  %p275_p2 = scmp.lt.s32.totalorder %s8253_s16, 3 }
  0x11   : > { %s8256_s21 = smov [#allocation8]   ;;  %s8257_s24 = smov [#allocation7]  }
  0x12   : > { %p8346_p3 = pnand %p6294_p0, %p275_p2  ;;  %s316_s22 = sshll.u32 %s8256_s21, 4  ;;  %s8359_s22 = int_to_ptr.vmem [resolvable:$true] %s316_s22 }
  0x13   : > { %s300_s25 = sshll.u32 %s8257_s24, 4  ;;  %s8030_s27 = scalar_lea.vmem %s288_s18, 16384  ;;  %s8361_s25 = int_to_ptr.vmem [resolvable:$true] %s300_s25 }
  0x14   : > { %s9100_s20 = scalar_select %p8346_p3, 1, 0 }
  0x15   : > { %p6983_p5 = pneg %p8346_p3  ;;  %p8031_p8 = scmp.ne.s32.totalorder %s288_s18, %s8030_s27 }
  0x16   : > { %p8038_p11 = scmp.lt.s32.totalorder %s288_s18, %s288_s18  ;;  %p8039_p12 = scmp.lt.s32.totalorder %s8030_s27, %s8030_s27 }
  0x17   : > { %p8355_p6 = pnand %p6983_p5, %p9091_p1 }
  0x18   : > { %p8040_p13 = por %p8039_p12, %p8038_p11 }
  0x19   : > { %p8365_p7 = pneg %p8355_p6 }
  0x1b   : > { %p8033_p9 = pnand %p8031_p8, %p8365_p7 }
  0x1d   : > { %p8034_p10 = pneg %p8033_p9 }
  0x1f   : > { %p8041_p0 = pnand %p8040_p13, %p8034_p10 }
  0x21   : > { %8044 = shalt.err (!%p8041_p0)
}
  0x22   : > { %s8258_s28 = smov 256   ;;  %s8259_s29 = smov 16  }
  0x23   : > { %s9103_s1 = sld [smem:[#allocation19_spill]]  ;;  %s8056_s12 = scalar_lea.vmem %s8359_s22, 16384 }
  0x24   : > { %p8057_p2 = scmp.ne.s32.totalorder %s8359_s22, %s8056_s12  ;;  %p8064_p9 = scmp.lt.s32.totalorder %s8359_s22, %s8359_s22 }
  0x25   : > { %p8065_p10 = scmp.lt.s32.totalorder %s8056_s12, %s8056_s12 }
  0x26   : > { %p8059_p5 = pnand %p8057_p2, %p8365_p7 }
  0x27   : > { %p8066_p11 = por %p8065_p10, %p8064_p9 }
  0x28   : > { %p8060_p8 = pneg %p8059_p5 }
  0x29   : > { %6986 = dma.hbm_to_vmem [thread:$0]  (!%p8355_p6), %s9103_s1, 16384, %s288_s18, [#allocation6], %s8258_s28, %s8258_s28, %s8259_s29  }
  0x2a   : > { %p8067_p12 = pnand %p8066_p11, %p8060_p8 }
  0x2c   : > { %8070 = shalt.err (!%p8067_p12)
}
  0x2d   : > { %s9104_s4 = sld [smem:[#allocation21_spill]]  ;;  %s8082_s18 = scalar_lea.vmem %s8361_s25, 16384 }
  0x2e   : > { %p8083_p13 = scmp.ne.s32.totalorder %s8361_s25, %s8082_s18  ;;  %p8090_p5 = scmp.lt.s32.totalorder %s8361_s25, %s8361_s25 }
  0x2f   : > { %p8091_p8 = scmp.lt.s32.totalorder %s8082_s18, %s8082_s18 }
  0x30   : > { %p8085_p0 = pnand %p8083_p13, %p8365_p7 }
  0x31   : > { %p8092_p9 = por %p8091_p8, %p8090_p5 }
  0x32   : > { %p8086_p2 = pneg %p8085_p0 }
  0x33   : > { %6992 = dma.hbm_to_vmem [thread:$0]  (!%p8355_p6), %s9104_s4, 16384, %s8359_s22, [#allocation9], %s8258_s28, %s8258_s28, %s8259_s29  }
  0x34   : > { %p8093_p10 = pnand %p8092_p9, %p8086_p2 }
  0x36   : > { %8096 = shalt.err (!%p8093_p10)
}
  0x37   : > { %s9105_s2 = sld [smem:[#allocation20_spill]]  ;;  %s8260_s22 = smov [#allocation10]  }
  0x38   : > { %s332_s30 = sshll.u32 %s8260_s22, 4  ;;  %s8261_s11 = smov [#allocation11]   ;;  %s333_s30 = int_to_ptr.vmem [resolvable:$true] %s332_s30 }
  0x39   : > { %s345_s12 = sshll.u32 %s8261_s11, 4  ;;  %s8108_s17 = scalar_lea.vmem %s333_s30, 16384  ;;  %s346_s12 = int_to_ptr.vmem [resolvable:$true] %s345_s12 }
  0x3a   : > { %p8109_p11 = scmp.ne.s32.totalorder %s333_s30, %s8108_s17  ;;  %p8116_p0 = scmp.lt.s32.totalorder %s333_s30, %s333_s30 }
  0x3b   : > { %p8117_p2 = scmp.lt.s32.totalorder %s8108_s17, %s8108_s17 }
  0x3c   : > { %p8111_p12 = pnand %p8109_p11, %p8365_p7 }
  0x3d   : > { %6989 = dma.hbm_to_vmem [thread:$0]  (!%p8355_p6), %s9105_s2, 16384, %s8361_s25, [#allocation6], %s8258_s28, %s8258_s28, %s8259_s29  }
  0x3e   : > { %p8112_p13 = pneg %p8111_p12  ;;  %p8118_p5 = por %p8117_p2, %p8116_p0 }
  0x40   : > { %p8119_p8 = pnand %p8118_p5, %p8112_p13 }
  0x42   : > { %8122 = shalt.err (!%p8119_p8)
}
  0x43   : > { %s9106_s6 = sld [smem:[#allocation22_spill]]  ;;  %s8134_s18 = scalar_lea.vmem %s346_s12, 16384 }
  0x44   : > { %p8135_p9 = scmp.ne.s32.totalorder %s346_s12, %s8134_s18  ;;  %p8142_p12 = scmp.lt.s32.totalorder %s346_s12, %s346_s12 }
  0x45   : > { %p8143_p0 = scmp.lt.s32.totalorder %s8134_s18, %s8134_s18 }
  0x46   : > { %p8137_p10 = pnand %p8135_p9, %p8365_p7 }
  0x47   : > { %p8144_p13 = por %p8143_p0, %p8142_p12 }
  0x48   : > { %p8138_p11 = pneg %p8137_p10 }
  0x49   : > { %6995 = dma.hbm_to_vmem [thread:$0]  (!%p8355_p6), %s9106_s6, 16384, %s333_s30, [#allocation9], %s8258_s28, %s8258_s28, %s8259_s29  }
  0x4a   : > { %p8145_p2 = pnand %p8144_p13, %p8138_p11 }
  0x4c   : > { %8148 = shalt.err (!%p8145_p2)
}
  0x4d   : > { %s9107_s7 = sld [smem:[#allocation23_spill]]  ;;  %s6293_s23 = sadd.s32 4294967294, %s8253_s16  }
  0x4e   : > { %s8431_s26 = sadd.s32 1, %s8253_s16   ;;  %s36_s22 = sadd.s32 1, %s8249_s15 }
  0x4f   : > { %s33_s30 = ssub.s32 %s8253_s16, %s8431_s26  ;;  %p43_p7 = scmp.ne.s32.totalorder %s8249_s15, %s8245_s14 }
  0x50   : > { %p34_p5 = scmp.eq.s32.totalorder %s33_s30, 0  ;;  %p44_p8 = scmp.eq.s32.totalorder %s8253_s16, 0 }
  0x51   : > { %p49_p9 = scmp.ne.s32.totalorder %s8245_s14, %s8241_s13  ;;  %p262_p10 = scmp.eq.s32.totalorder %s8341_s19, 1 }
  0x52   : > { %s8443_s11 = scalar_select %p34_p5, %s8249_s15, %s36_s22  }
  0x53   : > { %6998 = dma.hbm_to_vmem [thread:$0]  (!%p8355_p6), %s9107_s7, 16384, %s346_s12, [#allocation12], %s8258_s28, %s8258_s28, %s8259_s29  }
  0x54   : > { %p45_p11 = por %p44_p8, %p43_p7  ;;  %p8447_p12 = por %p9091_p1, %p49_p9 }
  0x55   : > { %p8451_p6 = por %p262_p10, %p43_p7  ;;  %p268_p0 = scmp.eq.s32.totalorder %s6293_s23, 1 }
  0x56   : > { %s9108_s17 = scalar_select %p8447_p12, 1, 0 }
  0x57   : > { %s9109_s28 = scalar_select %p8451_p6, 1, 0 }
  0x58   : > { %p7012_p13 = scmp.lt.s32.totalorder %s8253_s16, 2  ;;  %s365_s29 = sand.u32 1, %s8249_s15  }
  0x59   : > { %p8457_p2 = por %p268_p0, %p49_p9  ;;  %s6301_s25 = sshll.u32 %s365_s29, 5 }
  0x5a   : > { %s6957_s21 = sshll.u32 %s8253_s16, 9  ;;  %s369_s22 = scalar_lea.vmem [#allocation2], %s6301_s25 }
  0x5b   : > { %s9110_s12 = scalar_select %p8457_p2, 1, 0 }
  0x5c   : > { %s8465_s27 = scalar_lea.hbm %s9080_s0, %s6957_s21  ;;  %s377_s30 = sshll.u32 %s369_s22, 4  ;;  %s378_s30 = int_to_ptr.vmem [resolvable:$true] %s377_s30 }
  0x5d   : > { %p8467_p7 = pnand %p7012_p13, %p45_p11  ;;  %s366_s1 = scalar_lea.sflag [#allocation3], %s365_s29 }
  0x5e   : > { %s8149_s2 = scalar_lea.hbm %s8465_s27, 512  ;;  %s8154_s24 = scalar_lea.hbm %s9080_s0, 1024 }
  0x5f   : > { %p8150_p5 = scmp.ne.s32.totalorder %s8465_s27, %s8149_s2  ;;  %p8151_p8 = pneg %p8467_p7 }
  0x60   : > { %p8155_p11 = scmp.lt.s32.totalorder %s8465_s27, %s9080_s0  ;;  %p8156_p0 = scmp.lt.s32.totalorder %s8154_s24, %s8149_s2 }
  0x61   : > { %p8152_p9 = pnand %p8151_p8, %p8150_p5 }
  0x62   : > { %p8157_p13 = por %p8156_p0, %p8155_p11 }
  0x63   : > { %p8153_p10 = pneg %p8152_p9 }
  0x65   : > { %p8158_p4 = pnand %p8157_p13, %p8153_p10 }
  0x67   : > { %8161 = shalt.err (!%p8158_p4)
}
  0x68   : > { %s8162_s22 = scalar_lea.vmem %s378_s30, 512  ;;  %s8262_s29 = smov [#allocation2]  }
  0x69   : > { %p8163_p1 = scmp.ne.s32.totalorder %s378_s30, %s8162_s22  ;;  %s8167_s6 = sshll.u32 %s8262_s29, 4  ;;  %s8168_s6 = int_to_ptr.vmem [resolvable:$false] %s8167_s6 }
  0x6a   : > { %s8169_s7 = scalar_lea.vmem %s8168_s6, 1024  ;;  %p8170_p5 = scmp.lt.s32.totalorder %s378_s30, %s8168_s6 }
  0x6b   : > { %p8165_p2 = pnand %p8163_p1, %p8151_p8  ;;  %p8171_p9 = scmp.lt.s32.totalorder %s8169_s7, %s8162_s22 }
  0x6d   : > { %p8166_p6 = pneg %p8165_p2  ;;  %p8172_p12 = por %p8171_p9, %p8170_p5 }
  0x6f   : > { %p8173_p3 = pnand %p8172_p12, %p8166_p6 }
  0x71   : > { %8176 = shalt.err (!%p8173_p3)
}
  0x72   : > { %7002 = dma.hbm_to_vmem [thread:$0]  (!%p8467_p7), %s8465_s27, 512, %s378_s30, %s366_s1  }
  0x73   : > { %p9112_p10 = scmp.ne.s32.totalorder %s9100_s20, 0 }
  0x74   : > { %s8488_s2 = sand.u32 (!%p9112_p10), 1, %s8245_s14   ;;  %p9113_p1 = scmp.ne.s32.totalorder (!%p9112_p10), %s9108_s17, 0 }
  0x75   : > { %386 = sbr.rel (%p9112_p10) target bundleno = 1326 (0x52e), region = 60  ;;  %s6305_s4 = sshll.u32 (!%p9112_p10), %s8488_s2, 5 }
  0x76   : > { %s389_s6 = scalar_lea.sflag (!%p9112_p10), [#allocation3], %s8488_s2  ;;  %s8494_s7 = scalar_lea.vmem (!%p9112_p10), [#allocation2], %s6305_s4 }
  0x7a   : > { %8220 = dma.done.wait (%p9113_p1), %s389_s6, 512  }
  0x7b   : > { %8222 = vsyncadd (%p9113_p1), %s389_s6, 4294966784  ;;  %p9114_p3 = scmp.eq.s32.totalorder %s8341_s19, 0 }
  0x7d   : > { %8224 = dma.done.wait (%p9114_p3), [#allocation6], 32768   ;;  %p9115_p4 = pmov %p9114_p3 }
  0x7e   : > { %p9116_p12 = pmov %p9114_p3 }
  0x7f   : > { %8226 = vsyncadd (%p9115_p4), [#allocation6], 4294934528 }
  0x80   : > { %8228 = dma.done.wait (%p9116_p12), [#allocation9], 32768   ;;  %p9117_p6 = pmov %p9114_p3 }
  0x81   : > { %p9118_p2 = pmov %p9114_p3 }
  0x82   : > { %8230 = vsyncadd (%p9117_p6), [#allocation9], 4294934528 }
  0x83   : > { %8232 = dma.done.wait (%p9118_p2), [#allocation12], 16384   ;;  %p9119_p7 = pmov %p9118_p2 }
  0x84   : > { %v7059_v0 = vld [vmem:[#allocation5 + $0xe4] ss:$16 sps:$4 sm:$0xff]   ;;  %v7063_v2 = vld [vmem:[#allocation5 + $0xe0] ss:$16 sps:$4 sm:$0xff]   ;;  %v450_v46 = vld [vmem:[%s8494_s7 + $0x8] sm:$0xff]  ;;  %s9028_s24 = scalar_lea.vmem [#allocation13], %s6305_s4 }
  0x85   : > { %8234 = vsyncadd (%p9119_p7), [#allocation12], 4294950912  ;;  %v7061_v1 = vld [vmem:[#allocation5 + $0x2e4] ss:$16 sps:$4 sm:$0xff]   ;;  %1225 = vmatprep.subr.bf16.mxu0 %v7059_v0  ;;  %v7064_v3 = vld [vmem:[#allocation5 + $0x2e0] ss:$16 sps:$4 sm:$0xff]   ;;  %v8513_v49 = vpack.c.bf16 %v450_v46, %v450_v46 }
  0x86   : > { %1266 = vmatprep.subr.bf16.mxu1 %v7061_v1  ;;  %v7065_v4 = vld [vmem:[#allocation5 + $0xc4] ss:$16 sps:$4 sm:$0xff]   ;;  %1226 = vmatpush1.bf16.msra.mxu0 %v7063_v2  ;;  %v7069_v6 = vld [vmem:[#allocation5 + $0xc0] ss:$16 sps:$4 sm:$0xff]   ;;  %v452_v50 = vld [vmem:[%s8494_s7 + $0x18] sm:$0xff]  ;;  %s6958_s25 = sshll.u32 %s8341_s19, 9 }
  0x87   : > { %1267 = vmatpush1.bf16.msra.mxu1 %v7064_v3  ;;  %v7067_v5 = vld [vmem:[#allocation5 + $0x2c4] ss:$16 sps:$4 sm:$0xff]   ;;  %1227 = vmatprep.subr.bf16.mxu0 %v7065_v4  ;;  %v7070_v7 = vld [vmem:[#allocation5 + $0x2c0] ss:$16 sps:$4 sm:$0xff]   ;;  %v8516_v52 = vpack.c.bf16 %v452_v50, %v452_v50  ;;  %v7209_v46 = vld [vmem:[#allocation5 + $0x1c8] ss:$16 sps:$4 sm:$0xff]   ;;  %s9042_s6 = scalar_lea.hbm %s9090_s10, %s6958_s25 }
  0x88   : > { %1268 = vmatprep.subr.bf16.mxu1 %v7067_v5  ;;  %v7071_v8 = vld [vmem:[#allocation5 + $0xa4] ss:$16 sps:$4 sm:$0xff]   ;;  %v7075_v10 = vld [vmem:[#allocation5 + $0xa0] ss:$16 sps:$4 sm:$0xff]   ;;  %1257 = vmatprep.mubr.bf16.mxu0 %v8513_v49  ;;  %v7220_v50 = vld [vmem:[#allocation5 + $0x3ac] ss:$16 sps:$4 sm:$0xff]  }
  0x89   : > { %v7073_v9 = vld [vmem:[#allocation5 + $0x2a4] ss:$16 sps:$4 sm:$0xff]   ;;  %v7076_v11 = vld [vmem:[#allocation5 + $0x2a0] ss:$16 sps:$4 sm:$0xff]   ;;  %1298 = vmatprep.mubr.bf16.mxu1 %v8516_v52  ;;  %s6175_s22 = sshll.u32 %s9028_s24, 4  ;;  %p9120_p11 = scmp.ne.s32.totalorder %s9109_s28, 0  ;;  %s6176_s22 = int_to_ptr.vmem [resolvable:$true] %s6175_s22 }
  0x8a   : > { %1228 = vmatpush1.bf16.msra.mxu0 %v7069_v6  ;;  %v7077_v12 = vld [vmem:[#allocation5 + $0x84] ss:$16 sps:$4 sm:$0xff]   ;;  %v7081_v14 = vld [vmem:[#allocation5 + $0x80] ss:$16 sps:$4 sm:$0xff]   ;;  %v7157_v6 = vld [vmem:[#allocation5 + $0xec] ss:$16 sps:$4 sm:$0xff]  }
  0x8b   : > { %1269 = vmatpush1.bf16.msra.mxu1 %v7070_v7  ;;  %1229 = vmatprep.subr.bf16.mxu0 %v7071_v8  ;;  %v7079_v13 = vld [vmem:[#allocation5 + $0x284] ss:$16 sps:$4 sm:$0xff]   ;;  %v7082_v15 = vld [vmem:[#allocation5 + $0x280] ss:$16 sps:$4 sm:$0xff]   ;;  %v7160_v7 = vld [vmem:[#allocation5 + $0x2ec] ss:$16 sps:$4 sm:$0xff]  }
  0x8c   : > { %1270 = vmatprep.subr.bf16.mxu1 %v7073_v9  ;;  %v7083_v16 = vld [vmem:[#allocation5 + $0x64] ss:$16 sps:$4 sm:$0xff]   ;;  %v7087_v18 = vld [vmem:[#allocation5 + $0x60] ss:$16 sps:$4 sm:$0xff]   ;;  %s8177_s1 = scalar_lea.vmem %s6176_s22, 512  ;;  %s8264_s19 = smov [#allocation13]  }
  0x8d   : > { %v7085_v17 = vld [vmem:[#allocation5 + $0x264] ss:$16 sps:$4 sm:$0xff]   ;;  %v7088_v19 = vld [vmem:[#allocation5 + $0x260] ss:$16 sps:$4 sm:$0xff]   ;;  %p8178_p8 = scmp.ne.s32.totalorder %s6176_s22, %s8177_s1  ;;  %s8181_s20 = sshll.u32 %s8264_s19, 4  ;;  %s8182_s20 = int_to_ptr.vmem [resolvable:$false] %s8181_s20 }
  0x8e   : > { %1230 = vmatpush1.bf16.msra.mxu0 %v7075_v10  ;;  %v7089_v20 = vld [vmem:[#allocation5 + $0x44] ss:$16 sps:$4 sm:$0xff]   ;;  %v7093_v22 = vld [vmem:[#allocation5 + $0x40] ss:$16 sps:$4 sm:$0xff]   ;;  %v7155_v10 = vld [vmem:[#allocation5 + $0xe8] ss:$16 sps:$4 sm:$0xff]   ;;  %p8184_p5 = scmp.lt.s32.totalorder %s6176_s22, %s8182_s20 }
  0x8f   : > { %1271 = vmatpush1.bf16.msra.mxu1 %v7076_v11  ;;  %1231 = vmatprep.subr.bf16.mxu0 %v7077_v12  ;;  %v7091_v21 = vld [vmem:[#allocation5 + $0x244] ss:$16 sps:$4 sm:$0xff]   ;;  %v7094_v23 = vld [vmem:[#allocation5 + $0x240] ss:$16 sps:$4 sm:$0xff]   ;;  %v7158_v11 = vld [vmem:[#allocation5 + $0x2e8] ss:$16 sps:$4 sm:$0xff]   ;;  %p8179_p0 = pnand %p8178_p8, %p9120_p11 }
  0x90   : > { %1272 = vmatprep.subr.bf16.mxu1 %v7079_v13  ;;  %v7095_v24 = vld [vmem:[#allocation5 + $0x24] ss:$16 sps:$4 sm:$0xff]   ;;  %v7099_v26 = vld [vmem:[#allocation5 + $0x20] ss:$16 sps:$4 sm:$0xff]   ;;  %v7163_v12 = vld [vmem:[#allocation5 + $0xcc] ss:$16 sps:$4 sm:$0xff]  }
  0x91   : > { %v7097_v25 = vld [vmem:[#allocation5 + $0x224] ss:$16 sps:$4 sm:$0xff]   ;;  %v7100_v27 = vld [vmem:[#allocation5 + $0x220] ss:$16 sps:$4 sm:$0xff]   ;;  %v7166_v13 = vld [vmem:[#allocation5 + $0x2cc] ss:$16 sps:$4 sm:$0xff]   ;;  %p8180_p13 = pneg %p8179_p0 }
  0x92   : > { %1232 = vmatpush1.bf16.msra.mxu0 %v7081_v14  ;;  %v7101_v28 = vld [vmem:[#allocation5 + $0x4] ss:$16 sps:$4 sm:$0xff]   ;;  %v7105_v30 = vld [vmem:[#allocation5] ss:$16 sps:$4 sm:$0xff]   ;;  %v7161_v14 = vld [vmem:[#allocation5 + $0xc8] ss:$16 sps:$4 sm:$0xff]  }
  0x93   : > { %1273 = vmatpush1.bf16.msra.mxu1 %v7082_v15  ;;  %1233 = vmatprep.subr.bf16.mxu0 %v7083_v16  ;;  %v7103_v29 = vld [vmem:[#allocation5 + $0x204] ss:$16 sps:$4 sm:$0xff]   ;;  %v7106_v31 = vld [vmem:[#allocation5 + $0x200] ss:$16 sps:$4 sm:$0xff]   ;;  %v7164_v15 = vld [vmem:[#allocation5 + $0x2c8] ss:$16 sps:$4 sm:$0xff]  }
  0x94   : > { %1274 = vmatprep.subr.bf16.mxu1 %v7085_v17  ;;  %v7107_v32 = vld [vmem:[#allocation5 + $0x1e4] ss:$16 sps:$4 sm:$0xff]   ;;  %v7111_v34 = vld [vmem:[#allocation5 + $0x1e0] ss:$16 sps:$4 sm:$0xff]   ;;  %v7169_v16 = vld [vmem:[#allocation5 + $0xac] ss:$16 sps:$4 sm:$0xff]  }
  0x95   : > { %v7109_v33 = vld [vmem:[#allocation5 + $0x3e4] ss:$16 sps:$4 sm:$0xff]   ;;  %v7112_v35 = vld [vmem:[#allocation5 + $0x3e0] ss:$16 sps:$4 sm:$0xff]   ;;  %v7172_v17 = vld [vmem:[#allocation5 + $0x2ac] ss:$16 sps:$4 sm:$0xff]  }
  0x96   : > { %1234 = vmatpush1.bf16.msra.mxu0 %v7087_v18  ;;  %v7113_v36 = vld [vmem:[#allocation5 + $0x1c4] ss:$16 sps:$4 sm:$0xff]   ;;  %v7117_v38 = vld [vmem:[#allocation5 + $0x1c0] ss:$16 sps:$4 sm:$0xff]   ;;  %v7167_v18 = vld [vmem:[#allocation5 + $0xa8] ss:$16 sps:$4 sm:$0xff]  }
  0x97   : > { %1275 = vmatpush1.bf16.msra.mxu1 %v7088_v19  ;;  %1235 = vmatprep.subr.bf16.mxu0 %v7089_v20  ;;  %v7115_v37 = vld [vmem:[#allocation5 + $0x3c4] ss:$16 sps:$4 sm:$0xff]   ;;  %v7118_v39 = vld [vmem:[#allocation5 + $0x3c0] ss:$16 sps:$4 sm:$0xff]   ;;  %v7170_v19 = vld [vmem:[#allocation5 + $0x2a8] ss:$16 sps:$4 sm:$0xff]  }
  0x98   : > { %1276 = vmatprep.subr.bf16.mxu1 %v7091_v21  ;;  %v7119_v40 = vld [vmem:[#allocation5 + $0x1a4] ss:$16 sps:$4 sm:$0xff]   ;;  %v7123_v42 = vld [vmem:[#allocation5 + $0x1a0] ss:$16 sps:$4 sm:$0xff]   ;;  %v7175_v20 = vld [vmem:[#allocation5 + $0x8c] ss:$16 sps:$4 sm:$0xff]  }
  0x99   : > { %v7121_v41 = vld [vmem:[#allocation5 + $0x3a4] ss:$16 sps:$4 sm:$0xff]   ;;  %v7124_v43 = vld [vmem:[#allocation5 + $0x3a0] ss:$16 sps:$4 sm:$0xff]   ;;  %v7178_v21 = vld [vmem:[#allocation5 + $0x28c] ss:$16 sps:$4 sm:$0xff]  }
  0x9a   : > { %1236 = vmatpush1.bf16.msra.mxu0 %v7093_v22  ;;  %v7125_v44 = vld [vmem:[#allocation5 + $0x184] ss:$16 sps:$4 sm:$0xff]   ;;  %v7129_v47 = vld [vmem:[#allocation5 + $0x180] ss:$16 sps:$4 sm:$0xff]   ;;  %v7173_v22 = vld [vmem:[#allocation5 + $0x88] ss:$16 sps:$4 sm:$0xff]  }
  0x9b   : > { %1277 = vmatpush1.bf16.msra.mxu1 %v7094_v23  ;;  %1237 = vmatprep.subr.bf16.mxu0 %v7095_v24  ;;  %v7127_v45 = vld [vmem:[#allocation5 + $0x384] ss:$16 sps:$4 sm:$0xff]   ;;  %v7130_v48 = vld [vmem:[#allocation5 + $0x380] ss:$16 sps:$4 sm:$0xff]   ;;  %v7176_v23 = vld [vmem:[#allocation5 + $0x288] ss:$16 sps:$4 sm:$0xff]  }
  0x9c   : > { %1278 = vmatprep.subr.bf16.mxu1 %v7097_v25  ;;  %v7131_v51 = vld [vmem:[#allocation5 + $0x164] ss:$16 sps:$4 sm:$0xff]   ;;  %v7135_v54 = vld [vmem:[#allocation5 + $0x160] ss:$16 sps:$4 sm:$0xff]   ;;  %v7181_v24 = vld [vmem:[#allocation5 + $0x6c] ss:$16 sps:$4 sm:$0xff]  }
  0x9d   : > { %v7133_v53 = vld [vmem:[#allocation5 + $0x364] ss:$16 sps:$4 sm:$0xff]   ;;  %v7136_v55 = vld [vmem:[#allocation5 + $0x360] ss:$16 sps:$4 sm:$0xff]   ;;  %v7184_v25 = vld [vmem:[#allocation5 + $0x26c] ss:$16 sps:$4 sm:$0xff]  }
  0x9e   : > { %1238 = vmatpush1.bf16.msra.mxu0 %v7099_v26  ;;  %v7137_v56 = vld [vmem:[#allocation5 + $0x144] ss:$16 sps:$4 sm:$0xff]   ;;  %v7141_v58 = vld [vmem:[#allocation5 + $0x140] ss:$16 sps:$4 sm:$0xff]   ;;  %v7179_v26 = vld [vmem:[#allocation5 + $0x68] ss:$16 sps:$4 sm:$0xff]  }
  0x9f   : > { %1279 = vmatpush1.bf16.msra.mxu1 %v7100_v27  ;;  %1239 = vmatprep.subr.bf16.mxu0 %v7101_v28  ;;  %v7139_v57 = vld [vmem:[#allocation5 + $0x344] ss:$16 sps:$4 sm:$0xff]   ;;  %v7142_v59 = vld [vmem:[#allocation5 + $0x340] ss:$16 sps:$4 sm:$0xff]   ;;  %v7182_v27 = vld [vmem:[#allocation5 + $0x268] ss:$16 sps:$4 sm:$0xff]  }
  0xa0   : > { %1280 = vmatprep.subr.bf16.mxu1 %v7103_v29  ;;  %v7143_v60 = vld [vmem:[#allocation5 + $0x124] ss:$16 sps:$4 sm:$0xff]   ;;  %v7147_v62 = vld [vmem:[#allocation5 + $0x120] ss:$16 sps:$4 sm:$0xff]   ;;  %v7187_v28 = vld [vmem:[#allocation5 + $0x4c] ss:$16 sps:$4 sm:$0xff]  }
  0xa1   : > { %v7145_v61 = vld [vmem:[#allocation5 + $0x324] ss:$16 sps:$4 sm:$0xff]   ;;  %v7148_v63 = vld [vmem:[#allocation5 + $0x320] ss:$16 sps:$4 sm:$0xff]   ;;  %v7190_v29 = vld [vmem:[#allocation5 + $0x24c] ss:$16 sps:$4 sm:$0xff]  }
  0xa2   : > { %1240 = vmatpush1.bf16.msra.mxu0 %v7105_v30  ;;  %v7149_v0 = vld [vmem:[#allocation5 + $0x104] ss:$16 sps:$4 sm:$0xff]   ;;  %v7153_v2 = vld [vmem:[#allocation5 + $0x100] ss:$16 sps:$4 sm:$0xff]   ;;  %v7185_v30 = vld [vmem:[#allocation5 + $0x48] ss:$16 sps:$4 sm:$0xff]  }
  0xa3   : > { %1281 = vmatpush1.bf16.msra.mxu1 %v7106_v31  ;;  %1241 = vmatprep.subr.bf16.mxu0 %v7107_v32  ;;  %v7151_v1 = vld [vmem:[#allocation5 + $0x304] ss:$16 sps:$4 sm:$0xff]   ;;  %v7154_v3 = vld [vmem:[#allocation5 + $0x300] ss:$16 sps:$4 sm:$0xff]   ;;  %v7188_v31 = vld [vmem:[#allocation5 + $0x248] ss:$16 sps:$4 sm:$0xff]  }
  0xa4   : > { %1282 = vmatprep.subr.bf16.mxu1 %v7109_v33  ;;  %v449_v4 = vld [vmem:[%s8494_s7] sm:$0xff]  ;;  %v451_v5 = vld [vmem:[%s8494_s7 + $0x10] sm:$0xff]  ;;  %v7193_v32 = vld [vmem:[#allocation5 + $0x2c] ss:$16 sps:$4 sm:$0xff]   ;;  %s6161_s7 = scalar_lea.sflag [#allocation4], %s8488_s2  ;;  %s8183_s17 = scalar_lea.vmem %s8182_s20, 1024 }
  0xa5   : > { %v8522_v8 = vpack.c.bf16 %v449_v4, %v449_v4  ;;  %v8524_v9 = vpack.c.bf16 %v451_v5, %v451_v5  ;;  %v7196_v33 = vld [vmem:[#allocation5 + $0x22c] ss:$16 sps:$4 sm:$0xff]   ;;  %v7239_v4 = vld [vmem:[#allocation5 + $0x128] ss:$16 sps:$4 sm:$0xff]   ;;  %p8185_p9 = scmp.lt.s32.totalorder %s8183_s17, %s8177_s1 }
  0xa6   : > { %1242 = vmatpush2.bf16.msra.mxu0 %v7111_v34  ;;  %v7191_v34 = vld [vmem:[#allocation5 + $0x28] ss:$16 sps:$4 sm:$0xff]  }
  0xa7   : > { %1283 = vmatpush2.bf16.msra.mxu1 %v7112_v35  ;;  %1243 = vmatprep.subr.bf16.mxu0 %v7113_v36  ;;  %v7194_v35 = vld [vmem:[#allocation5 + $0x228] ss:$16 sps:$4 sm:$0xff]   ;;  %v7199_v36 = vld [vmem:[#allocation5 + $0xc] ss:$16 sps:$4 sm:$0xff]   ;;  %p8186_p10 = por %p8185_p9, %p8184_p5 }
  0xa8   : > { %1284 = vmatprep.subr.bf16.mxu1 %v7115_v37  ;;  %v7202_v37 = vld [vmem:[#allocation5 + $0x20c] ss:$16 sps:$4 sm:$0xff]   ;;  %v7242_v5 = vld [vmem:[#allocation5 + $0x328] ss:$16 sps:$4 sm:$0xff]  }
  0xa9   : > { %p8187_p1 = pnand %p8186_p10, %p8180_p13 }
  0xaa   : > { %1244 = vmatpush2.bf16.msra.mxu0 %v7117_v38  ;;  %v7197_v38 = vld [vmem:[#allocation5 + $0x8] ss:$16 sps:$4 sm:$0xff]  }
  0xab   : > { %1285 = vmatpush2.bf16.msra.mxu1 %v7118_v39  ;;  %1245 = vmatprep.subr.bf16.mxu0 %v7119_v40  ;;  %v7200_v39 = vld [vmem:[#allocation5 + $0x208] ss:$16 sps:$4 sm:$0xff]   ;;  %v7205_v40 = vld [vmem:[#allocation5 + $0x1ec] ss:$16 sps:$4 sm:$0xff]  }
  0xac   : > { %1286 = vmatprep.subr.bf16.mxu1 %v7121_v41  ;;  %v7208_v41 = vld [vmem:[#allocation5 + $0x3ec] ss:$16 sps:$4 sm:$0xff]  }
  0xae   : > { %1246 = vmatpush2.bf16.msra.mxu0 %v7123_v42  ;;  %v7203_v42 = vld [vmem:[#allocation5 + $0x1e8] ss:$16 sps:$4 sm:$0xff]  }
  0xaf   : > { %1287 = vmatpush2.bf16.msra.mxu1 %v7124_v43  ;;  %1247 = vmatprep.subr.bf16.mxu0 %v7125_v44  ;;  %v7206_v43 = vld [vmem:[#allocation5 + $0x3e8] ss:$16 sps:$4 sm:$0xff]   ;;  %v7211_v44 = vld [vmem:[#allocation5 + $0x1cc] ss:$16 sps:$4 sm:$0xff]  }
  0xb0   : > { %1288 = vmatprep.subr.bf16.mxu1 %v7127_v45  ;;  %v7214_v45 = vld [vmem:[#allocation5 + $0x3cc] ss:$16 sps:$4 sm:$0xff]  }
  0xb2   : > { %1248 = vmatpush2.bf16.msra.mxu0 %v7129_v47  ;;  %v7212_v47 = vld [vmem:[#allocation5 + $0x3c8] ss:$16 sps:$4 sm:$0xff]  }
  0xb3   : > { %1289 = vmatpush2.bf16.msra.mxu1 %v7130_v48  ;;  %1249 = vmatprep.subr.bf16.mxu0 %v7131_v51  ;;  %v7217_v48 = vld [vmem:[#allocation5 + $0x1ac] ss:$16 sps:$4 sm:$0xff]   ;;  %v7215_v51 = vld [vmem:[#allocation5 + $0x1a8] ss:$16 sps:$4 sm:$0xff]  }
  0xb4   : > { %1290 = vmatprep.subr.bf16.mxu1 %v7133_v53  ;;  %v7218_v53 = vld [vmem:[#allocation5 + $0x3a8] ss:$16 sps:$4 sm:$0xff]  }
  0xb6   : > { %1250 = vmatpush2.bf16.msra.mxu0 %v7135_v54  ;;  %v7223_v54 = vld [vmem:[#allocation5 + $0x18c] ss:$16 sps:$4 sm:$0xff]  }
  0xb7   : > { %1291 = vmatpush2.bf16.msra.mxu1 %v7136_v55  ;;  %1251 = vmatprep.subr.bf16.mxu0 %v7137_v56  ;;  %v7226_v55 = vld [vmem:[#allocation5 + $0x38c] ss:$16 sps:$4 sm:$0xff]   ;;  %v7221_v56 = vld [vmem:[#allocation5 + $0x188] ss:$16 sps:$4 sm:$0xff]  }
  0xb8   : > { %1292 = vmatprep.subr.bf16.mxu1 %v7139_v57  ;;  %v7224_v57 = vld [vmem:[#allocation5 + $0x388] ss:$16 sps:$4 sm:$0xff]  }
  0xba   : > { %1252 = vmatpush2.bf16.msra.mxu0 %v7141_v58  ;;  %v7229_v58 = vld [vmem:[#allocation5 + $0x16c] ss:$16 sps:$4 sm:$0xff]  }
  0xbb   : > { %1293 = vmatpush2.bf16.msra.mxu1 %v7142_v59  ;;  %1253 = vmatprep.subr.bf16.mxu0 %v7143_v60  ;;  %v7232_v59 = vld [vmem:[#allocation5 + $0x36c] ss:$16 sps:$4 sm:$0xff]   ;;  %v7227_v60 = vld [vmem:[#allocation5 + $0x168] ss:$16 sps:$4 sm:$0xff]  }
  0xbc   : > { %1294 = vmatprep.subr.bf16.mxu1 %v7145_v61  ;;  %v7230_v61 = vld [vmem:[#allocation5 + $0x368] ss:$16 sps:$4 sm:$0xff]  }
  0xbe   : > { %1254 = vmatpush2.bf16.msra.mxu0 %v7147_v62  ;;  %v7235_v62 = vld [vmem:[#allocation5 + $0x14c] ss:$16 sps:$4 sm:$0xff]  }
  0xbf   : > { %1295 = vmatpush2.bf16.msra.mxu1 %v7148_v63  ;;  %1255 = vmatprep.subr.bf16.mxu0 %v7149_v0  ;;  %v7238_v63 = vld [vmem:[#allocation5 + $0x34c] ss:$16 sps:$4 sm:$0xff]   ;;  %v7233_v0 = vld [vmem:[#allocation5 + $0x148] ss:$16 sps:$4 sm:$0xff]  }
  0xc0   : > { %1296 = vmatprep.subr.bf16.mxu1 %v7151_v1  ;;  %v7236_v1 = vld [vmem:[#allocation5 + $0x348] ss:$16 sps:$4 sm:$0xff]  }
  0xc2   : > { %1256 = vmatpush2.bf16.msra.mxu0 %v7153_v2  ;;  %v7241_v2 = vld [vmem:[#allocation5 + $0x12c] ss:$16 sps:$4 sm:$0xff]  }
  0xc3   : > { %1297 = vmatpush2.bf16.msra.mxu1 %v7154_v3  ;;  %1307 = vmatprep.subr.bf16.mxu0 %v7157_v6  ;;  %v7244_v3 = vld [vmem:[#allocation5 + $0x32c] ss:$16 sps:$4 sm:$0xff]  }
  0xc4   : > { %1348 = vmatprep.subr.bf16.mxu1 %v7160_v7  ;;  %v7247_v6 = vld [vmem:[#allocation5 + $0x10c] ss:$16 sps:$4 sm:$0xff]  }
  0xc5   : > { %1258 = vmatmul.mubr.bf16.vlgmr.msra.gmra.mxu0 %v8522_v8  ;;  %v7250_v7 = vld [vmem:[#allocation5 + $0x30c] ss:$16 sps:$4 sm:$0xff]  }
  0xc6   : > { %1299 = vmatmul.mubr.bf16.vlgmr.msra.gmra.mxu1 %v8524_v9  ;;  %1308 = vmatpush1.bf16.msra.mxu0 %v7155_v10  ;;  %v7245_v10 = vld [vmem:[#allocation5 + $0x108] ss:$16 sps:$4 sm:$0xff]  }
  0xc7   : > { %1349 = vmatpush1.bf16.msra.mxu1 %v7158_v11  ;;  %1309 = vmatprep.subr.bf16.mxu0 %v7163_v12  ;;  %v7248_v11 = vld [vmem:[#allocation5 + $0x308] ss:$16 sps:$4 sm:$0xff]   ;;  %v7253_v12 = vld [vmem:[#allocation7 + $0xe4] ss:$16 sps:$4 sm:$0xff]  }
  0xc8   : > { %1350 = vmatprep.subr.bf16.mxu1 %v7166_v13  ;;  %1339 = vmatprep.mubr.bf16.mxu0 %v8513_v49  ;;  %v7256_v13 = vld [vmem:[#allocation7 + $0x2e4] ss:$16 sps:$4 sm:$0xff]  }
  0xc9   : > { %1380 = vmatprep.mubr.bf16.mxu1 %v8516_v52 }
  0xca   : > { %1310 = vmatpush1.bf16.msra.mxu0 %v7161_v14  ;;  %v7251_v14 = vld [vmem:[#allocation7 + $0xe0] ss:$16 sps:$4 sm:$0xff]  }
  0xcb   : > { %1351 = vmatpush1.bf16.msra.mxu1 %v7164_v15  ;;  %1311 = vmatprep.subr.bf16.mxu0 %v7169_v16  ;;  %v7254_v15 = vld [vmem:[#allocation7 + $0x2e0] ss:$16 sps:$4 sm:$0xff]   ;;  %v7259_v16 = vld [vmem:[#allocation7 + $0xc4] ss:$16 sps:$4 sm:$0xff]  }
  0xcc   : > { %1352 = vmatprep.subr.bf16.mxu1 %v7172_v17  ;;  %v7262_v17 = vld [vmem:[#allocation7 + $0x2c4] ss:$16 sps:$4 sm:$0xff]  }
  0xce   : > { %1312 = vmatpush1.bf16.msra.mxu0 %v7167_v18  ;;  %v7257_v18 = vld [vmem:[#allocation7 + $0xc0] ss:$16 sps:$4 sm:$0xff]  }
  0xcf   : > { %1353 = vmatpush1.bf16.msra.mxu1 %v7170_v19  ;;  %1313 = vmatprep.subr.bf16.mxu0 %v7175_v20  ;;  %v7260_v19 = vld [vmem:[#allocation7 + $0x2c0] ss:$16 sps:$4 sm:$0xff]   ;;  %v7265_v20 = vld [vmem:[#allocation7 + $0xa4] ss:$16 sps:$4 sm:$0xff]  }
  0xd0   : > { %1354 = vmatprep.subr.bf16.mxu1 %v7178_v21  ;;  %v7268_v21 = vld [vmem:[#allocation7 + $0x2a4] ss:$16 sps:$4 sm:$0xff]  }
  0xd2   : > { %1314 = vmatpush1.bf16.msra.mxu0 %v7173_v22  ;;  %v7263_v22 = vld [vmem:[#allocation7 + $0xa0] ss:$16 sps:$4 sm:$0xff]  }
  0xd3   : > { %1355 = vmatpush1.bf16.msra.mxu1 %v7176_v23  ;;  %1315 = vmatprep.subr.bf16.mxu0 %v7181_v24  ;;  %v7266_v23 = vld [vmem:[#allocation7 + $0x2a0] ss:$16 sps:$4 sm:$0xff]   ;;  %v7271_v24 = vld [vmem:[#allocation7 + $0x84] ss:$16 sps:$4 sm:$0xff]  }
  0xd4   : > { %1356 = vmatprep.subr.bf16.mxu1 %v7184_v25  ;;  %v7274_v25 = vld [vmem:[#allocation7 + $0x284] ss:$16 sps:$4 sm:$0xff]  }
  0xd6   : > { %1316 = vmatpush1.bf16.msra.mxu0 %v7179_v26  ;;  %v7269_v26 = vld [vmem:[#allocation7 + $0x80] ss:$16 sps:$4 sm:$0xff]  }
  0xd7   : > { %1357 = vmatpush1.bf16.msra.mxu1 %v7182_v27  ;;  %1317 = vmatprep.subr.bf16.mxu0 %v7187_v28  ;;  %v7272_v27 = vld [vmem:[#allocation7 + $0x280] ss:$16 sps:$4 sm:$0xff]   ;;  %v7277_v28 = vld [vmem:[#allocation7 + $0x64] ss:$16 sps:$4 sm:$0xff]  }
  0xd8   : > { %1358 = vmatprep.subr.bf16.mxu1 %v7190_v29  ;;  %v7280_v29 = vld [vmem:[#allocation7 + $0x264] ss:$16 sps:$4 sm:$0xff]  }
  0xda   : > { %1318 = vmatpush1.bf16.msra.mxu0 %v7185_v30  ;;  %v7275_v30 = vld [vmem:[#allocation7 + $0x60] ss:$16 sps:$4 sm:$0xff]  }
  0xdb   : > { %1359 = vmatpush1.bf16.msra.mxu1 %v7188_v31  ;;  %1319 = vmatprep.subr.bf16.mxu0 %v7193_v32  ;;  %v7278_v31 = vld [vmem:[#allocation7 + $0x260] ss:$16 sps:$4 sm:$0xff]   ;;  %v7283_v32 = vld [vmem:[#allocation7 + $0x44] ss:$16 sps:$4 sm:$0xff]  }
  0xdc   : > { %1360 = vmatprep.subr.bf16.mxu1 %v7196_v33  ;;  %v7286_v33 = vld [vmem:[#allocation7 + $0x244] ss:$16 sps:$4 sm:$0xff]  }
  0xde   : > { %1320 = vmatpush1.bf16.msra.mxu0 %v7191_v34  ;;  %v7281_v34 = vld [vmem:[#allocation7 + $0x40] ss:$16 sps:$4 sm:$0xff]  }
  0xdf   : > { %1361 = vmatpush1.bf16.msra.mxu1 %v7194_v35  ;;  %1321 = vmatprep.subr.bf16.mxu0 %v7199_v36  ;;  %v7284_v35 = vld [vmem:[#allocation7 + $0x240] ss:$16 sps:$4 sm:$0xff]   ;;  %v7289_v36 = vld [vmem:[#allocation7 + $0x24] ss:$16 sps:$4 sm:$0xff]  }
  0xe0   : > { %1362 = vmatprep.subr.bf16.mxu1 %v7202_v37  ;;  %v7292_v37 = vld [vmem:[#allocation7 + $0x224] ss:$16 sps:$4 sm:$0xff]  }
  0xe2   : > { %1322 = vmatpush1.bf16.msra.mxu0 %v7197_v38  ;;  %v7287_v38 = vld [vmem:[#allocation7 + $0x20] ss:$16 sps:$4 sm:$0xff]  }
  0xe3   : > { %1363 = vmatpush1.bf16.msra.mxu1 %v7200_v39  ;;  %1323 = vmatprep.subr.bf16.mxu0 %v7205_v40  ;;  %v7290_v39 = vld [vmem:[#allocation7 + $0x220] ss:$16 sps:$4 sm:$0xff]   ;;  %v7295_v40 = vld [vmem:[#allocation7 + $0x4] ss:$16 sps:$4 sm:$0xff]  }
  0xe4   : > { %1364 = vmatprep.subr.bf16.mxu1 %v7208_v41  ;;  %v7298_v41 = vld [vmem:[#allocation7 + $0x204] ss:$16 sps:$4 sm:$0xff]  }
  0xe6   : > { %1324 = vmatpush2.bf16.msra.mxu0 %v7203_v42  ;;  %v7293_v42 = vld [vmem:[#allocation7] ss:$16 sps:$4 sm:$0xff]  }
  0xe7   : > { %1365 = vmatpush2.bf16.msra.mxu1 %v7206_v43  ;;  %1325 = vmatprep.subr.bf16.mxu0 %v7211_v44  ;;  %v7296_v43 = vld [vmem:[#allocation7 + $0x200] ss:$16 sps:$4 sm:$0xff]   ;;  %v7301_v44 = vld [vmem:[#allocation7 + $0x1e4] ss:$16 sps:$4 sm:$0xff]  }
  0xe8   : > { %1366 = vmatprep.subr.bf16.mxu1 %v7214_v45  ;;  %v7304_v45 = vld [vmem:[#allocation7 + $0x3e4] ss:$16 sps:$4 sm:$0xff]  }
  0xea   : > { %1326 = vmatpush2.bf16.msra.mxu0 %v7209_v46  ;;  %v7299_v46 = vld [vmem:[#allocation7 + $0x1e0] ss:$16 sps:$4 sm:$0xff]  }
  0xeb   : > { %1367 = vmatpush2.bf16.msra.mxu1 %v7212_v47  ;;  %1327 = vmatprep.subr.bf16.mxu0 %v7217_v48  ;;  %v7302_v47 = vld [vmem:[#allocation7 + $0x3e0] ss:$16 sps:$4 sm:$0xff]   ;;  %v7307_v48 = vld [vmem:[#allocation7 + $0x1c4] ss:$16 sps:$4 sm:$0xff]  }
  0xec   : > { %1368 = vmatprep.subr.bf16.mxu1 %v7220_v50  ;;  %v7310_v50 = vld [vmem:[#allocation7 + $0x3c4] ss:$16 sps:$4 sm:$0xff]  }
  0xee   : > { %1328 = vmatpush2.bf16.msra.mxu0 %v7215_v51  ;;  %v7305_v51 = vld [vmem:[#allocation7 + $0x1c0] ss:$16 sps:$4 sm:$0xff]  }
  0xef   : > { %1369 = vmatpush2.bf16.msra.mxu1 %v7218_v53  ;;  %1329 = vmatprep.subr.bf16.mxu0 %v7223_v54  ;;  %v7308_v53 = vld [vmem:[#allocation7 + $0x3c0] ss:$16 sps:$4 sm:$0xff]   ;;  %v7313_v54 = vld [vmem:[#allocation7 + $0x1a4] ss:$16 sps:$4 sm:$0xff]  }
  0xf0   : > { %1370 = vmatprep.subr.bf16.mxu1 %v7226_v55  ;;  %v7316_v55 = vld [vmem:[#allocation7 + $0x3a4] ss:$16 sps:$4 sm:$0xff]  }
  0xf2   : > { %1330 = vmatpush2.bf16.msra.mxu0 %v7221_v56  ;;  %v7311_v56 = vld [vmem:[#allocation7 + $0x1a0] ss:$16 sps:$4 sm:$0xff]  }
  0xf3   : > { %1371 = vmatpush2.bf16.msra.mxu1 %v7224_v57  ;;  %1331 = vmatprep.subr.bf16.mxu0 %v7229_v58  ;;  %v7314_v57 = vld [vmem:[#allocation7 + $0x3a0] ss:$16 sps:$4 sm:$0xff]   ;;  %v7319_v58 = vld [vmem:[#allocation7 + $0x184] ss:$16 sps:$4 sm:$0xff]  }
  0xf4   : > { %1372 = vmatprep.subr.bf16.mxu1 %v7232_v59  ;;  %v7322_v59 = vld [vmem:[#allocation7 + $0x384] ss:$16 sps:$4 sm:$0xff]  }
  0xf6   : > { %1332 = vmatpush2.bf16.msra.mxu0 %v7227_v60  ;;  %v7317_v60 = vld [vmem:[#allocation7 + $0x180] ss:$16 sps:$4 sm:$0xff]  }
  0xf7   : > { %1373 = vmatpush2.bf16.msra.mxu1 %v7230_v61  ;;  %1333 = vmatprep.subr.bf16.mxu0 %v7235_v62  ;;  %v7320_v61 = vld [vmem:[#allocation7 + $0x380] ss:$16 sps:$4 sm:$0xff]   ;;  %v7325_v62 = vld [vmem:[#allocation7 + $0x164] ss:$16 sps:$4 sm:$0xff]  }
  0xf8   : > { %1374 = vmatprep.subr.bf16.mxu1 %v7238_v63  ;;  %v7328_v63 = vld [vmem:[#allocation7 + $0x364] ss:$16 sps:$4 sm:$0xff]  }
  0xfa   : > { %1334 = vmatpush2.bf16.msra.mxu0 %v7233_v0  ;;  %v7323_v0 = vld [vmem:[#allocation7 + $0x160] ss:$16 sps:$4 sm:$0xff]  }
  0xfb   : > { %1375 = vmatpush2.bf16.msra.mxu1 %v7236_v1  ;;  %1335 = vmatprep.subr.bf16.mxu0 %v7241_v2  ;;  %v7326_v1 = vld [vmem:[#allocation7 + $0x360] ss:$16 sps:$4 sm:$0xff]   ;;  %v7331_v2 = vld [vmem:[#allocation7 + $0x144] ss:$16 sps:$4 sm:$0xff]  }
  0xfc   : > { %1376 = vmatprep.subr.bf16.mxu1 %v7244_v3  ;;  %v7334_v3 = vld [vmem:[#allocation7 + $0x344] ss:$16 sps:$4 sm:$0xff]  }
  0xfe   : > { %1336 = vmatpush2.bf16.msra.mxu0 %v7239_v4  ;;  %v7329_v4 = vld [vmem:[#allocation7 + $0x140] ss:$16 sps:$4 sm:$0xff]  }
  0xff   : > { %1377 = vmatpush2.bf16.msra.mxu1 %v7242_v5  ;;  %1337 = vmatprep.subr.bf16.mxu0 %v7247_v6  ;;  %v7332_v5 = vld [vmem:[#allocation7 + $0x340] ss:$16 sps:$4 sm:$0xff]   ;;  %v7337_v6 = vld [vmem:[#allocation7 + $0x124] ss:$16 sps:$4 sm:$0xff]  }
 0x100   : > { %1378 = vmatprep.subr.bf16.mxu1 %v7250_v7  ;;  %v7340_v7 = vld [vmem:[#allocation7 + $0x324] ss:$16 sps:$4 sm:$0xff]  }
 0x102   : > { %1338 = vmatpush2.bf16.msra.mxu0 %v7245_v10  ;;  %v7335_v10 = vld [vmem:[#allocation7 + $0x120] ss:$16 sps:$4 sm:$0xff]  }
 0x103   : > { %1379 = vmatpush2.bf16.msra.mxu1 %v7248_v11  ;;  %2179 = vmatprep.subr.bf16.mxu0 %v7253_v12  ;;  %v7338_v11 = vld [vmem:[#allocation7 + $0x320] ss:$16 sps:$4 sm:$0xff]   ;;  %v7343_v12 = vld [vmem:[#allocation7 + $0x104] ss:$16 sps:$4 sm:$0xff]  }
 0x104   : > { %2220 = vmatprep.subr.bf16.mxu1 %v7256_v13  ;;  %v7346_v13 = vld [vmem:[#allocation7 + $0x304] ss:$16 sps:$4 sm:$0xff]  }
 0x105   : > { %1340 = vmatmul.mubr.bf16.vlgmr.msra.gmra.mxu0 %v8522_v8 }
 0x106   : > { %1381 = vmatmul.mubr.bf16.vlgmr.msra.gmra.mxu1 %v8524_v9  ;;  %2180 = vmatpush1.bf16.msra.mxu0 %v7251_v14  ;;  %v7341_v14 = vld [vmem:[#allocation7 + $0x100] ss:$16 sps:$4 sm:$0xff]  }
 0x107   : > { %2221 = vmatpush1.bf16.msra.mxu1 %v7254_v15  ;;  %2181 = vmatprep.subr.bf16.mxu0 %v7259_v16  ;;  %v7344_v15 = vld [vmem:[#allocation7 + $0x300] ss:$16 sps:$4 sm:$0xff]   ;;  %v7349_v16 = vld [vmem:[#allocation7 + $0xec] ss:$16 sps:$4 sm:$0xff]  }
 0x108   : > { %2222 = vmatprep.subr.bf16.mxu1 %v7262_v17  ;;  %2211 = vmatprep.mubr.bf16.mxu0 %v8513_v49  ;;  %v7352_v17 = vld [vmem:[#allocation7 + $0x2ec] ss:$16 sps:$4 sm:$0xff]  }
 0x109   : > { %2252 = vmatprep.mubr.bf16.mxu1 %v8516_v52 }
 0x10a   : > { %2182 = vmatpush1.bf16.msra.mxu0 %v7257_v18  ;;  %v7347_v18 = vld [vmem:[#allocation7 + $0xe8] ss:$16 sps:$4 sm:$0xff]  }
 0x10b   : > { %2223 = vmatpush1.bf16.msra.mxu1 %v7260_v19  ;;  %2183 = vmatprep.subr.bf16.mxu0 %v7265_v20  ;;  %v7350_v19 = vld [vmem:[#allocation7 + $0x2e8] ss:$16 sps:$4 sm:$0xff]   ;;  %v7355_v20 = vld [vmem:[#allocation7 + $0xcc] ss:$16 sps:$4 sm:$0xff]  }
 0x10c   : > { %2224 = vmatprep.subr.bf16.mxu1 %v7268_v21  ;;  %v7358_v21 = vld [vmem:[#allocation7 + $0x2cc] ss:$16 sps:$4 sm:$0xff]  }
 0x10e   : > { %2184 = vmatpush1.bf16.msra.mxu0 %v7263_v22  ;;  %v7353_v22 = vld [vmem:[#allocation7 + $0xc8] ss:$16 sps:$4 sm:$0xff]  }
 0x10f   : > { %2225 = vmatpush1.bf16.msra.mxu1 %v7266_v23  ;;  %2185 = vmatprep.subr.bf16.mxu0 %v7271_v24  ;;  %v7356_v23 = vld [vmem:[#allocation7 + $0x2c8] ss:$16 sps:$4 sm:$0xff]   ;;  %v7361_v24 = vld [vmem:[#allocation7 + $0xac] ss:$16 sps:$4 sm:$0xff]  }
 0x110   : > { %2226 = vmatprep.subr.bf16.mxu1 %v7274_v25  ;;  %v7364_v25 = vld [vmem:[#allocation7 + $0x2ac] ss:$16 sps:$4 sm:$0xff]  }
 0x112   : > { %2186 = vmatpush1.bf16.msra.mxu0 %v7269_v26  ;;  %v7359_v26 = vld [vmem:[#allocation7 + $0xa8] ss:$16 sps:$4 sm:$0xff]  }
 0x113   : > { %2227 = vmatpush1.bf16.msra.mxu1 %v7272_v27  ;;  %2187 = vmatprep.subr.bf16.mxu0 %v7277_v28  ;;  %v7362_v27 = vld [vmem:[#allocation7 + $0x2a8] ss:$16 sps:$4 sm:$0xff]   ;;  %v7367_v28 = vld [vmem:[#allocation7 + $0x8c] ss:$16 sps:$4 sm:$0xff]  }
 0x114   : > { %2228 = vmatprep.subr.bf16.mxu1 %v7280_v29  ;;  %v7370_v29 = vld [vmem:[#allocation7 + $0x28c] ss:$16 sps:$4 sm:$0xff]  }
 0x116   : > { %2188 = vmatpush1.bf16.msra.mxu0 %v7275_v30  ;;  %v7365_v30 = vld [vmem:[#allocation7 + $0x88] ss:$16 sps:$4 sm:$0xff]  }
 0x117   : > { %2229 = vmatpush1.bf16.msra.mxu1 %v7278_v31  ;;  %2189 = vmatprep.subr.bf16.mxu0 %v7283_v32  ;;  %v7368_v31 = vld [vmem:[#allocation7 + $0x288] ss:$16 sps:$4 sm:$0xff]   ;;  %v7373_v32 = vld [vmem:[#allocation7 + $0x6c] ss:$16 sps:$4 sm:$0xff]  }
 0x118   : > { %2230 = vmatprep.subr.bf16.mxu1 %v7286_v33  ;;  %v7376_v33 = vld [vmem:[#allocation7 + $0x26c] ss:$16 sps:$4 sm:$0xff]  }
 0x11a   : > { %2190 = vmatpush1.bf16.msra.mxu0 %v7281_v34  ;;  %v7371_v34 = vld [vmem:[#allocation7 + $0x68] ss:$16 sps:$4 sm:$0xff]  }
 0x11b   : > { %2231 = vmatpush1.bf16.msra.mxu1 %v7284_v35  ;;  %2191 = vmatprep.subr.bf16.mxu0 %v7289_v36  ;;  %v7374_v35 = vld [vmem:[#allocation7 + $0x268] ss:$16 sps:$4 sm:$0xff]   ;;  %v7379_v36 = vld [vmem:[#allocation7 + $0x4c] ss:$16 sps:$4 sm:$0xff]  }
 0x11c   : > { %2232 = vmatprep.subr.bf16.mxu1 %v7292_v37  ;;  %v7382_v37 = vld [vmem:[#allocation7 + $0x24c] ss:$16 sps:$4 sm:$0xff]  }
 0x11e   : > { %2192 = vmatpush1.bf16.msra.mxu0 %v7287_v38  ;;  %v7377_v38 = vld [vmem:[#allocation7 + $0x48] ss:$16 sps:$4 sm:$0xff]  }
 0x11f   : > { %2233 = vmatpush1.bf16.msra.mxu1 %v7290_v39  ;;  %2193 = vmatprep.subr.bf16.mxu0 %v7295_v40  ;;  %v7380_v39 = vld [vmem:[#allocation7 + $0x248] ss:$16 sps:$4 sm:$0xff]   ;;  %v7385_v40 = vld [vmem:[#allocation7 + $0x2c] ss:$16 sps:$4 sm:$0xff]  }
 0x120   : > { %2234 = vmatprep.subr.bf16.mxu1 %v7298_v41  ;;  %v7388_v41 = vld [vmem:[#allocation7 + $0x22c] ss:$16 sps:$4 sm:$0xff]  }
 0x122   : > { %2194 = vmatpush1.bf16.msra.mxu0 %v7293_v42  ;;  %v7383_v42 = vld [vmem:[#allocation7 + $0x28] ss:$16 sps:$4 sm:$0xff]  }
 0x123   : > { %2235 = vmatpush1.bf16.msra.mxu1 %v7296_v43  ;;  %2195 = vmatprep.subr.bf16.mxu0 %v7301_v44  ;;  %v7386_v43 = vld [vmem:[#allocation7 + $0x228] ss:$16 sps:$4 sm:$0xff]   ;;  %v7391_v44 = vld [vmem:[#allocation7 + $0xc] ss:$16 sps:$4 sm:$0xff]  }
 0x124   : > { %2236 = vmatprep.subr.bf16.mxu1 %v7304_v45  ;;  %v7394_v45 = vld [vmem:[#allocation7 + $0x20c] ss:$16 sps:$4 sm:$0xff]  }
 0x126   : > { %2196 = vmatpush2.bf16.msra.mxu0 %v7299_v46  ;;  %v7389_v46 = vld [vmem:[#allocation7 + $0x8] ss:$16 sps:$4 sm:$0xff]  }
 0x127   : > { %2237 = vmatpush2.bf16.msra.mxu1 %v7302_v47  ;;  %2197 = vmatprep.subr.bf16.mxu0 %v7307_v48  ;;  %v7392_v47 = vld [vmem:[#allocation7 + $0x208] ss:$16 sps:$4 sm:$0xff]   ;;  %v7397_v48 = vld [vmem:[#allocation7 + $0x1ec] ss:$16 sps:$4 sm:$0xff]  }
 0x128   : > { %2238 = vmatprep.subr.bf16.mxu1 %v7310_v50  ;;  %v7400_v50 = vld [vmem:[#allocation7 + $0x3ec] ss:$16 sps:$4 sm:$0xff]  }
 0x12a   : > { %2198 = vmatpush2.bf16.msra.mxu0 %v7305_v51  ;;  %v7395_v51 = vld [vmem:[#allocation7 + $0x1e8] ss:$16 sps:$4 sm:$0xff]  }
 0x12b   : > { %2239 = vmatpush2.bf16.msra.mxu1 %v7308_v53  ;;  %2199 = vmatprep.subr.bf16.mxu0 %v7313_v54  ;;  %v7398_v53 = vld [vmem:[#allocation7 + $0x3e8] ss:$16 sps:$4 sm:$0xff]   ;;  %v7403_v54 = vld [vmem:[#allocation7 + $0x1cc] ss:$16 sps:$4 sm:$0xff]  }
 0x12c   : > { %2240 = vmatprep.subr.bf16.mxu1 %v7316_v55  ;;  %v7406_v55 = vld [vmem:[#allocation7 + $0x3cc] ss:$16 sps:$4 sm:$0xff]  }
 0x12e   : > { %2200 = vmatpush2.bf16.msra.mxu0 %v7311_v56  ;;  %v7401_v56 = vld [vmem:[#allocation7 + $0x1c8] ss:$16 sps:$4 sm:$0xff]  }
 0x12f   : > { %2241 = vmatpush2.bf16.msra.mxu1 %v7314_v57  ;;  %2201 = vmatprep.subr.bf16.mxu0 %v7319_v58  ;;  %v7404_v57 = vld [vmem:[#allocation7 + $0x3c8] ss:$16 sps:$4 sm:$0xff]   ;;  %v7409_v58 = vld [vmem:[#allocation7 + $0x1ac] ss:$16 sps:$4 sm:$0xff]  }
 0x130   : > { %2242 = vmatprep.subr.bf16.mxu1 %v7322_v59  ;;  %v7412_v59 = vld [vmem:[#allocation7 + $0x3ac] ss:$16 sps:$4 sm:$0xff]  }
 0x132   : > { %2202 = vmatpush2.bf16.msra.mxu0 %v7317_v60  ;;  %v7407_v60 = vld [vmem:[#allocation7 + $0x1a8] ss:$16 sps:$4 sm:$0xff]  }
 0x133   : > { %2243 = vmatpush2.bf16.msra.mxu1 %v7320_v61  ;;  %2203 = vmatprep.subr.bf16.mxu0 %v7325_v62  ;;  %v7410_v61 = vld [vmem:[#allocation7 + $0x3a8] ss:$16 sps:$4 sm:$0xff]   ;;  %v7415_v62 = vld [vmem:[#allocation7 + $0x18c] ss:$16 sps:$4 sm:$0xff]  }
 0x134   : > { %2244 = vmatprep.subr.bf16.mxu1 %v7328_v63  ;;  %v7418_v63 = vld [vmem:[#allocation7 + $0x38c] ss:$16 sps:$4 sm:$0xff]  }
 0x136   : > { %2204 = vmatpush2.bf16.msra.mxu0 %v7323_v0  ;;  %v7413_v0 = vld [vmem:[#allocation7 + $0x188] ss:$16 sps:$4 sm:$0xff]  }
 0x137   : > { %2245 = vmatpush2.bf16.msra.mxu1 %v7326_v1  ;;  %2205 = vmatprep.subr.bf16.mxu0 %v7331_v2  ;;  %v7416_v1 = vld [vmem:[#allocation7 + $0x388] ss:$16 sps:$4 sm:$0xff]   ;;  %v7421_v2 = vld [vmem:[#allocation7 + $0x16c] ss:$16 sps:$4 sm:$0xff]  }
 0x138   : > { %2246 = vmatprep.subr.bf16.mxu1 %v7334_v3  ;;  %v7424_v3 = vld [vmem:[#allocation7 + $0x36c] ss:$16 sps:$4 sm:$0xff]  }
 0x13a   : > { %2206 = vmatpush2.bf16.msra.mxu0 %v7329_v4  ;;  %v7419_v4 = vld [vmem:[#allocation7 + $0x168] ss:$16 sps:$4 sm:$0xff]  }
 0x13b   : > { %2247 = vmatpush2.bf16.msra.mxu1 %v7332_v5  ;;  %2207 = vmatprep.subr.bf16.mxu0 %v7337_v6  ;;  %v7422_v5 = vld [vmem:[#allocation7 + $0x368] ss:$16 sps:$4 sm:$0xff]   ;;  %v7427_v6 = vld [vmem:[#allocation7 + $0x14c] ss:$16 sps:$4 sm:$0xff]  }
 0x13c   : > { %2248 = vmatprep.subr.bf16.mxu1 %v7340_v7  ;;  %v7430_v7 = vld [vmem:[#allocation7 + $0x34c] ss:$16 sps:$4 sm:$0xff]  }
 0x13e   : > { %2208 = vmatpush2.bf16.msra.mxu0 %v7335_v10  ;;  %v7425_v10 = vld [vmem:[#allocation7 + $0x148] ss:$16 sps:$4 sm:$0xff]  }
 0x13f   : > { %2249 = vmatpush2.bf16.msra.mxu1 %v7338_v11  ;;  %2209 = vmatprep.subr.bf16.mxu0 %v7343_v12  ;;  %v7428_v11 = vld [vmem:[#allocation7 + $0x348] ss:$16 sps:$4 sm:$0xff]   ;;  %v7433_v12 = vld [vmem:[#allocation7 + $0x12c] ss:$16 sps:$4 sm:$0xff]  }
 0x140   : > { %2250 = vmatprep.subr.bf16.mxu1 %v7346_v13  ;;  %v7436_v13 = vld [vmem:[#allocation7 + $0x32c] ss:$16 sps:$4 sm:$0xff]  }
 0x142   : > { %2210 = vmatpush2.bf16.msra.mxu0 %v7341_v14  ;;  %v7431_v14 = vld [vmem:[#allocation7 + $0x128] ss:$16 sps:$4 sm:$0xff]  }
 0x143   : > { %2251 = vmatpush2.bf16.msra.mxu1 %v7344_v15  ;;  %2261 = vmatprep.subr.bf16.mxu0 %v7349_v16  ;;  %v7434_v15 = vld [vmem:[#allocation7 + $0x328] ss:$16 sps:$4 sm:$0xff]   ;;  %v7439_v16 = vld [vmem:[#allocation7 + $0x10c] ss:$16 sps:$4 sm:$0xff]  }
 0x144   : > { %2302 = vmatprep.subr.bf16.mxu1 %v7352_v17  ;;  %v7442_v17 = vld [vmem:[#allocation7 + $0x30c] ss:$16 sps:$4 sm:$0xff]  }
 0x145   : > { %2212 = vmatmul.mubr.bf16.vlgmr.msra.gmra.mxu0 %v8522_v8 }
 0x146   : > { %2253 = vmatmul.mubr.bf16.vlgmr.msra.gmra.mxu1 %v8524_v9  ;;  %2262 = vmatpush1.bf16.msra.mxu0 %v7347_v18  ;;  %v7437_v18 = vld [vmem:[#allocation7 + $0x108] ss:$16 sps:$4 sm:$0xff]  }
 0x147   : > { %2303 = vmatpush1.bf16.msra.mxu1 %v7350_v19  ;;  %2263 = vmatprep.subr.bf16.mxu0 %v7355_v20  ;;  %v7440_v19 = vld [vmem:[#allocation7 + $0x308] ss:$16 sps:$4 sm:$0xff]   ;;  %v7445_v20 = vld [vmem:[#allocation8 + $0xe4] ss:$16 sps:$4 sm:$0xff]  }
 0x148   : > { %2304 = vmatprep.subr.bf16.mxu1 %v7358_v21  ;;  %2293 = vmatprep.mubr.bf16.mxu0 %v8513_v49  ;;  %v7443_v21 = vld [vmem:[#allocation8 + $0xe0] ss:$16 sps:$4 sm:$0xff]  }
 0x149   : > { %2334 = vmatprep.mubr.bf16.mxu1 %v8516_v52 }
 0x14a   : > { %2264 = vmatpush1.bf16.msra.mxu0 %v7353_v22  ;;  %v7448_v22 = vld [vmem:[#allocation8 + $0xc4] ss:$16 sps:$4 sm:$0xff]  }
 0x14b   : > { %2305 = vmatpush1.bf16.msra.mxu1 %v7356_v23  ;;  %2265 = vmatprep.subr.bf16.mxu0 %v7361_v24 }
 0x14c   : > { %2306 = vmatprep.subr.bf16.mxu1 %v7364_v25  ;;  %v7446_v25 = vld [vmem:[#allocation8 + $0xc0] ss:$16 sps:$4 sm:$0xff]  }
 0x14e   : > { %2266 = vmatpush1.bf16.msra.mxu0 %v7359_v26 }
 0x14f   : > { %2307 = vmatpush1.bf16.msra.mxu1 %v7362_v27  ;;  %2267 = vmatprep.subr.bf16.mxu0 %v7367_v28  ;;  %v7451_v27 = vld [vmem:[#allocation8 + $0xa4] ss:$16 sps:$4 sm:$0xff]  }
 0x150   : > { %2308 = vmatprep.subr.bf16.mxu1 %v7370_v29 }
 0x152   : > { %2268 = vmatpush1.bf16.msra.mxu0 %v7365_v30 }
 0x153   : > { %2309 = vmatpush1.bf16.msra.mxu1 %v7368_v31  ;;  %2269 = vmatprep.subr.bf16.mxu0 %v7373_v32 }
 0x154   : > { %2310 = vmatprep.subr.bf16.mxu1 %v7376_v33 }
 0x156   : > { %2270 = vmatpush1.bf16.msra.mxu0 %v7371_v34 }
 0x157   : > { %2311 = vmatpush1.bf16.msra.mxu1 %v7374_v35  ;;  %2271 = vmatprep.subr.bf16.mxu0 %v7379_v36  ;;  %v7449_v35 = vld [vmem:[#allocation8 + $0xa0] ss:$16 sps:$4 sm:$0xff]  }
 0x158   : > { %2312 = vmatprep.subr.bf16.mxu1 %v7382_v37 }
 0x15a   : > { %2272 = vmatpush1.bf16.msra.mxu0 %v7377_v38  ;;  %v7454_v38 = vld [vmem:[#allocation8 + $0x84] ss:$16 sps:$4 sm:$0xff]  }
 0x15b   : > { %2313 = vmatpush1.bf16.msra.mxu1 %v7380_v39  ;;  %2273 = vmatprep.subr.bf16.mxu0 %v7385_v40  ;;  %v7452_v39 = vld [vmem:[#allocation8 + $0x80] ss:$16 sps:$4 sm:$0xff]   ;;  %v7457_v40 = vld [vmem:[#allocation8 + $0x64] ss:$16 sps:$4 sm:$0xff]  }
 0x15c   : > { %2314 = vmatprep.subr.bf16.mxu1 %v7388_v41  ;;  %v7455_v41 = vld [vmem:[#allocation8 + $0x60] ss:$16 sps:$4 sm:$0xff]  }
 0x15e   : > { %2274 = vmatpush1.bf16.msra.mxu0 %v7383_v42  ;;  %v7493_v42 = vld [vmem:[#allocation8 + $0x2e4] ss:$16 sps:$4 sm:$0xff]  }
 0x15f   : > { %2315 = vmatpush1.bf16.msra.mxu1 %v7386_v43  ;;  %2275 = vmatprep.subr.bf16.mxu0 %v7391_v44  ;;  %v7460_v43 = vld [vmem:[#allocation8 + $0x44] ss:$16 sps:$4 sm:$0xff]   ;;  %v7491_v44 = vld [vmem:[#allocation8 + $0x2e0] ss:$16 sps:$4 sm:$0xff]  }
 0x160   : > { %2316 = vmatprep.subr.bf16.mxu1 %v7394_v45  ;;  %v7458_v45 = vld [vmem:[#allocation8 + $0x40] ss:$16 sps:$4 sm:$0xff]  }
 0x162   : > { %2276 = vmatpush1.bf16.msra.mxu0 %v7389_v46  ;;  %v7497_v46 = vld [vmem:[#allocation8 + $0x2c0] ss:$16 sps:$4 sm:$0xff]  }
 0x163   : > { %2317 = vmatpush1.bf16.msra.mxu1 %v7392_v47  ;;  %2277 = vmatprep.subr.bf16.mxu0 %v7397_v48  ;;  %v7499_v47 = vld [vmem:[#allocation8 + $0x2c4] ss:$16 sps:$4 sm:$0xff]  }
 0x164   : > { %2318 = vmatprep.subr.bf16.mxu1 %v7400_v50  ;;  %v7463_v48 = vld [vmem:[#allocation8 + $0x24] ss:$16 sps:$4 sm:$0xff]   ;;  %v7461_v50 = vld [vmem:[#allocation8 + $0x20] ss:$16 sps:$4 sm:$0xff]  }
 0x166   : > { %2278 = vmatpush2.bf16.msra.mxu0 %v7395_v51  ;;  %v7503_v51 = vld [vmem:[#allocation8 + $0x2a0] ss:$16 sps:$4 sm:$0xff]  }
 0x167   : > { %2319 = vmatpush2.bf16.msra.mxu1 %v7398_v53  ;;  %2279 = vmatprep.subr.bf16.mxu0 %v7403_v54  ;;  %v7505_v53 = vld [vmem:[#allocation8 + $0x2a4] ss:$16 sps:$4 sm:$0xff]  }
 0x168   : > { %2320 = vmatprep.subr.bf16.mxu1 %v7406_v55  ;;  %v7466_v54 = vld [vmem:[#allocation8 + $0x4] ss:$16 sps:$4 sm:$0xff]   ;;  %v7464_v55 = vld [vmem:[#allocation8] ss:$16 sps:$4 sm:$0xff]  }
 0x16a   : > { %2280 = vmatpush2.bf16.msra.mxu0 %v7401_v56  ;;  %v7509_v56 = vld [vmem:[#allocation8 + $0x280] ss:$16 sps:$4 sm:$0xff]  }
 0x16b   : > { %2321 = vmatpush2.bf16.msra.mxu1 %v7404_v57  ;;  %2281 = vmatprep.subr.bf16.mxu0 %v7409_v58  ;;  %v7511_v57 = vld [vmem:[#allocation8 + $0x284] ss:$16 sps:$4 sm:$0xff]  }
 0x16c   : > { %2322 = vmatprep.subr.bf16.mxu1 %v7412_v59  ;;  %v7469_v58 = vld [vmem:[#allocation8 + $0x1e4] ss:$16 sps:$4 sm:$0xff]   ;;  %v7467_v59 = vld [vmem:[#allocation8 + $0x1e0] ss:$16 sps:$4 sm:$0xff]  }
 0x16e   : > { %2282 = vmatpush2.bf16.msra.mxu0 %v7407_v60  ;;  %v7515_v60 = vld [vmem:[#allocation8 + $0x260] ss:$16 sps:$4 sm:$0xff]  }
 0x16f   : > { %2323 = vmatpush2.bf16.msra.mxu1 %v7410_v61  ;;  %2283 = vmatprep.subr.bf16.mxu0 %v7415_v62  ;;  %v7517_v61 = vld [vmem:[#allocation8 + $0x264] ss:$16 sps:$4 sm:$0xff]  }
 0x170   : > { %2324 = vmatprep.subr.bf16.mxu1 %v7418_v63  ;;  %v7472_v62 = vld [vmem:[#allocation8 + $0x1c4] ss:$16 sps:$4 sm:$0xff]   ;;  %v7470_v63 = vld [vmem:[#allocation8 + $0x1c0] ss:$16 sps:$4 sm:$0xff]  }
 0x172   : > { %2284 = vmatpush2.bf16.msra.mxu0 %v7413_v0  ;;  %v7521_v0 = vld [vmem:[#allocation8 + $0x240] ss:$16 sps:$4 sm:$0xff]  }
 0x173   : > { %2325 = vmatpush2.bf16.msra.mxu1 %v7416_v1  ;;  %2285 = vmatprep.subr.bf16.mxu0 %v7421_v2  ;;  %v7523_v1 = vld [vmem:[#allocation8 + $0x244] ss:$16 sps:$4 sm:$0xff]  }
 0x174   : > { %2326 = vmatprep.subr.bf16.mxu1 %v7424_v3  ;;  %v7475_v2 = vld [vmem:[#allocation8 + $0x1a4] ss:$16 sps:$4 sm:$0xff]   ;;  %v7473_v3 = vld [vmem:[#allocation8 + $0x1a0] ss:$16 sps:$4 sm:$0xff]  }
 0x176   : > { %2286 = vmatpush2.bf16.msra.mxu0 %v7419_v4  ;;  %v7527_v4 = vld [vmem:[#allocation8 + $0x220] ss:$16 sps:$4 sm:$0xff]  }
 0x177   : > { %2327 = vmatpush2.bf16.msra.mxu1 %v7422_v5  ;;  %2287 = vmatprep.subr.bf16.mxu0 %v7427_v6  ;;  %v7529_v5 = vld [vmem:[#allocation8 + $0x224] ss:$16 sps:$4 sm:$0xff]  }
 0x178   : > { %2328 = vmatprep.subr.bf16.mxu1 %v7430_v7  ;;  %v7478_v6 = vld [vmem:[#allocation8 + $0x184] ss:$16 sps:$4 sm:$0xff]   ;;  %v7476_v7 = vld [vmem:[#allocation8 + $0x180] ss:$16 sps:$4 sm:$0xff]  }
 0x17a   : > { %2288 = vmatpush2.bf16.msra.mxu0 %v7425_v10  ;;  %v7533_v10 = vld [vmem:[#allocation8 + $0x200] ss:$16 sps:$4 sm:$0xff]  }
 0x17b   : > { %2329 = vmatpush2.bf16.msra.mxu1 %v7428_v11  ;;  %2289 = vmatprep.subr.bf16.mxu0 %v7433_v12  ;;  %v7535_v11 = vld [vmem:[#allocation8 + $0x204] ss:$16 sps:$4 sm:$0xff]  }
 0x17c   : > { %2330 = vmatprep.subr.bf16.mxu1 %v7436_v13  ;;  %v7481_v12 = vld [vmem:[#allocation8 + $0x164] ss:$16 sps:$4 sm:$0xff]   ;;  %v7479_v13 = vld [vmem:[#allocation8 + $0x160] ss:$16 sps:$4 sm:$0xff]  }
 0x17e   : > { %2290 = vmatpush2.bf16.msra.mxu0 %v7431_v14  ;;  %v7539_v14 = vld [vmem:[#allocation8 + $0x3e0] ss:$16 sps:$4 sm:$0xff]  }
 0x17f   : > { %2331 = vmatpush2.bf16.msra.mxu1 %v7434_v15  ;;  %2291 = vmatprep.subr.bf16.mxu0 %v7439_v16  ;;  %v7541_v15 = vld [vmem:[#allocation8 + $0x3e4] ss:$16 sps:$4 sm:$0xff]  }
 0x180   : > { %2332 = vmatprep.subr.bf16.mxu1 %v7442_v17  ;;  %v7484_v16 = vld [vmem:[#allocation8 + $0x144] ss:$16 sps:$4 sm:$0xff]   ;;  %v7482_v17 = vld [vmem:[#allocation8 + $0x140] ss:$16 sps:$4 sm:$0xff]  }
 0x182   : > { %2292 = vmatpush2.bf16.msra.mxu0 %v7437_v18  ;;  %v7545_v18 = vld [vmem:[#allocation8 + $0x3c0] ss:$16 sps:$4 sm:$0xff]  }
 0x183   : > { %2333 = vmatpush2.bf16.msra.mxu1 %v7440_v19  ;;  %3509 = vmatprep.subr.bf16.mxu0 %v7445_v20  ;;  %v7547_v19 = vld [vmem:[#allocation8 + $0x3c4] ss:$16 sps:$4 sm:$0xff]  }
 0x184   : > { %3582 = vmatprep.subr.bf16.mxu1 %v7493_v42  ;;  %v7487_v20 = vld [vmem:[#allocation8 + $0x124] ss:$16 sps:$4 sm:$0xff]  }
 0x185   : > { %v1259_v23 = vpop.f32.mrf.mxu0  ;;  %2294 = vmatmul.mubr.bf16.vlgmr.msra.gmra.mxu0 %v8522_v8  ;;  %v7571_v42 = vld [vmem:[#allocation8 + $0x344] ss:$16 sps:$4 sm:$0xff]  }
 0x186   : > { %v1300_v24 = vpop.f32.mrf.mxu1  ;;  %2335 = vmatmul.mubr.bf16.vlgmr.msra.gmra.mxu1 %v8524_v9  ;;  %3510 = vmatpush1.bf16.msra.mxu0 %v7443_v21  ;;  %v7485_v21 = vld [vmem:[#allocation8 + $0x120] ss:$16 sps:$4 sm:$0xff]  }
 0x187   : > { %v8540_v26 = vadd.f32 %v1300_v24, %v1259_v23  ;;  %v1261_v28 = vpop.f32.mrf.mxu0  ;;  %3511 = vmatprep.subr.bf16.mxu0 %v7448_v22  ;;  %3583 = vmatpush1.bf16.msra.mxu1 %v7491_v44  ;;  %v7551_v22 = vld [vmem:[#allocation8 + $0x3a0] ss:$16 sps:$4 sm:$0xff]   ;;  %v7553_v23 = vld [vmem:[#allocation8 + $0x3a4] ss:$16 sps:$4 sm:$0xff]  }
 0x188   : > { %v1302_v29 = vpop.f32.mrf.mxu1  ;;  %3584 = vmatprep.subr.bf16.mxu1 %v7499_v47  ;;  %v7490_v24 = vld [vmem:[#allocation8 + $0x104] ss:$16 sps:$4 sm:$0xff]  }
 0x189   : > { %v8542_v30 = vadd.f32 %v1302_v29, %v1261_v28  ;;  %v1263_v31 = vpop.f32.mrf.mxu0  ;;  %v7559_v28 = vld [vmem:[#allocation8 + $0x384] ss:$16 sps:$4 sm:$0xff]   ;;  %v7496_v29 = vld [vmem:[#allocation8 + $0xec] ss:$16 sps:$4 sm:$0xff]  }
 0x18a   : > { %v1304_v32 = vpop.f32.mrf.mxu1  ;;  %3512 = vmatpush1.bf16.msra.mxu0 %v7446_v25  ;;  %v7488_v25 = vld [vmem:[#allocation8 + $0x100] ss:$16 sps:$4 sm:$0xff]   ;;  %v7583_v47 = vld [vmem:[#allocation8 + $0x304] ss:$16 sps:$4 sm:$0xff]  }
 0x18b   : > { %v2347_v33 = vcombine.low %v8540_v26, %v8542_v30  ;;  %v2348_v34 = vcombine.high %v8540_v26, %v8542_v30  ;;  %v1264_v36 = vpop.f32.mrf.mxu0  ;;  %3513 = vmatprep.subr.bf16.mxu0 %v7451_v27  ;;  %3585 = vmatpush1.bf16.msra.mxu1 %v7497_v46  ;;  %v7557_v27 = vld [vmem:[#allocation8 + $0x380] ss:$16 sps:$4 sm:$0xff]   ;;  %v7565_v32 = vld [vmem:[#allocation8 + $0x364] ss:$16 sps:$4 sm:$0xff]  }
 0x18c   : > { %v1305_v37 = vpop.f32.mrf.mxu1  ;;  %3586 = vmatprep.subr.bf16.mxu1 %v7505_v53  ;;  %v7563_v31 = vld [vmem:[#allocation8 + $0x360] ss:$16 sps:$4 sm:$0xff]   ;;  %v8263_v53 = vmov 1966171168  }
 0x18d   : > { %v7575_v46 = vld [vmem:[#allocation8 + $0x320] ss:$16 sps:$4 sm:$0xff]  }
 0x18e   : > { %3514 = vmatpush1.bf16.msra.mxu0 %v7449_v35 }
 0x18f   : > { %3515 = vmatprep.subr.bf16.mxu0 %v7454_v38  ;;  %3587 = vmatpush1.bf16.msra.mxu1 %v7503_v51  ;;  %v1519_v51 = vlaneseq }
 0x190   : > { %3588 = vmatprep.subr.bf16.mxu1 %v7511_v57 }
 0x191   : > { %v8548_v57 = vshrl.u32 %v1519_v51, 7 }
 0x192   : > { %3516 = vmatpush1.bf16.msra.mxu0 %v7452_v39 }
 0x193   : > { %3517 = vmatprep.subr.bf16.mxu0 %v7457_v40  ;;  %3589 = vmatpush1.bf16.msra.mxu1 %v7509_v56 }
 0x194   : > { %3590 = vmatprep.subr.bf16.mxu1 %v7517_v61 }
 0x196   : > { %3518 = vmatpush1.bf16.msra.mxu0 %v7455_v41  ;;  %v7569_v41 = vld [vmem:[#allocation8 + $0x340] ss:$16 sps:$4 sm:$0xff]  }
 0x197   : > { %3519 = vmatprep.subr.bf16.mxu0 %v7460_v43  ;;  %3591 = vmatpush1.bf16.msra.mxu1 %v7515_v60 }
 0x198   : > { %3592 = vmatprep.subr.bf16.mxu1 %v7523_v1 }
 0x19a   : > { %3520 = vmatpush1.bf16.msra.mxu0 %v7458_v45  ;;  %v7577_v45 = vld [vmem:[#allocation8 + $0x324] ss:$16 sps:$4 sm:$0xff]  }
 0x19b   : > { %3521 = vmatprep.subr.bf16.mxu0 %v7463_v48  ;;  %3593 = vmatpush1.bf16.msra.mxu1 %v7521_v0  ;;  %v7581_v48 = vld [vmem:[#allocation8 + $0x300] ss:$16 sps:$4 sm:$0xff]  }
 0x19c   : > { %3594 = vmatprep.subr.bf16.mxu1 %v7529_v5  ;;  %v8563_v5 = vsub.s32 0, %v8548_v57 }
 0x19e   : > { %3522 = vmatpush1.bf16.msra.mxu0 %v7461_v50  ;;  %v7589_v50 = vld [vmem:[#allocation8 + $0x2ec] ss:$16 sps:$4 sm:$0xff]  }
 0x19f   : > { %3523 = vmatprep.subr.bf16.mxu0 %v7466_v54  ;;  %3595 = vmatpush1.bf16.msra.mxu1 %v7527_v4  ;;  %v2352_v54 = vunpack.c.l.s4 %v8263_v53  ;;  %v8560_v4 = vld [vmem:[%s9083_s3] sm:$0xf] }
 0x1a0   : > { %3596 = vmatprep.subr.bf16.mxu1 %v7535_v11  ;;  %v1522_v26 = vrot.slane %v8560_v4, %v8563_v5 }
 0x1a2   : > { %3524 = vmatpush1.bf16.msra.mxu0 %v7464_v55 }
 0x1a3   : > { %3525 = vmatprep.subr.bf16.mxu0 %v7469_v58  ;;  %3597 = vmatpush1.bf16.msra.mxu1 %v7533_v10  ;;  %v2353_v58 = vunpack.c.0.s8 %v2352_v54 }
 0x1a4   : > { %3598 = vmatprep.subr.bf16.mxu1 %v7541_v15 }
 0x1a5   : > { %v2356_v60 = vsub.s32 %v2353_v58, %v8548_v57 }
 0x1a6   : > { %3526 = vmatpush2.bf16.msra.mxu0 %v7467_v59 }
 0x1a7   : > { %3527 = vmatprep.subr.bf16.mxu0 %v7472_v62  ;;  %3599 = vmatpush2.bf16.msra.mxu1 %v7539_v14 }
 0x1a8   : > { %3600 = vmatprep.subr.bf16.mxu1 %v7547_v19 }
 0x1aa   : > { %3528 = vmatpush2.bf16.msra.mxu0 %v7470_v63  ;;  %v2357_v63 = vrot.slane %v2347_v33, %v2356_v60  ;;  %v8568_v33 = vsub.s32 1, %v8548_v57 }
 0x1ab   : > { %3529 = vmatprep.subr.bf16.mxu0 %v7475_v2  ;;  %3601 = vmatpush2.bf16.msra.mxu1 %v7545_v18  ;;  %v2364_v2 = vrot.slane %v2348_v34, %v2356_v60 }
 0x1ac   : > { %3602 = vmatprep.subr.bf16.mxu1 %v7553_v23  ;;  %v1526_v34 = vrot.slane %v8560_v4, %v8568_v33 }
 0x1ae   : > { %3530 = vmatpush2.bf16.msra.mxu0 %v7473_v3 }
 0x1af   : > { %3531 = vmatprep.subr.bf16.mxu0 %v7478_v6  ;;  %3603 = vmatpush2.bf16.msra.mxu1 %v7551_v22 }
 0x1b0   : > { %3604 = vmatprep.subr.bf16.mxu1 %v7559_v28 }
 0x1b2   : > { %3532 = vmatpush2.bf16.msra.mxu0 %v7476_v7 }
 0x1b3   : > { %3533 = vmatprep.subr.bf16.mxu0 %v7481_v12  ;;  %3605 = vmatpush2.bf16.msra.mxu1 %v7557_v27 }
 0x1b4   : > { %3606 = vmatprep.subr.bf16.mxu1 %v7565_v32 }
 0x1b6   : > { %3534 = vmatpush2.bf16.msra.mxu0 %v7479_v13 }
 0x1b7   : > { %3535 = vmatprep.subr.bf16.mxu0 %v7484_v16  ;;  %3607 = vmatpush2.bf16.msra.mxu1 %v7563_v31 }
 0x1b8   : > { %3608 = vmatprep.subr.bf16.mxu1 %v7571_v42 }
 0x1ba   : > { %3536 = vmatpush2.bf16.msra.mxu0 %v7482_v17 }
 0x1bb   : > { %3537 = vmatprep.subr.bf16.mxu0 %v7487_v20  ;;  %3609 = vmatpush2.bf16.msra.mxu1 %v7569_v41 }
 0x1bc   : > { %3610 = vmatprep.subr.bf16.mxu1 %v7577_v45 }
 0x1be   : > { %3538 = vmatpush2.bf16.msra.mxu0 %v7485_v21 }
 0x1bf   : > { %3539 = vmatprep.subr.bf16.mxu0 %v7490_v24  ;;  %3611 = vmatpush2.bf16.msra.mxu1 %v7575_v46 }
 0x1c0   : > { %3612 = vmatprep.subr.bf16.mxu1 %v7583_v47 }
 0x1c2   : > { %3540 = vmatpush2.bf16.msra.mxu0 %v7488_v25 }
 0x1c3   : > { %3655 = vmatprep.subr.bf16.mxu0 %v7496_v29  ;;  %3613 = vmatpush2.bf16.msra.mxu1 %v7581_v48 }
 0x1c4   : > { %3728 = vmatprep.subr.bf16.mxu1 %v7589_v50 }
 0x1c5   : > { %v1341_v35 = vpop.f32.mrf.mxu0 }
 0x1c6   : > { %v1382_v36 = vpop.f32.mrf.mxu1 }
 0x1c7   : > { %v1343_v37 = vpop.f32.mrf.mxu0  ;;  %v1383_v55 = vadd.f32 %v1382_v36, %v1341_v35 }
 0x1c8   : > { %v1384_v38 = vpop.f32.mrf.mxu1 }
 0x1c9   : > { %v1345_v39 = vpop.f32.mrf.mxu0  ;;  %v1385_v56 = vadd.f32 %v1384_v38, %v1343_v37 }
 0x1ca   : > { %v1386_v40 = vpop.f32.mrf.mxu1 }
 0x1cb   : > { %v1346_v43 = vpop.f32.mrf.mxu0  ;;  %v2349_v59 = vcombine.low %v1383_v55, %v1385_v56  ;;  %v2350_v61 = vcombine.high %v1383_v55, %v1385_v56 }
 0x1cc   : > { %v1387_v44 = vpop.f32.mrf.mxu1 }
 0x1cd   : > { %v2371_v62 = vrot.slane %v2349_v59, %v2356_v60  ;;  %v2378_v0 = vrot.slane %v2350_v61, %v2356_v60 }
 0x1cf   : > { %v2379_v1 = vcombine.low %v2357_v63, %v2371_v62  ;;  %v2380_v3 = vcombine.high %v2357_v63, %v2371_v62  ;;  %v2381_v6 = vcombine.low %v2364_v2, %v2378_v0  ;;  %v2382_v10 = vcombine.high %v2364_v2, %v2378_v0  ;;  %v7494_v62 = vld [vmem:[#allocation8 + $0xe8] ss:$16 sps:$4 sm:$0xff]  }
 0x1d1   : > { %v8565_v7 = vrot.slane %v2379_v1, %v2356_v60  ;;  %v8572_v30 = vrot.slane %v2380_v3, %v2356_v60  ;;  %v8576_v11 = vrot.slane %v2381_v6, %v2356_v60  ;;  %v8582_v15 = vrot.slane %v2382_v10, %v2356_v60  ;;  %v7502_v6 = vld [vmem:[#allocation8 + $0xcc] ss:$16 sps:$4 sm:$0xff]  }
 0x1d3   : > { %v8580_v14 = vcombine.high %v8565_v7, %v8565_v7  ;;  %v8586_v19 = vcombine.high %v8572_v30, %v8572_v30  ;;  %v2418_v22 = vrot.slane %v8565_v7, %v8563_v5  ;;  %v2434_v23 = vrot.slane %v8572_v30, %v8563_v5 }
 0x1d4   : > { %v2422_v27 = vrot.slane %v8565_v7, %v8568_v33  ;;  %v2438_v28 = vrot.slane %v8572_v30, %v8568_v33  ;;  %v2486_v31 = vrot.slane %v8576_v11, %v8568_v33  ;;  %v2502_v37 = vrot.slane %v8582_v15, %v8568_v33 }
 0x1d5   : > { %v2450_v29 = vrot.slane %v8580_v14, %v8563_v5  ;;  %v2454_v40 = vrot.slane %v8580_v14, %v8568_v33  ;;  %v2470_v41 = vrot.slane %v8586_v19, %v8568_v33  ;;  %v2466_v42 = vrot.slane %v8586_v19, %v8563_v5 }
 0x1d6   : > { %v2482_v0 = vrot.slane %v8576_v11, %v8563_v5  ;;  %v8626_v1 = vcombine.high %v8576_v11, %v8576_v11 }
 0x205   : > { %v2213_v12 = vpop.f32.mrf.mxu0 }
 0x206   : > { %v2254_v13 = vpop.f32.mrf.mxu1  ;;  %v2214_v16 = vadd.f32 %v2213_v12, %v1522_v26  ;;  %v8633_v26 = vcombine.high %v8582_v15, %v8582_v15 }
 0x207   : > { %v2215_v17 = vpop.f32.mrf.mxu0 }
 0x208   : > { %v2256_v18 = vpop.f32.mrf.mxu1  ;;  %v8588_v20 = vadd.f32 %v2254_v13, %v2214_v16  ;;  %v2216_v21 = vadd.f32 %v2215_v17, %v1526_v34 }
 0x209   : > { %v2217_v24 = vpop.f32.mrf.mxu0 }
 0x20a   : > { %v2258_v25 = vpop.f32.mrf.mxu1  ;;  %v8602_v32 = vadd.f32 %v2256_v18, %v2216_v21  ;;  %v2575_v35 = vadd.f32 %v2418_v22, %v8588_v20  ;;  %v2579_v36 = vadd.f32 %v2434_v23, %v8588_v20  ;;  %v2583_v43 = vadd.f32 %v2450_v29, %v8588_v20  ;;  %v7500_v18 = vld [vmem:[#allocation8 + $0xc8] ss:$16 sps:$4 sm:$0xff]   ;;  %v7508_v24 = vld [vmem:[#allocation8 + $0xac] ss:$16 sps:$4 sm:$0xff]  }
 0x20b   : > { %v2218_v38 = vpop.f32.mrf.mxu0  ;;  %v2587_v56 = vadd.f32 %v2466_v42, %v8588_v20  ;;  %v2498_v21 = vrot.slane %v8582_v15, %v8563_v5  ;;  %v2518_v25 = vrot.slane %v8626_v1, %v8568_v33  ;;  %v7514_v42 = vld [vmem:[#allocation8 + $0x8c] ss:$16 sps:$4 sm:$0xff]  }
 0x20c   : > { %v2259_v39 = vpop.f32.mrf.mxu1  ;;  %v2576_v44 = vadd.f32 %v2422_v27, %v8602_v32  ;;  %v2580_v45 = vadd.f32 %v2438_v28, %v8602_v32  ;;  %vm2607_vm0 = vcmp.gt.f32.partialorder %v2575_v35, 0.0  ;;  %vm2611_vm1 = vcmp.gt.f32.partialorder %v2579_v36, 0.0 }
 0x20d   : > { %v2639_v46 = vmul.f32 0.2, %v2575_v35  ;;  %v2643_v47 = vmul.f32 0.2, %v2579_v36  ;;  %v2584_v48 = vadd.f32 %v2454_v40, %v8602_v32  ;;  %v2588_v50 = vadd.f32 %v2470_v41, %v8602_v32  ;;  %v7506_v40 = vld [vmem:[#allocation8 + $0xa8] ss:$16 sps:$4 sm:$0xff]  }
 0x20e   : > { %vm2608_vm2 = vcmp.gt.f32.partialorder %v2576_v44, 0.0  ;;  %vm2612_vm3 = vcmp.gt.f32.partialorder %v2580_v45, 0.0  ;;  %v2640_v51 = vmul.f32 0.2, %v2576_v44  ;;  %v2644_v53 = vmul.f32 0.2, %v2580_v45 }
 0x20f   : > { %v2671_v54 = vsel %vm2607_vm0, %v2575_v35, %v2639_v46  ;;  %v2675_v55 = vsel %vm2611_vm1, %v2579_v36, %v2643_v47  ;;  %vm2616_vm4 = vcmp.gt.f32.partialorder %v2584_v48, 0.0  ;;  %vm2620_vm5 = vcmp.gt.f32.partialorder %v2588_v50, 0.0 }
 0x210   : > { %v2672_v58 = vsel %vm2608_vm2, %v2576_v44, %v2640_v51  ;;  %v2676_v59 = vsel %vm2612_vm3, %v2580_v45, %v2644_v53  ;;  %v2648_v60 = vmul.f32 0.2, %v2584_v48  ;;  %v2652_v63 = vmul.f32 0.2, %v2588_v50  ;;  %v7520_v51 = vld [vmem:[#allocation8 + $0x6c] ss:$16 sps:$4 sm:$0xff]  }
 0x211   : > { %v8620_v61 = vpack.c.bf16 %v2676_v59, %v2672_v58  ;;  %v8628_v2 = vpack.c.bf16 %v2675_v55, %v2671_v54  ;;  %v2592_v10 = vadd.f32 %v2486_v31, %v8602_v32  ;;  %v2647_v12 = vmul.f32 0.2, %v2583_v43 }
 0x212   : > { %v2680_v3 = vsel %vm2616_vm4, %v2584_v48, %v2648_v60  ;;  %v2684_v34 = vsel %vm2620_vm5, %v2588_v50, %v2652_v63  ;;  %v2651_v13 = vmul.f32 0.2, %v2587_v56  ;;  %v2596_v16 = vadd.f32 %v2502_v37, %v8602_v32  ;;  %v7518_v60 = vld [vmem:[#allocation8 + $0x68] ss:$16 sps:$4 sm:$0xff]   ;;  %v7526_v63 = vld [vmem:[#allocation8 + $0x4c] ss:$16 sps:$4 sm:$0xff]  }
 0x213   : > { %3541 = vmatprep.mubr.bf16.mxu0 %v8620_v61  ;;  %v8638_v17 = vpack.c.bf16 %v2684_v34, %v2680_v3  ;;  %vm2615_vm6 = vcmp.gt.f32.partialorder %v2583_v43, 0.0  ;;  %vm2619_vm7 = vcmp.gt.f32.partialorder %v2587_v56, 0.0  ;;  %vm2624_vm8 = vcmp.gt.f32.partialorder %v2592_v10, 0.0 }
 0x214   : > { %3542 = vmatmul.mubr.bf16.vlgmr.msra.gmra.mxu0 %v8628_v2  ;;  %vm2628_vm9 = vcmp.gt.f32.partialorder %v2596_v16, 0.0  ;;  %v2656_v22 = vmul.f32 0.2, %v2592_v10  ;;  %v2660_v23 = vmul.f32 0.2, %v2596_v16  ;;  %v2534_v27 = vrot.slane %v8633_v26, %v8568_v33 }
 0x215   : > { %3656 = vmatpush1.bf16.msra.mxu0 %v7494_v62  ;;  %3551 = vmatprep.mubr.bf16.mxu0 %v8638_v17  ;;  %v2679_v28 = vsel %vm2615_vm6, %v2583_v43, %v2647_v12  ;;  %v2683_v29 = vsel %vm2619_vm7, %v2587_v56, %v2651_v13  ;;  %v2591_v31 = vadd.f32 %v2482_v0, %v8588_v20  ;;  %v7530_v13 = vld [vmem:[#allocation8 + $0x28] ss:$16 sps:$4 sm:$0xff]  }
 0x216   : > { %3657 = vmatprep.subr.bf16.mxu0 %v7502_v6  ;;  %v2595_v35 = vadd.f32 %v2498_v21, %v8588_v20  ;;  %v2688_v36 = vsel %vm2624_vm8, %v2592_v10, %v2656_v22  ;;  %v2692_v37 = vsel %vm2628_vm9, %v2596_v16, %v2660_v23  ;;  %v2600_v38 = vadd.f32 %v2518_v25, %v8602_v32  ;;  %v7532_v10 = vld [vmem:[#allocation8 + $0x2c] ss:$16 sps:$4 sm:$0xff]   ;;  %v7536_v21 = vld [vmem:[#allocation8 + $0x8] ss:$16 sps:$4 sm:$0xff]  }
 0x217   : > { %v2604_v39 = vadd.f32 %v2534_v27, %v8602_v32  ;;  %v8651_v41 = vpack.c.bf16 %v2683_v29, %v2679_v28  ;;  %v8653_v44 = vpack.c.bf16 %v2692_v37, %v2688_v36  ;;  %v2655_v43 = vmul.f32 0.2, %v2591_v31  ;;  %v7512_v32 = vld [vmem:[#allocation8 + $0x88] ss:$16 sps:$4 sm:$0xff]   ;;  %v7544_v22 = vld [vmem:[#allocation8 + $0x1ec] ss:$16 sps:$4 sm:$0xff]  }
 0x218   : > { %v2659_v45 = vmul.f32 0.2, %v2595_v35  ;;  %vm2623_vm10 = vcmp.gt.f32.partialorder %v2591_v31, 0.0  ;;  %vm2627_vm11 = vcmp.gt.f32.partialorder %v2595_v35, 0.0  ;;  %v2664_v46 = vmul.f32 0.2, %v2600_v38 }
 0x219   : > { %3658 = vmatpush1.bf16.msra.mxu0 %v7500_v18  ;;  %v2668_v47 = vmul.f32 0.2, %v2604_v39  ;;  %vm2632_vm12 = vcmp.gt.f32.partialorder %v2600_v38, 0.0  ;;  %vm2636_vm13 = vcmp.gt.f32.partialorder %v2604_v39, 0.0  ;;  %v2514_v48 = vrot.slane %v8626_v1, %v8563_v5  ;;  %v7538_v18 = vld [vmem:[#allocation8 + $0xc] ss:$16 sps:$4 sm:$0xff]  }
 0x21a   : > { %3659 = vmatprep.subr.bf16.mxu0 %v7508_v24  ;;  %v2530_v50 = vrot.slane %v8633_v26, %v8563_v5  ;;  %v2687_v53 = vsel %vm2623_vm10, %v2591_v31, %v2655_v43  ;;  %v2691_v54 = vsel %vm2627_vm11, %v2595_v35, %v2659_v45  ;;  %v2696_v58 = vsel %vm2632_vm12, %v2600_v38, %v2664_v46  ;;  %v7542_v23 = vld [vmem:[#allocation8 + $0x1e8] ss:$16 sps:$4 sm:$0xff]   ;;  %v7550_v24 = vld [vmem:[#allocation8 + $0x1cc] ss:$16 sps:$4 sm:$0xff]  }
 0x21b   : > { %v2599_v55 = vadd.f32 %v2514_v48, %v8588_v20  ;;  %v2700_v59 = vsel %vm2636_vm13, %v2604_v39, %v2668_v47  ;;  %v8663_v62 = vpack.c.bf16 %v2691_v54, %v2687_v53  ;;  %v7548_v25 = vld [vmem:[#allocation8 + $0x1c8] ss:$16 sps:$4 sm:$0xff]   ;;  %v7556_v27 = vld [vmem:[#allocation8 + $0x1ac] ss:$16 sps:$4 sm:$0xff]   ;;  %v8677_v36 = vsub.s32 3, %v8548_v57 }
 0x21c   : > { %3552 = vmatmul.mubr.bf16.gmra.mxu0 %v8651_v41  ;;  %v2603_v56 = vadd.f32 %v2530_v50, %v8588_v20  ;;  %v8665_v0 = vpack.c.bf16 %v2700_v59, %v2696_v58  ;;  %v7524_v20 = vld [vmem:[#allocation8 + $0x48] ss:$16 sps:$4 sm:$0xff]   ;;  %v7562_v29 = vld [vmem:[#allocation8 + $0x18c] ss:$16 sps:$4 sm:$0xff]  }
 0x21d   : > { %3660 = vmatpush1.bf16.msra.mxu0 %v7506_v40  ;;  %3561 = vmatprep.mubr.bf16.mxu0 %v8653_v44  ;;  %v2663_v3 = vmul.f32 0.2, %v2599_v55  ;;  %vm2631_vm14 = vcmp.gt.f32.partialorder %v2599_v55, 0.0  ;;  %v7554_v28 = vld [vmem:[#allocation8 + $0x1a8] ss:$16 sps:$4 sm:$0xff]   ;;  %v1534_v40 = vrot.slane %v8560_v4, %v8677_v36  ;;  %v2430_v46 = vrot.slane %v8565_v7, %v8677_v36 }
 0x21e   : > { %3661 = vmatprep.subr.bf16.mxu0 %v7514_v42  ;;  %v2667_v6 = vmul.f32 0.2, %v2603_v56  ;;  %vm2635_vm15 = vcmp.gt.f32.partialorder %v2603_v56, 0.0  ;;  %v7560_v31 = vld [vmem:[#allocation8 + $0x188] ss:$16 sps:$4 sm:$0xff]  }
 0x21f   : > { %v2695_v34 = vsel %vm2631_vm14, %v2599_v55, %v2663_v3  ;;  %v7568_v35 = vld [vmem:[#allocation8 + $0x16c] ss:$16 sps:$4 sm:$0xff]   ;;  %v7566_v37 = vld [vmem:[#allocation8 + $0x168] ss:$16 sps:$4 sm:$0xff]  }
 0x220   : > { %v2699_v12 = vsel %vm2635_vm15, %v2603_v56, %v2667_v6  ;;  %v7574_v39 = vld [vmem:[#allocation8 + $0x14c] ss:$16 sps:$4 sm:$0xff]   ;;  %v7572_v45 = vld [vmem:[#allocation8 + $0x148] ss:$16 sps:$4 sm:$0xff]   ;;  %v2494_v56 = vrot.slane %v8576_v11, %v8677_v36 }
 0x221   : > { %3662 = vmatpush1.bf16.msra.mxu0 %v7512_v32  ;;  %v8669_v16 = vpack.c.bf16 %v2699_v12, %v2695_v34  ;;  %v7580_v48 = vld [vmem:[#allocation8 + $0x12c] ss:$16 sps:$4 sm:$0xff]   ;;  %v7578_v6 = vld [vmem:[#allocation8 + $0x128] ss:$16 sps:$4 sm:$0xff]  }
 0x222   : > { %3663 = vmatprep.subr.bf16.mxu0 %v7520_v51  ;;  %v2478_v51 = vrot.slane %v8586_v19, %v8677_v36 }
 0x224   : > { %3562 = vmatmul.mubr.bf16.gmra.mxu0 %v8663_v62 }
 0x225   : > { %3664 = vmatpush1.bf16.msra.mxu0 %v7518_v60  ;;  %3571 = vmatprep.mubr.bf16.mxu0 %v8665_v0 }
 0x226   : > { %3665 = vmatprep.subr.bf16.mxu0 %v7526_v63 }
 0x229   : > { %3666 = vmatpush1.bf16.msra.mxu0 %v7524_v20  ;;  %v2542_v20 = vrot.slane %v8633_v26, %v8677_v36 }
 0x22a   : > { %3667 = vmatprep.subr.bf16.mxu0 %v7532_v10 }
 0x22c   : > { %3572 = vmatmul.mubr.bf16.gmra.mxu0 %v8669_v16 }
 0x22d   : > { %3668 = vmatpush1.bf16.msra.mxu0 %v7530_v13  ;;  %3687 = vmatprep.mubr.bf16.mxu0 %v8620_v61  ;;  %v8674_v61 = vsub.s32 2, %v8548_v57  ;;  %v2446_v57 = vrot.slane %v8572_v30, %v8677_v36 }
 0x22e   : > { %3669 = vmatprep.subr.bf16.mxu0 %v7538_v18 }
 0x22f   : > { %v1530_v38 = vrot.slane %v8560_v4, %v8674_v61  ;;  %v2426_v47 = vrot.slane %v8565_v7, %v8674_v61  ;;  %v2442_v50 = vrot.slane %v8572_v30, %v8674_v61  ;;  %v2462_v4 = vrot.slane %v8580_v14, %v8677_v36 }
 0x230   : > { %v2458_v55 = vrot.slane %v8580_v14, %v8674_v61  ;;  %v2474_v7 = vrot.slane %v8586_v19, %v8674_v61  ;;  %v2510_v30 = vrot.slane %v8582_v15, %v8677_v36  ;;  %v2490_v60 = vrot.slane %v8576_v11, %v8674_v61 }
 0x231   : > { %3670 = vmatpush1.bf16.msra.mxu0 %v7536_v21  ;;  %v2506_v63 = vrot.slane %v8582_v15, %v8674_v61  ;;  %v2526_v19 = vrot.slane %v8626_v1, %v8677_v36  ;;  %v2522_v10 = vrot.slane %v8626_v1, %v8674_v61  ;;  %v2538_v34 = vrot.slane %v8633_v26, %v8674_v61  ;;  %v7586_v15 = vld [vmem:[#allocation8 + $0x10c] ss:$16 sps:$4 sm:$0xff]  }
 0x232   : > { %3671 = vmatprep.subr.bf16.mxu0 %v7544_v22 }
 0x235   : > { %3672 = vmatpush2.bf16.msra.mxu0 %v7542_v23 }
 0x236   : > { %3673 = vmatprep.subr.bf16.mxu0 %v7550_v24 }
 0x239   : > { %3674 = vmatpush2.bf16.msra.mxu0 %v7548_v25 }
 0x23a   : > { %3675 = vmatprep.subr.bf16.mxu0 %v7556_v27 }
 0x23d   : > { %3676 = vmatpush2.bf16.msra.mxu0 %v7554_v28 }
 0x23e   : > { %3677 = vmatprep.subr.bf16.mxu0 %v7562_v29 }
 0x241   : > { %3678 = vmatpush2.bf16.msra.mxu0 %v7560_v31  ;;  %v7584_v31 = vld [vmem:[#allocation8 + $0x108] ss:$16 sps:$4 sm:$0xff]  }
 0x242   : > { %3679 = vmatprep.subr.bf16.mxu0 %v7568_v35 }
 0x245   : > { %3680 = vmatpush2.bf16.msra.mxu0 %v7566_v37  ;;  %v2295_v42 = vpop.f32.mrf.mxu0 }
 0x246   : > { %v2336_v43 = vpop.f32.mrf.mxu1  ;;  %v2296_v32 = vadd.f32 %v2295_v42, %v1530_v38  ;;  %3681 = vmatprep.subr.bf16.mxu0 %v7574_v39 }
 0x247   : > { %v2297_v53 = vpop.f32.mrf.mxu0 }
 0x248   : > { %v2338_v54 = vpop.f32.mrf.mxu1  ;;  %v8703_v58 = vadd.f32 %v2336_v43, %v2296_v32  ;;  %v2298_v59 = vadd.f32 %v2297_v53, %v1534_v40  ;;  %v7592_v53 = vld [vmem:[#allocation8 + $0x2cc] ss:$16 sps:$4 sm:$0xff]  }
 0x249   : > { %3682 = vmatpush2.bf16.msra.mxu0 %v7572_v45  ;;  %v2299_v14 = vpop.f32.mrf.mxu0 }
 0x24a   : > { %v2340_v3 = vpop.f32.mrf.mxu1  ;;  %v8717_v11 = vadd.f32 %v2338_v54, %v2298_v59  ;;  %3683 = vmatprep.subr.bf16.mxu0 %v7580_v48  ;;  %v2577_v12 = vadd.f32 %v2426_v47, %v8703_v58  ;;  %v2581_v13 = vadd.f32 %v2442_v50, %v8703_v58  ;;  %v2585_v18 = vadd.f32 %v2458_v55, %v8703_v58  ;;  %v7587_v50 = vld [vmem:[#allocation8 + $0x2e8] ss:$16 sps:$4 sm:$0xff]  }
 0x24b   : > { %v2300_v21 = vpop.f32.mrf.mxu0  ;;  %v2589_v23 = vadd.f32 %v2474_v7, %v8703_v58  ;;  %v8724_v24 = vadd.f32 %v2490_v60, %v8703_v58  ;;  %v8727_v25 = vadd.f32 %v2506_v63, %v8703_v58  ;;  %v8730_v27 = vadd.f32 %v2522_v10, %v8703_v58  ;;  %v7590_v14 = vld [vmem:[#allocation8 + $0x2c8] ss:$16 sps:$4 sm:$0xff]  }
 0x24c   : > { %v2341_v22 = vpop.f32.mrf.mxu1  ;;  %v2578_v28 = vadd.f32 %v2430_v46, %v8717_v11  ;;  %v2582_v29 = vadd.f32 %v2446_v57, %v8717_v11  ;;  %vm2609_vm0 = vcmp.gt.f32.partialorder %v2577_v12, 0.0  ;;  %vm2613_vm1 = vcmp.gt.f32.partialorder %v2581_v13, 0.0 }
 0x24d   : > { %3684 = vmatpush2.bf16.msra.mxu0 %v7578_v6  ;;  %v2641_v35 = vmul.f32 0.2, %v2577_v12  ;;  %v2645_v37 = vmul.f32 0.2, %v2581_v13  ;;  %v2586_v38 = vadd.f32 %v2462_v4, %v8717_v11  ;;  %v2590_v39 = vadd.f32 %v2478_v51, %v8717_v11 }
 0x24e   : > { %3685 = vmatprep.subr.bf16.mxu0 %v7586_v15  ;;  %vm2610_vm2 = vcmp.gt.f32.partialorder %v2578_v28, 0.0  ;;  %vm2614_vm3 = vcmp.gt.f32.partialorder %v2582_v29, 0.0  ;;  %v2642_v40 = vmul.f32 0.2, %v2578_v28  ;;  %v2646_v42 = vmul.f32 0.2, %v2582_v29 }
 0x24f   : > { %v2673_v43 = vsel %vm2609_vm0, %v2577_v12, %v2641_v35  ;;  %v2677_v45 = vsel %vm2613_vm1, %v2581_v13, %v2645_v37  ;;  %vm2618_vm4 = vcmp.gt.f32.partialorder %v2586_v38, 0.0  ;;  %vm2622_vm5 = vcmp.gt.f32.partialorder %v2590_v39, 0.0 }
 0x250   : > { %v2674_v46 = vsel %vm2610_vm2, %v2578_v28, %v2642_v40  ;;  %v2678_v57 = vsel %vm2614_vm3, %v2582_v29, %v2646_v42  ;;  %v8736_v47 = vpack.c.bf16 %v2677_v45, %v2673_v43  ;;  %v2650_v32 = vmul.f32 0.2, %v2586_v38  ;;  %v7598_v29 = vld [vmem:[#allocation8 + $0x28c] ss:$16 sps:$4 sm:$0xff]   ;;  %v7605_v43 = vld [vmem:[#allocation8 + $0x228] ss:$16 sps:$4 sm:$0xff]  }
 0x251   : > { %3686 = vmatpush2.bf16.msra.mxu0 %v7584_v31  ;;  %v8738_v48 = vpack.c.bf16 %v2678_v57, %v2674_v46  ;;  %v2654_v4 = vmul.f32 0.2, %v2590_v39  ;;  %vm2617_vm6 = vcmp.gt.f32.partialorder %v2585_v18, 0.0  ;;  %vm2621_vm7 = vcmp.gt.f32.partialorder %v2589_v23, 0.0  ;;  %v7601_v40 = vld [vmem:[#allocation8 + $0x26c] ss:$16 sps:$4 sm:$0xff]  }
 0x252   : > { %v2682_v51 = vsel %vm2618_vm4, %v2586_v38, %v2650_v32  ;;  %v2649_v54 = vmul.f32 0.2, %v2585_v18  ;;  %v2653_v55 = vmul.f32 0.2, %v2589_v23  ;;  %v2594_v7 = vadd.f32 %v2494_v56, %v8717_v11  ;;  %v7596_v38 = vld [vmem:[#allocation8 + $0x288] ss:$16 sps:$4 sm:$0xff]  }
 0x253   : > { %3614 = vmatprep.mubr.bf16.mxu1 %v8738_v48  ;;  %v2686_v59 = vsel %vm2622_vm5, %v2590_v39, %v2654_v4  ;;  %v2598_v60 = vadd.f32 %v2510_v30, %v8717_v11  ;;  %vm2625_vm8 = vcmp.gt.f32.partialorder %v8724_v24, 0.0  ;;  %vm2629_vm9 = vcmp.gt.f32.partialorder %v8727_v25, 0.0  ;;  %v7604_v42 = vld [vmem:[#allocation8 + $0x24c] ss:$16 sps:$4 sm:$0xff]   ;;  %v7611_v46 = vld [vmem:[#allocation8 + $0x3e8] ss:$16 sps:$4 sm:$0xff]  }
 0x254   : > { %3688 = vmatmul.mubr.bf16.vlgmr.msra.gmra.mxu0 %v8628_v2  ;;  %3615 = vmatmul.mubr.bf16.vlgmr.msra.gmra.mxu1 %v8736_v47  ;;  %v8748_v63 = vpack.c.bf16 %v2686_v59, %v2682_v51  ;;  %v2681_v3 = vsel %vm2617_vm6, %v2585_v18, %v2649_v54  ;;  %v2685_v56 = vsel %vm2621_vm7, %v2589_v23, %v2653_v55  ;;  %vm2626_vm10 = vcmp.gt.f32.partialorder %v2594_v7, 0.0  ;;  %v7595_v2 = vld [vmem:[#allocation8 + $0x2ac] ss:$16 sps:$4 sm:$0xff]   ;;  %v7593_v23 = vld [vmem:[#allocation8 + $0x2a8] ss:$16 sps:$4 sm:$0xff]  }
 0x255   : > { %3697 = vmatprep.mubr.bf16.mxu0 %v8638_v17  ;;  %3729 = vmatpush1.bf16.msra.mxu1 %v7587_v50  ;;  %v8753_v30 = vpack.c.bf16 %v2685_v56, %v2681_v3  ;;  %vm2630_vm11 = vcmp.gt.f32.partialorder %v2598_v60, 0.0  ;;  %v2658_v6 = vmul.f32 0.2, %v2594_v7  ;;  %v2662_v10 = vmul.f32 0.2, %v2598_v60 }
 0x256   : > { %3624 = vmatprep.mubr.bf16.mxu1 %v8748_v63  ;;  %3730 = vmatprep.subr.bf16.mxu1 %v7592_v53  ;;  %v2657_v15 = vmul.f32 0.2, %v8724_v24  ;;  %v2661_v12 = vmul.f32 0.2, %v8727_v25  ;;  %v2602_v13 = vadd.f32 %v2526_v19, %v8717_v11  ;;  %v2606_v17 = vadd.f32 %v2542_v20, %v8717_v11  ;;  %v7610_v45 = vld [vmem:[#allocation8 + $0x20c] ss:$16 sps:$4 sm:$0xff]  }
 0x257   : > { %v2690_v18 = vsel %vm2626_vm10, %v2594_v7, %v2658_v6  ;;  %v2694_v21 = vsel %vm2630_vm11, %v2598_v60, %v2662_v10  ;;  %v2605_v22 = vadd.f32 %v2538_v34, %v8703_v58  ;;  %vm2633_vm12 = vcmp.gt.f32.partialorder %v8730_v27, 0.0  ;;  %v7616_v57 = vld [vmem:[#allocation8 + $0x3cc] ss:$16 sps:$4 sm:$0xff]   ;;  %v7635_v32 = vld [vmem:[#allocation11 + $0xe0] ss:$16 sps:$4 sm:$0xff]  }
 0x258   : > { %v8771_v28 = vpack.c.bf16 %v2694_v21, %v2690_v18  ;;  %v2689_v1 = vsel %vm2625_vm8, %v8724_v24, %v2657_v15  ;;  %v2693_v19 = vsel %vm2629_vm9, %v8727_v25, %v2661_v12  ;;  %vm2634_vm13 = vcmp.gt.f32.partialorder %v2602_v13, 0.0  ;;  %v7637_v50 = vld [vmem:[#allocation11 + $0xe4] ss:$16 sps:$4 sm:$0xff]   ;;  %v7614_v51 = vld [vmem:[#allocation8 + $0x3c8] ss:$16 sps:$4 sm:$0xff]  }
 0x259   : > { %3731 = vmatpush1.bf16.msra.mxu1 %v7590_v14  ;;  %v8779_v20 = vpack.c.bf16 %v2693_v19, %v2689_v1  ;;  %vm2638_vm14 = vcmp.gt.f32.partialorder %v2606_v17, 0.0  ;;  %v2666_v26 = vmul.f32 0.2, %v2602_v13  ;;  %v2670_v58 = vmul.f32 0.2, %v2606_v17  ;;  %5124 = vmatprep.subr.bf16.mxu0 %v7637_v50 }
 0x25a   : > { %3732 = vmatprep.subr.bf16.mxu1 %v7595_v2  ;;  %vm2637_vm15 = vcmp.gt.f32.partialorder %v2605_v22, 0.0  ;;  %v2665_v34 = vmul.f32 0.2, %v8730_v27  ;;  %v2669_v11 = vmul.f32 0.2, %v2605_v22  ;;  %5125 = vmatpush1.bf16.msra.mxu0 %v7635_v32 }
 0x25b   : > { %v2698_v31 = vsel %vm2634_vm13, %v2602_v13, %v2666_v26  ;;  %v2702_v35 = vsel %vm2638_vm14, %v2606_v17, %v2670_v58  ;;  %v7640_v4 = vld [vmem:[#allocation11 + $0xc4] ss:$16 sps:$4 sm:$0xff]   ;;  %v7638_v53 = vld [vmem:[#allocation11 + $0xc0] ss:$16 sps:$4 sm:$0xff]   ;;  %v7622_v54 = vld [vmem:[#allocation8 + $0x38c] ss:$16 sps:$4 sm:$0xff]  }
 0x25c   : > { %3698 = vmatmul.mubr.bf16.gmra.mxu0 %v8651_v41  ;;  %3625 = vmatmul.mubr.bf16.gmra.mxu1 %v8753_v30  ;;  %v8784_v24 = vpack.c.bf16 %v2702_v35, %v2698_v31  ;;  %v2697_v25 = vsel %vm2633_vm12, %v8730_v27, %v2665_v34  ;;  %v2701_v37 = vsel %vm2637_vm15, %v2605_v22, %v2669_v11  ;;  %v7599_v41 = vld [vmem:[#allocation8 + $0x268] ss:$16 sps:$4 sm:$0xff]   ;;  %v7607_v27 = vld [vmem:[#allocation8 + $0x22c] ss:$16 sps:$4 sm:$0xff]   ;;  %v7641_v2 = vld [vmem:[#allocation11 + $0xa0] ss:$16 sps:$4 sm:$0xff]  }
 0x25d   : > { %3707 = vmatprep.mubr.bf16.mxu0 %v8653_v44  ;;  %3733 = vmatpush1.bf16.msra.mxu1 %v7593_v23  ;;  %v8790_v39 = vpack.c.bf16 %v2701_v37, %v2697_v25  ;;  %v7602_v44 = vld [vmem:[#allocation8 + $0x248] ss:$16 sps:$4 sm:$0xff]   ;;  %v7625_v7 = vld [vmem:[#allocation8 + $0x36c] ss:$16 sps:$4 sm:$0xff]   ;;  %v7643_v15 = vld [vmem:[#allocation11 + $0xa4] ss:$16 sps:$4 sm:$0xff]  }
 0x25e   : > { %3634 = vmatprep.mubr.bf16.mxu1 %v8771_v28  ;;  %3734 = vmatprep.subr.bf16.mxu1 %v7598_v29  ;;  %v7620_v55 = vld [vmem:[#allocation8 + $0x388] ss:$16 sps:$4 sm:$0xff]   ;;  %v7628_v60 = vld [vmem:[#allocation8 + $0x34c] ss:$16 sps:$4 sm:$0xff]   ;;  %v7646_v12 = vld [vmem:[#allocation11 + $0x84] ss:$16 sps:$4 sm:$0xff]  }
 0x25f   : > { %5126 = vmatprep.subr.bf16.mxu0 %v7640_v4  ;;  %v7623_v59 = vld [vmem:[#allocation8 + $0x368] ss:$16 sps:$4 sm:$0xff]   ;;  %v7631_v3 = vld [vmem:[#allocation8 + $0x32c] ss:$16 sps:$4 sm:$0xff]   ;;  %v7644_v13 = vld [vmem:[#allocation11 + $0x80] ss:$16 sps:$4 sm:$0xff]  }
 0x260   : > { %5127 = vmatpush1.bf16.msra.mxu0 %v7638_v53  ;;  %v7626_v14 = vld [vmem:[#allocation8 + $0x348] ss:$16 sps:$4 sm:$0xff]   ;;  %v7634_v6 = vld [vmem:[#allocation8 + $0x30c] ss:$16 sps:$4 sm:$0xff]   ;;  %v7649_v17 = vld [vmem:[#allocation11 + $0x64] ss:$16 sps:$4 sm:$0xff]  }
 0x261   : > { %3735 = vmatpush1.bf16.msra.mxu1 %v7596_v38  ;;  %v7629_v56 = vld [vmem:[#allocation8 + $0x328] ss:$16 sps:$4 sm:$0xff]   ;;  %5128 = vmatprep.subr.bf16.mxu0 %v7643_v15  ;;  %v7650_v18 = vld [vmem:[#allocation11 + $0x40] ss:$16 sps:$4 sm:$0xff]   ;;  %v7658_v22 = vld [vmem:[#allocation11 + $0x4] ss:$16 sps:$4 sm:$0xff]  }
 0x262   : > { %3736 = vmatprep.subr.bf16.mxu1 %v7601_v40  ;;  %v7632_v10 = vld [vmem:[#allocation8 + $0x308] ss:$16 sps:$4 sm:$0xff]   ;;  %v7653_v21 = vld [vmem:[#allocation11 + $0x20] ss:$16 sps:$4 sm:$0xff]   ;;  %v7664_v1 = vld [vmem:[#allocation11 + $0x1c4] ss:$16 sps:$4 sm:$0xff]  }
 0x263   : > { %v7656_v23 = vld [vmem:[#allocation11] ss:$16 sps:$4 sm:$0xff]   ;;  %v7670_v58 = vld [vmem:[#allocation11 + $0x184] ss:$16 sps:$4 sm:$0xff]   ;;  %vm4441_vm15 = vcmask 1041409  }
 0x264   : > { %3708 = vmatmul.mubr.bf16.gmra.mxu0 %v8663_v62  ;;  %3635 = vmatmul.mubr.bf16.gmra.mxu1 %v8779_v20  ;;  %v7608_v62 = vld [vmem:[#allocation8 + $0x208] ss:$16 sps:$4 sm:$0xff]   ;;  %v7659_v29 = vld [vmem:[#allocation11 + $0x1e0] ss:$16 sps:$4 sm:$0xff]   ;;  %v7673_v11 = vld [vmem:[#allocation11 + $0x164] ss:$16 sps:$4 sm:$0xff]  }
 0x265   : > { %3717 = vmatprep.mubr.bf16.mxu0 %v8665_v0  ;;  %3737 = vmatpush1.bf16.msra.mxu1 %v7599_v41  ;;  %v7613_v0 = vld [vmem:[#allocation8 + $0x3ec] ss:$16 sps:$4 sm:$0xff]   ;;  %v7662_v19 = vld [vmem:[#allocation11 + $0x1c0] ss:$16 sps:$4 sm:$0xff]   ;;  %v7676_v35 = vld [vmem:[#allocation11 + $0x144] ss:$16 sps:$4 sm:$0xff]  }
 0x266   : > { %3644 = vmatprep.mubr.bf16.mxu1 %v8784_v24  ;;  %3738 = vmatprep.subr.bf16.mxu1 %v7604_v42  ;;  %v7665_v26 = vld [vmem:[#allocation11 + $0x1a0] ss:$16 sps:$4 sm:$0xff]   ;;  %v7679_v25 = vld [vmem:[#allocation11 + $0x124] ss:$16 sps:$4 sm:$0xff]   ;;  %v7688_v42 = vld [vmem:[#allocation11 + $0xec] ss:$16 sps:$4 sm:$0xff]  }
 0x267   : > { %5129 = vmatpush1.bf16.msra.mxu0 %v7641_v2  ;;  %v7668_v34 = vld [vmem:[#allocation11 + $0x180] ss:$16 sps:$4 sm:$0xff]   ;;  %v7682_v38 = vld [vmem:[#allocation11 + $0x104] ss:$16 sps:$4 sm:$0xff]  }
 0x268   : > { %5130 = vmatprep.subr.bf16.mxu0 %v7646_v12  ;;  %v7671_v31 = vld [vmem:[#allocation11 + $0x160] ss:$16 sps:$4 sm:$0xff]   ;;  %v7685_v40 = vld [vmem:[#allocation11 + $0x2e4] ss:$16 sps:$4 sm:$0xff]  }
 0x269   : > { %3739 = vmatpush1.bf16.msra.mxu1 %v7602_v44  ;;  %v7677_v37 = vld [vmem:[#allocation11 + $0x120] ss:$16 sps:$4 sm:$0xff]   ;;  %v7715_v32 = vld [vmem:[#allocation11 + $0x244] ss:$16 sps:$4 sm:$0xff]  }
 0x26a   : > { %3740 = vmatprep.subr.bf16.mxu1 %v7607_v27  ;;  %v7680_v41 = vld [vmem:[#allocation11 + $0x100] ss:$16 sps:$4 sm:$0xff]   ;;  %v7691_v27 = vld [vmem:[#allocation11 + $0x2c4] ss:$16 sps:$4 sm:$0xff]  }
 0x26b   : > { %5131 = vmatpush1.bf16.msra.mxu0 %v7644_v13  ;;  %v7689_v44 = vld [vmem:[#allocation11 + $0x2c0] ss:$16 sps:$4 sm:$0xff]   ;;  %v7751_v15 = vld [vmem:[#allocation11 + $0x384] ss:$16 sps:$4 sm:$0xff]  }
 0x26c   : > { %3718 = vmatmul.mubr.bf16.gmra.mxu0 %v8669_v16  ;;  %3645 = vmatmul.mubr.bf16.gmra.mxu1 %v8790_v39  ;;  %v7619_v16 = vld [vmem:[#allocation8 + $0x3ac] ss:$16 sps:$4 sm:$0xff]   ;;  %v7713_v50 = vld [vmem:[#allocation11 + $0x240] ss:$16 sps:$4 sm:$0xff]  }
 0x26d   : > { %3741 = vmatpush1.bf16.msra.mxu1 %v7605_v43  ;;  %3760 = vmatprep.mubr.bf16.mxu1 %v8738_v48  ;;  %v7617_v48 = vld [vmem:[#allocation8 + $0x3a8] ss:$16 sps:$4 sm:$0xff]   ;;  %v7695_v43 = vld [vmem:[#allocation11 + $0x2a0] ss:$16 sps:$4 sm:$0xff]  }
 0x26e   : > { %3742 = vmatprep.subr.bf16.mxu1 %v7610_v45  ;;  %5132 = vmatprep.subr.bf16.mxu0 %v7649_v17  ;;  %v7697_v45 = vld [vmem:[#allocation11 + $0x2a4] ss:$16 sps:$4 sm:$0xff]   ;;  %v7749_v12 = vld [vmem:[#allocation11 + $0x380] ss:$16 sps:$4 sm:$0xff]  }
 0x26f   : > { %v7757_v17 = vld [vmem:[#allocation11 + $0x364] ss:$16 sps:$4 sm:$0xff]  }
 0x271   : > { %3743 = vmatpush1.bf16.msra.mxu1 %v7608_v62  ;;  %v7703_v62 = vld [vmem:[#allocation11 + $0x284] ss:$16 sps:$4 sm:$0xff]  }
 0x272   : > { %3744 = vmatprep.subr.bf16.mxu1 %v7613_v0  ;;  %v7701_v0 = vld [vmem:[#allocation11 + $0x280] ss:$16 sps:$4 sm:$0xff]  }
 0x275   : > { %3745 = vmatpush2.bf16.msra.mxu1 %v7611_v46  ;;  %v7709_v46 = vld [vmem:[#allocation11 + $0x264] ss:$16 sps:$4 sm:$0xff]  }
 0x276   : > { %3746 = vmatprep.subr.bf16.mxu1 %v7616_v57  ;;  %v7707_v57 = vld [vmem:[#allocation11 + $0x260] ss:$16 sps:$4 sm:$0xff]  }
 0x279   : > { %3747 = vmatpush2.bf16.msra.mxu1 %v7614_v51  ;;  %v7721_v51 = vld [vmem:[#allocation11 + $0x224] ss:$16 sps:$4 sm:$0xff]  }
 0x27a   : > { %3748 = vmatprep.subr.bf16.mxu1 %v7619_v16  ;;  %v7719_v16 = vld [vmem:[#allocation11 + $0x220] ss:$16 sps:$4 sm:$0xff]  }
 0x27d   : > { %3749 = vmatpush2.bf16.msra.mxu1 %v7617_v48  ;;  %v7727_v48 = vld [vmem:[#allocation11 + $0x204] ss:$16 sps:$4 sm:$0xff]  }
 0x27e   : > { %3750 = vmatprep.subr.bf16.mxu1 %v7622_v54  ;;  %v7725_v54 = vld [vmem:[#allocation11 + $0x200] ss:$16 sps:$4 sm:$0xff]  }
 0x281   : > { %3751 = vmatpush2.bf16.msra.mxu1 %v7620_v55 }
 0x282   : > { %3752 = vmatprep.subr.bf16.mxu1 %v7625_v7  ;;  %v7733_v7 = vld [vmem:[#allocation11 + $0x3e4] ss:$16 sps:$4 sm:$0xff]  }
 0x285   : > { %3753 = vmatpush2.bf16.msra.mxu1 %v7623_v59  ;;  %v7731_v59 = vld [vmem:[#allocation11 + $0x3e0] ss:$16 sps:$4 sm:$0xff]  }
 0x286   : > { %3754 = vmatprep.subr.bf16.mxu1 %v7628_v60 }
 0x289   : > { %3755 = vmatpush2.bf16.msra.mxu1 %v7626_v14  ;;  %v7739_v14 = vld [vmem:[#allocation11 + $0x3c4] ss:$16 sps:$4 sm:$0xff]  }
 0x28a   : > { %3756 = vmatprep.subr.bf16.mxu1 %v7631_v3  ;;  %v7737_v3 = vld [vmem:[#allocation11 + $0x3c0] ss:$16 sps:$4 sm:$0xff]  }
 0x28d   : > { %3757 = vmatpush2.bf16.msra.mxu1 %v7629_v56 }
 0x28e   : > { %3758 = vmatprep.subr.bf16.mxu1 %v7634_v6  ;;  %v7745_v6 = vld [vmem:[#allocation11 + $0x3a4] ss:$16 sps:$4 sm:$0xff]  }
 0x291   : > { %3759 = vmatpush2.bf16.msra.mxu1 %v7632_v10  ;;  %v7743_v10 = vld [vmem:[#allocation11 + $0x3a0] ss:$16 sps:$4 sm:$0xff]  }
 0x292   : > { %5165 = vmatprep.subr.bf16.mxu1 %v7685_v40 }
 0x294   : > { %3761 = vmatmul.mubr.bf16.vlgmr.msra.gmra.mxu1 %v8736_v47  ;;  %v7647_v47 = vld [vmem:[#allocation11 + $0x60] ss:$16 sps:$4 sm:$0xff]  }
 0x295   : > { %3770 = vmatprep.mubr.bf16.mxu1 %v8748_v63  ;;  %5133 = vmatpush1.bf16.msra.mxu0 %v7647_v47  ;;  %v7652_v63 = vld [vmem:[#allocation11 + $0x44] ss:$16 sps:$4 sm:$0xff]   ;;  %v7755_v47 = vld [vmem:[#allocation11 + $0x360] ss:$16 sps:$4 sm:$0xff]  }
 0x296   : > { %5134 = vmatprep.subr.bf16.mxu0 %v7652_v63  ;;  %v8816_v63 = vld [vmem:[%s9085_s5] sm:$0xf] }
 0x299   : > { %5135 = vmatpush1.bf16.msra.mxu0 %v7650_v18 }
 0x29c   : > { %3771 = vmatmul.mubr.bf16.gmra.mxu1 %v8753_v30  ;;  %v7655_v30 = vld [vmem:[#allocation11 + $0x24] ss:$16 sps:$4 sm:$0xff]  }
 0x29d   : > { %3780 = vmatprep.mubr.bf16.mxu1 %v8771_v28  ;;  %5136 = vmatprep.subr.bf16.mxu0 %v7655_v30  ;;  %v7661_v28 = vld [vmem:[#allocation11 + $0x1e4] ss:$16 sps:$4 sm:$0xff]  }
 0x29e   : > { %5137 = vmatpush1.bf16.msra.mxu0 %v7653_v21  ;;  %v7763_v30 = vld [vmem:[#allocation11 + $0x344] ss:$16 sps:$4 sm:$0xff]   ;;  %v8822_v21 = vrot.slane %v8816_v63, %v8563_v5 }
 0x29f   : > { %5138 = vmatprep.subr.bf16.mxu0 %v7658_v22  ;;  %v7761_v22 = vld [vmem:[#allocation11 + $0x340] ss:$16 sps:$4 sm:$0xff]  }
 0x2a2   : > { %5139 = vmatpush1.bf16.msra.mxu0 %v7656_v23 }
 0x2a3   : > { %5140 = vmatprep.subr.bf16.mxu0 %v7661_v28  ;;  %v8828_v28 = vrot.slane %v8816_v63, %v8568_v33 }
 0x2a4   : > { %3781 = vmatmul.mubr.bf16.gmra.mxu1 %v8779_v20  ;;  %v7667_v20 = vld [vmem:[#allocation11 + $0x1a4] ss:$16 sps:$4 sm:$0xff]  }
 0x2a5   : > { %3790 = vmatprep.mubr.bf16.mxu1 %v8784_v24  ;;  %v7674_v24 = vld [vmem:[#allocation11 + $0x140] ss:$16 sps:$4 sm:$0xff]  }
 0x2a6   : > { %5141 = vmatpush2.bf16.msra.mxu0 %v7659_v29  ;;  %v7767_v29 = vld [vmem:[#allocation11 + $0x320] ss:$16 sps:$4 sm:$0xff]  }
 0x2a7   : > { %5142 = vmatprep.subr.bf16.mxu0 %v7664_v1  ;;  %v7769_v1 = vld [vmem:[#allocation11 + $0x324] ss:$16 sps:$4 sm:$0xff]  }
 0x2aa   : > { %5143 = vmatpush2.bf16.msra.mxu0 %v7662_v19 }
 0x2ab   : > { %5144 = vmatprep.subr.bf16.mxu0 %v7667_v20 }
 0x2ac   : > { %3791 = vmatmul.mubr.bf16.gmra.mxu1 %v8790_v39  ;;  %v7683_v39 = vld [vmem:[#allocation11 + $0x2e0] ss:$16 sps:$4 sm:$0xff]  }
 0x2ad   : > { %5166 = vmatpush1.bf16.msra.mxu1 %v7683_v39 }
 0x2ae   : > { %5145 = vmatpush2.bf16.msra.mxu0 %v7665_v26  ;;  %5167 = vmatprep.subr.bf16.mxu1 %v7691_v27 }
 0x2af   : > { %5146 = vmatprep.subr.bf16.mxu0 %v7670_v58 }
 0x2b1   : > { %5168 = vmatpush1.bf16.msra.mxu1 %v7689_v44 }
 0x2b2   : > { %5147 = vmatpush2.bf16.msra.mxu0 %v7668_v34  ;;  %5169 = vmatprep.subr.bf16.mxu1 %v7697_v45  ;;  %v7781_v45 = vld [vmem:[#allocation11 + $0x2ec] ss:$16 sps:$4 sm:$0xff]  }
 0x2b3   : > { %5148 = vmatprep.subr.bf16.mxu0 %v7673_v11 }
 0x2b5   : > { %5170 = vmatpush1.bf16.msra.mxu1 %v7695_v43 }
 0x2b6   : > { %5149 = vmatpush2.bf16.msra.mxu0 %v7671_v31  ;;  %5171 = vmatprep.subr.bf16.mxu1 %v7703_v62  ;;  %v7773_v31 = vld [vmem:[#allocation11 + $0x300] ss:$16 sps:$4 sm:$0xff]  }
 0x2b7   : > { %5150 = vmatprep.subr.bf16.mxu0 %v7676_v35  ;;  %v7775_v35 = vld [vmem:[#allocation11 + $0x304] ss:$16 sps:$4 sm:$0xff]  }
 0x2b9   : > { %5172 = vmatpush1.bf16.msra.mxu1 %v7701_v0 }
 0x2ba   : > { %5151 = vmatpush2.bf16.msra.mxu0 %v7674_v24  ;;  %5173 = vmatprep.subr.bf16.mxu1 %v7709_v46 }
 0x2bb   : > { %5152 = vmatprep.subr.bf16.mxu0 %v7679_v25 }
 0x2bd   : > { %5174 = vmatpush1.bf16.msra.mxu1 %v7707_v57 }
 0x2be   : > { %5153 = vmatpush2.bf16.msra.mxu0 %v7677_v37  ;;  %5175 = vmatprep.subr.bf16.mxu1 %v7715_v32 }
 0x2bf   : > { %5154 = vmatprep.subr.bf16.mxu0 %v7682_v38 }
 0x2c1   : > { %5176 = vmatpush1.bf16.msra.mxu1 %v7713_v50 }
 0x2c2   : > { %5155 = vmatpush2.bf16.msra.mxu0 %v7680_v41  ;;  %5177 = vmatprep.subr.bf16.mxu1 %v7721_v51 }
 0x2c3   : > { %5206 = vmatprep.subr.bf16.mxu0 %v7688_v42 }
 0x2c5   : > { %5178 = vmatpush1.bf16.msra.mxu1 %v7719_v16 }
 0x2c6   : > { %5179 = vmatprep.subr.bf16.mxu1 %v7727_v48 }
 0x2c9   : > { %5180 = vmatpush1.bf16.msra.mxu1 %v7725_v54 }
 0x2ca   : > { %5181 = vmatprep.subr.bf16.mxu1 %v7733_v7 }
 0x2cd   : > { %5182 = vmatpush2.bf16.msra.mxu1 %v7731_v59 }
 0x2ce   : > { %5183 = vmatprep.subr.bf16.mxu1 %v7739_v14 }
 0x2d1   : > { %5184 = vmatpush2.bf16.msra.mxu1 %v7737_v3 }
 0x2d2   : > { %5185 = vmatprep.subr.bf16.mxu1 %v7745_v6 }
 0x2d4   : > { %v3543_v4 = vpop.f32.mrf.mxu0 }
 0x2d5   : > { %5186 = vmatpush2.bf16.msra.mxu1 %v7743_v10  ;;  %v3544_v19 = vadd.f32 %v3543_v4, %v8822_v21 }
 0x2d6   : > { %v3545_v53 = vpop.f32.mrf.mxu0  ;;  %5187 = vmatprep.subr.bf16.mxu1 %v7751_v15 }
 0x2d7   : > { %v3546_v58 = vadd.f32 %v3545_v53, %v8828_v28 }
 0x2d8   : > { %v3547_v55 = vpop.f32.mrf.mxu0 }
 0x2d9   : > { %5188 = vmatpush2.bf16.msra.mxu1 %v7749_v12  ;;  %v3548_v37 = vadd.f32 %v3547_v55, %v8822_v21 }
 0x2da   : > { %v3549_v60 = vpop.f32.mrf.mxu0  ;;  %5189 = vmatprep.subr.bf16.mxu1 %v7757_v17 }
 0x2db   : > { %v3550_v42 = vadd.f32 %v3549_v60, %v8828_v28 }
 0x2dc   : > { %v8807_v56 = vpop.f32.mrf.mxu0 }
 0x2dd   : > { %5190 = vmatpush2.bf16.msra.mxu1 %v7755_v47  ;;  %v3554_v16 = vadd.f32 %v8807_v56, %v8822_v21 }
 0x2de   : > { %v8809_v2 = vpop.f32.mrf.mxu0  ;;  %5191 = vmatprep.subr.bf16.mxu1 %v7763_v30 }
 0x2df   : > { %v3556_v3 = vadd.f32 %v8809_v2, %v8828_v28  ;;  %v8846_v2 = vrot.slane %v8816_v63, %v8674_v61 }
 0x2e0   : > { %v8811_v13 = vpop.f32.mrf.mxu0 }
 0x2e1   : > { %5192 = vmatpush2.bf16.msra.mxu1 %v7761_v22  ;;  %v3558_v12 = vadd.f32 %v8811_v13, %v8822_v21 }
 0x2e2   : > { %v8818_v18 = vpop.f32.mrf.mxu0  ;;  %5193 = vmatprep.subr.bf16.mxu1 %v7769_v1 }
 0x2e4   : > { %v8824_v23 = vpop.f32.mrf.mxu0 }
 0x2e5   : > { %5194 = vmatpush2.bf16.msra.mxu1 %v7767_v29  ;;  %v3560_v29 = vadd.f32 %v8818_v18, %v8828_v28  ;;  %v3564_v18 = vadd.f32 %v8824_v23, %v8822_v21 }
 0x2e6   : > { %v8831_v20 = vpop.f32.mrf.mxu0  ;;  %5195 = vmatprep.subr.bf16.mxu1 %v7775_v35 }
 0x2e8   : > { %v3567_v38 = vpop.f32.mrf.mxu0 }
 0x2e9   : > { %5196 = vmatpush2.bf16.msra.mxu1 %v7773_v31 }
 0x2ea   : > { %v3569_v0 = vpop.f32.mrf.mxu0  ;;  %5247 = vmatprep.subr.bf16.mxu1 %v7781_v45 }
 0x2ec   : > { %v3573_v53 = vpop.f32.mrf.mxu0 }
 0x2ee   : > { %v3575_v6 = vpop.f32.mrf.mxu0 }
 0x314   : > { %v3616_v26 = vpop.f32.mrf.mxu1 }
 0x315   : > { %v3617_v34 = vadd.f32 %v3616_v26, %v3544_v19  ;;  %v3577_v26 = vpop.f32.mrf.mxu0 }
 0x316   : > { %v3618_v11 = vpop.f32.mrf.mxu1 }
 0x317   : > { %vm3801_vm0 = vcmp.gt.f32.partialorder %v3617_v34, 0.0  ;;  %v3833_v24 = vmul.f32 0.2, %v3617_v34  ;;  %v3619_v25 = vadd.f32 %v3618_v11, %v3546_v58  ;;  %v8850_v58 = vrot.slane %v8816_v63, %v8677_v36 }
 0x318   : > { %v3620_v39 = vpop.f32.mrf.mxu1 }
 0x319   : > { %v3865_v40 = vsel %vm3801_vm0, %v3617_v34, %v3833_v24  ;;  %vm3802_vm1 = vcmp.gt.f32.partialorder %v3619_v25, 0.0  ;;  %v3834_v41 = vmul.f32 0.2, %v3619_v25  ;;  %v3621_v27 = vadd.f32 %v3620_v39, %v3548_v37 }
 0x31a   : > { %v3897_v44 = vrot.slane %v3865_v40, 4  ;;  %v3622_v43 = vpop.f32.mrf.mxu1  ;;  %v3568_v37 = vadd.f32 %v3567_v38, %v8822_v21  ;;  %v8860_v38 = vadd.f32 %v3575_v6, %v8828_v28 }
 0x31b   : > { %v3866_v62 = vsel %vm3802_vm1, %v3619_v25, %v3834_v41  ;;  %v3623_v46 = vadd.f32 %v3622_v43, %v3550_v42  ;;  %v3837_v4 = vmul.f32 0.2, %v3621_v27  ;;  %vm3805_vm2 = vcmp.gt.f32.partialorder %v3621_v27, 0.0  ;;  %v3579_v42 = vpop.f32.mrf.mxu0 }
 0x31c   : > { %v3626_v57 = vpop.f32.mrf.mxu1  ;;  %v3898_v32 = vadd.f32 %v3897_v44, %v3865_v40  ;;  %v3903_v50 = vrot.slane %v3866_v62, 4  ;;  %v3566_v25 = vadd.f32 %v8831_v20, %v8828_v28  ;;  %v3570_v40 = vadd.f32 %v3569_v0, %v8828_v28 }
 0x31d   : > { %vm3806_vm3 = vcmp.gt.f32.partialorder %v3623_v46, 0.0  ;;  %v3838_v48 = vmul.f32 0.2, %v3623_v46  ;;  %v3869_v59 = vsel %vm3805_vm2, %v3621_v27, %v3837_v4  ;;  %v3627_v60 = vadd.f32 %v3626_v57, %v3554_v16 }
 0x31e   : > { %v3628_v51 = vpop.f32.mrf.mxu1  ;;  %v3899_v55 = vrot.slane %v3898_v32, 2  ;;  %v3904_v7 = vadd.f32 %v3903_v50, %v3866_v62  ;;  %v3921_v10 = vrot.slane %v3869_v59, 4  ;;  %v3574_v20 = vadd.f32 %v3573_v53, %v8822_v21 }
 0x31f   : > { %v3870_v15 = vsel %vm3806_vm3, %v3623_v46, %v3838_v48  ;;  %v3841_v47 = vmul.f32 0.2, %v3627_v60  ;;  %vm3809_vm4 = vcmp.gt.f32.partialorder %v3627_v60, 0.0  ;;  %v3629_v22 = vadd.f32 %v3628_v51, %v3556_v3  ;;  %v3689_v51 = vpop.f32.mrf.mxu0 }
 0x320   : > { %v3630_v54 = vpop.f32.mrf.mxu1  ;;  %v3900_v17 = vadd.f32 %v3899_v55, %v3898_v32  ;;  %v3905_v56 = vrot.slane %v3904_v7, 2  ;;  %v3927_v1 = vrot.slane %v3870_v15, 4  ;;  %v3922_v13 = vadd.f32 %v3921_v10, %v3869_v59 }
 0x321   : > { %v3631_v19 = vadd.f32 %v3630_v54, %v3558_v12  ;;  %v3873_v31 = vsel %vm3809_vm4, %v3627_v60, %v3841_v47  ;;  %v3842_v39 = vmul.f32 0.2, %v3629_v22  ;;  %vm3810_vm5 = vcmp.gt.f32.partialorder %v3629_v22, 0.0 }
 0x322   : > { %v3632_v14 = vpop.f32.mrf.mxu1  ;;  %v3901_v34 = vrot.slane %v3900_v17, 1  ;;  %v3906_v11 = vadd.f32 %v3905_v56, %v3904_v7  ;;  %v3928_v41 = vadd.f32 %v3927_v1, %v3870_v15  ;;  %v3945_v44 = vrot.slane %v3873_v31, 4 }
 0x323   : > { %v3633_v35 = vadd.f32 %v3632_v14, %v3560_v29  ;;  %v3845_v63 = vmul.f32 0.2, %v3631_v19  ;;  %vm3813_vm6 = vcmp.gt.f32.partialorder %v3631_v19, 0.0  ;;  %v3923_v46 = vrot.slane %v3922_v13, 2 }
 0x324   : > { %v3636_v30 = vpop.f32.mrf.mxu1  ;;  %v3902_v45 = vadd.f32 %v3901_v34, %v3900_v17  ;;  %v3907_v62 = vrot.slane %v3906_v11, 1  ;;  %v8863_v0 = vadd.f32 %v3577_v26, %v8822_v21  ;;  %v3874_v57 = vsel %vm3810_vm5, %v3629_v22, %v3842_v39 }
 0x325   : > { %v3846_v27 = vmul.f32 0.2, %v3633_v35  ;;  %v3637_v43 = vadd.f32 %v3636_v30, %v3564_v18  ;;  %vm3814_vm7 = vcmp.gt.f32.partialorder %v3633_v35, 0.0  ;;  %v8866_v32 = vadd.f32 %v3579_v42, %v8828_v28 }
 0x326   : > { %v3638_v24 = vpop.f32.mrf.mxu1  ;;  %v3929_v50 = vrot.slane %v3928_v41, 2  ;;  %v3877_v4 = vsel %vm3813_vm6, %v3631_v19, %v3845_v63  ;;  %v3946_v16 = vadd.f32 %v3945_v44, %v3873_v31  ;;  %v4217_v7 = vpack.c.bf16 %v3902_v45, %v3902_v45  ;;  %v8873_v31 = vpop.f32.mrf.mxu0 }
 0x327   : > { %vm3817_vm8 = vcmp.gt.f32.partialorder %v3637_v43, 0.0  ;;  %v3878_v48 = vsel %vm3814_vm7, %v3633_v35, %v3846_v27  ;;  %v3849_v54 = vmul.f32 0.2, %v3637_v43  ;;  %v3639_v55 = vadd.f32 %v3638_v24, %v3566_v25 }
 0x328   : > { %v3640_v23 = vpop.f32.mrf.mxu1  ;;  %v3908_v53 = vadd.f32 %v3907_v62, %v3906_v11  ;;  %v3924_v59 = vadd.f32 %v3923_v46, %v3922_v13  ;;  %v3951_v60 = vrot.slane %v3874_v57, 4  ;;  %v3969_v3 = vrot.slane %v3877_v4, 4  ;;  %v8877_v46 = vpop.f32.mrf.mxu0 }
 0x329   : > { %v3881_v21 = vsel %vm3817_vm8, %v3637_v43, %v3849_v54  ;;  %vm3818_vm9 = vcmp.gt.f32.partialorder %v3639_v55, 0.0  ;;  %v3850_v6 = vmul.f32 0.2, %v3639_v55  ;;  %v8869_v28 = vadd.f32 %v3689_v51, %v8846_v2 }
 0x32a   : > { %v3642_v14 = vpop.f32.mrf.mxu1  ;;  %v3930_v10 = vadd.f32 %v3929_v50, %v3928_v41  ;;  %v3975_v15 = vrot.slane %v3878_v48, 4  ;;  %v3993_v12 = vrot.slane %v3881_v21, 4  ;;  %v3947_v17 = vrot.slane %v3946_v16, 2 }
 0x32b   : > { %v3882_v56 = vsel %vm3818_vm9, %v3639_v55, %v3850_v6  ;;  %v3641_v47 = vadd.f32 %v3640_v23, %v3568_v37  ;;  %v3643_v30 = vadd.f32 %v3642_v14, %v3570_v40  ;;  %v8871_v22 = vunpack.c.l.b16 %v4217_v7 }
 0x32c   : > { %v4218_v29 = vpack.c.bf16 %v3908_v53, %v3908_v53  ;;  %v3925_v1 = vrot.slane %v3924_v59, 1  ;;  %v3952_v19 = vadd.f32 %v3951_v60, %v3874_v57  ;;  %v3646_v26 = vpop.f32.mrf.mxu1  ;;  %v3970_v13 = vadd.f32 %v3969_v3, %v3877_v4 }
 0x32d   : > { %v3999_v34 = vrot.slane %v3882_v56, 4  ;;  %vm3821_vm10 = vcmp.gt.f32.partialorder %v3641_v47, 0.0  ;;  %v3853_v11 = vmul.f32 0.2, %v3641_v47  ;;  %v3976_v35 = vadd.f32 %v3975_v15, %v3878_v48 }
 0x32e   : > { %v3994_v24 = vadd.f32 %v3993_v12, %v3881_v21  ;;  %vm3822_vm11 = vcmp.gt.f32.partialorder %v3643_v30, 0.0  ;;  %v3854_v18 = vmul.f32 0.2, %v3643_v30  ;;  %v3931_v25 = vrot.slane %v3930_v10, 1  ;;  %v3648_v27 = vpop.f32.mrf.mxu1  ;;  %v8884_v21 = vpop.f32.mrf.mxu0 }
 0x32f   : > { %v4000_v39 = vadd.f32 %v3999_v34, %v3882_v56  ;;  %v3885_v37 = vsel %vm3821_vm10, %v3641_v47, %v3853_v11  ;;  %v3647_v40 = vadd.f32 %v3646_v26, %v3574_v20  ;;  %v8875_v41 = vadd.f32 %v3925_v1, %v3924_v59 }
 0x330   : > { %v3948_v63 = vadd.f32 %v3947_v17, %v3946_v16  ;;  %v3953_v42 = vrot.slane %v3952_v19, 2  ;;  %v4017_v44 = vrot.slane %v3885_v37, 4  ;;  %v3971_v43 = vrot.slane %v3970_v13, 2  ;;  %v3650_v59 = vpop.f32.mrf.mxu1 }
 0x331   : > { %v3886_v45 = vsel %vm3822_vm11, %v3643_v30, %v3854_v18  ;;  %vm3825_vm12 = vcmp.gt.f32.partialorder %v3647_v40, 0.0  ;;  %v3857_v62 = vmul.f32 0.2, %v3647_v40  ;;  %v3977_v23 = vrot.slane %v3976_v35, 2 }
 0x332   : > { %v3995_v57 = vrot.slane %v3994_v24, 2  ;;  %v4018_v50 = vadd.f32 %v4017_v44, %v3885_v37  ;;  %v4023_v4 = vrot.slane %v3886_v45, 4  ;;  %v8879_v51 = vunpack.c.l.b16 %v4218_v29  ;;  %v3652_v26 = vpop.f32.mrf.mxu1 }
 0x333   : > { %v4001_v48 = vrot.slane %v4000_v39, 2  ;;  %v3889_v20 = vsel %vm3825_vm12, %v3647_v40, %v3857_v62  ;;  %v3649_v54 = vadd.f32 %v3648_v27, %v8860_v38  ;;  %v8882_v16 = vadd.f32 %v3931_v25, %v3930_v10 }
 0x334   : > { %v3954_v55 = vadd.f32 %v3953_v42, %v3952_v19  ;;  %v4019_v7 = vrot.slane %v4018_v50, 2  ;;  %v4024_v53 = vadd.f32 %v4023_v4, %v3886_v45  ;;  %v3949_v60 = vrot.slane %v3948_v63, 1 }
 0x335   : > { %v4041_v14 = vrot.slane %v3889_v20, 4  ;;  %vm3826_vm13 = vcmp.gt.f32.partialorder %v3649_v54, 0.0  ;;  %v3858_v3 = vmul.f32 0.2, %v3649_v54  ;;  %v3972_v6 = vadd.f32 %v3971_v43, %v3970_v13  ;;  %v8889_v13 = vpop.f32.mrf.mxu0 }
 0x336   : > { %v3978_v15 = vadd.f32 %v3977_v23, %v3976_v35  ;;  %v3996_v12 = vadd.f32 %v3995_v57, %v3994_v24  ;;  %v4025_v17 = vrot.slane %v4024_v53, 2  ;;  %v4002_v56 = vadd.f32 %v4001_v48, %v4000_v39 }
 0x337   : > { %v4042_v47 = vadd.f32 %v4041_v14, %v3889_v20  ;;  %v3890_v30 = vsel %vm3826_vm13, %v3649_v54, %v3858_v3  ;;  %v3651_v38 = vadd.f32 %v3650_v59, %v8863_v0  ;;  %v4221_v10 = vpack.c.bf16 %v8875_v41, %v8875_v41  ;;  %v8892_v57 = vpop.f32.mrf.mxu0 }
 0x338   : > { %v3955_v29 = vrot.slane %v3954_v55, 1  ;;  %v4020_v1 = vadd.f32 %v4019_v7, %v4018_v50  ;;  %v4047_v19 = vrot.slane %v3890_v30, 4  ;;  %v4026_v34 = vadd.f32 %v4025_v17, %v4024_v53 }
 0x339   : > { %v4043_v11 = vrot.slane %v4042_v47, 2  ;;  %vm3829_vm14 = vcmp.gt.f32.partialorder %v3651_v38, 0.0  ;;  %v3861_v18 = vmul.f32 0.2, %v3651_v38  ;;  %v3973_v35 = vrot.slane %v3972_v6, 1 }
 0x33a   : > { %v3979_v24 = vrot.slane %v3978_v15, 1  ;;  %v3997_v25 = vrot.slane %v3996_v12, 1  ;;  %v4048_v39 = vadd.f32 %v4047_v19, %v3890_v30  ;;  %v4003_v37 = vrot.slane %v4002_v56, 1 }
 0x33b   : > { %v4044_v40 = vadd.f32 %v4043_v11, %v4042_v47  ;;  %v3893_v0 = vsel %vm3829_vm14, %v3651_v38, %v3861_v18  ;;  %v3653_v42 = vadd.f32 %v3652_v26, %v8866_v32  ;;  %v3950_v41 = vadd.f32 %v3949_v60, %v3948_v63 }
 0x33c   : > { %v4021_v44 = vrot.slane %v4020_v1, 1  ;;  %v4049_v27 = vrot.slane %v4048_v39, 2  ;;  %v4065_v43 = vrot.slane %v3893_v0, 4  ;;  %v4027_v45 = vrot.slane %v4026_v34, 1 }
 0x33d   : > { %v4045_v62 = vrot.slane %v4044_v40, 1  ;;  %vm3830_vm0 = vcmp.gt.f32.partialorder %v3653_v42, 0.0  ;;  %v3862_v23 = vmul.f32 0.2, %v3653_v42  ;;  %vm4443_vm1 = vcmask 1042434  }
 0x33e   : > { %v3956_v50 = vadd.f32 %v3955_v29, %v3954_v55  ;;  %v3974_v4 = vadd.f32 %v3973_v35, %v3972_v6  ;;  %v4050_v48 = vadd.f32 %v4049_v27, %v4048_v39  ;;  %v4066_v20 = vadd.f32 %v4065_v43, %v3893_v0  ;;  %v8896_v6 = vpop.f32.mrf.mxu0 }
 0x33f   : > { %vm4445_vm2 = vcmask 1043459   ;;  %v3980_v54 = vadd.f32 %v3979_v24, %v3978_v15  ;;  %v3998_v7 = vadd.f32 %v3997_v25, %v3996_v12  ;;  %v4004_v32 = vadd.f32 %v4003_v37, %v4002_v56 }
 0x340   : > { %v3894_v53 = vsel %vm3830_vm0, %v3653_v42, %v3862_v23  ;;  %v4022_v63 = vadd.f32 %v4021_v44, %v4020_v1  ;;  %v4051_v59 = vrot.slane %v4050_v48, 1  ;;  %v4067_v60 = vrot.slane %v4066_v20, 2 }
 0x341   : > { %v4071_v14 = vrot.slane %v3894_v53, 4  ;;  %vm4447_vm3 = vcmask 1044484   ;;  %v4222_v3 = vpack.c.bf16 %v8882_v16, %v8882_v16  ;;  %v4225_v17 = vpack.c.bf16 %v3950_v41, %v3950_v41 }
 0x342   : > { %v4028_v47 = vadd.f32 %v4027_v45, %v4026_v34  ;;  %v4046_v30 = vadd.f32 %v4045_v62, %v4044_v40  ;;  %vm4449_vm4 = vcmask 1045509   ;;  %v4226_v55 = vpack.c.bf16 %v3956_v50, %v3956_v50  ;;  %v8898_v40 = vpop.f32.mrf.mxu0 }
 0x343   : > { %v4229_v38 = vpack.c.bf16 %v3974_v4, %v3974_v4  ;;  %v4068_v15 = vadd.f32 %v4067_v60, %v4066_v20  ;;  %v4072_v12 = vadd.f32 %v4071_v14, %v3894_v53  ;;  %vm4451_vm5 = vcmask 1046534  }
 0x344   : > { %v4413_v56 = vunpack.c.l.b16 %v4221_v10  ;;  %v4230_v29 = vpack.c.bf16 %v3980_v54, %v3980_v54  ;;  %v4233_v1 = vpack.c.bf16 %v3998_v7, %v3998_v7  ;;  %v4052_v19 = vadd.f32 %v4051_v59, %v4050_v48 }
 0x345   : > { %v4234_v26 = vpack.c.bf16 %v4004_v32, %v4004_v32  ;;  %v4237_v11 = vpack.c.bf16 %v4022_v63, %v4022_v63  ;;  %v4069_v18 = vrot.slane %v4068_v15, 1  ;;  %v4073_v35 = vrot.slane %v4072_v12, 2 }
 0x346   : > { %vm4453_vm6 = vcmask 1047559   ;;  %v4414_v16 = vunpack.c.l.b16 %v4222_v3  ;;  %v4417_v34 = vunpack.c.l.b16 %v4225_v17  ;;  %v4238_v24 = vpack.c.bf16 %v4028_v47, %v4028_v47 }
 0x347   : > { %v4241_v25 = vpack.c.bf16 %v4046_v30, %v4046_v30  ;;  %v4418_v39 = vunpack.c.l.b16 %v4226_v55  ;;  %v4421_v37 = vunpack.c.l.b16 %v4229_v38  ;;  %v4070_v0 = vadd.f32 %v4069_v18, %v4068_v15 }
 0x348   : > { %v4074_v42 = vadd.f32 %v4073_v35, %v4072_v12  ;;  %v4442_v10 = vsel %vm4441_vm15, %v4413_v56, %v8871_v22  ;;  %v4422_v41 = vunpack.c.l.b16 %v4230_v29  ;;  %v4425_v44 = vunpack.c.l.b16 %v4233_v1  ;;  %v8908_v22 = vpop.f32.mrf.mxu0 }
 0x349   : > { %v4242_v27 = vpack.c.bf16 %v4052_v19, %v4052_v19  ;;  %v4426_v43 = vunpack.c.l.b16 %v4234_v26  ;;  %v4429_v45 = vunpack.c.l.b16 %v4237_v11  ;;  %v4245_v62 = vpack.c.bf16 %v4070_v0, %v4070_v0 }
 0x34a   : > { %v4075_v23 = vrot.slane %v4074_v42, 1  ;;  %v4455_v50 = vsel %vm4441_vm15, %v4414_v16, %v8879_v51  ;;  %v4444_v4 = vsel %vm4443_vm1, %v4417_v34, %v4442_v10  ;;  %v4430_v48 = vunpack.c.l.b16 %v4238_v24  ;;  %v8918_v15 = vpop.f32.mrf.mxu0  ;;  %v7686_v24 = vld [vmem:[#allocation11 + $0xe8] ss:$16 sps:$4 sm:$0xff]  }
 0x34b   : > { %v4433_v20 = vunpack.c.l.b16 %v4241_v25  ;;  %v3692_v54 = vadd.f32 %v8873_v31, %v8850_v58  ;;  %v4446_v7 = vsel %vm4445_vm2, %v4421_v37, %v4444_v4  ;;  %v4456_v53 = vsel %vm4443_vm1, %v4418_v39, %v4455_v50 }
 0x34c   : > { %v4076_v32 = vadd.f32 %v4075_v23, %v4074_v42  ;;  %v4437_v63 = vunpack.c.l.b16 %v4245_v62  ;;  %v4434_v59 = vunpack.c.l.b16 %v4242_v27  ;;  %v4457_v60 = vsel %vm4445_vm2, %v4422_v41, %v4456_v53  ;;  %v8929_v0 = vpop.f32.mrf.mxu0  ;;  %v7694_v42 = vld [vmem:[#allocation11 + $0xcc] ss:$16 sps:$4 sm:$0xff]  }
 0x34d   : > { %v4448_v51 = vsel %vm4447_vm3, %v4425_v44, %v4446_v7  ;;  %v4458_v17 = vsel %vm4447_vm3, %v4426_v43, %v4457_v60  ;;  %v3694_v1 = vadd.f32 %v8877_v46, %v8846_v2  ;;  %v3696_v19 = vadd.f32 %v8884_v21, %v8850_v58 }
 0x34e   : > { %v4246_v3 = vpack.c.bf16 %v4076_v32, %v4076_v32  ;;  %v4450_v47 = vsel %vm4449_vm4, %v4429_v45, %v4448_v51  ;;  %v4459_v30 = vsel %vm4449_vm4, %v4430_v48, %v4458_v17  ;;  %v3700_v46 = vadd.f32 %v8889_v13, %v8846_v2  ;;  %v7692_v13 = vld [vmem:[#allocation11 + $0xc8] ss:$16 sps:$4 sm:$0xff]  }
 0x34f   : > { %v4452_v55 = vsel %vm4451_vm5, %v4433_v20, %v4450_v47  ;;  %v4460_v26 = vsel %vm4451_vm5, %v4434_v59, %v4459_v30  ;;  %v3715_v20 = vpop.f32.mrf.mxu0  ;;  %v3702_v59 = vadd.f32 %v8892_v57, %v8850_v58  ;;  %v3704_v17 = vadd.f32 %v8896_v6, %v8846_v2  ;;  %v7706_v30 = vld [vmem:[#allocation11 + $0x8c] ss:$16 sps:$4 sm:$0xff]  }
 0x350   : > { %v4438_v12 = vunpack.c.l.b16 %v4246_v3  ;;  %v3706_v47 = vadd.f32 %v8898_v40, %v8850_v58  ;;  %v7712_v40 = vld [vmem:[#allocation11 + $0x6c] ss:$16 sps:$4 sm:$0xff]  }
 0x352   : > { %v4461_v18 = vsel %vm4453_vm6, %v4438_v12, %v4460_v26 }
 0x353   : > { %v4477_v34 = vpack.c.b16 %v4461_v18, %v4461_v18 }
 0x354   : > { %v3762_v14 = vpop.f32.mrf.mxu1 }
 0x355   : > { %v3763_v31 = vadd.f32 %v3762_v14, %v8869_v28  ;;  %v4454_v28 = vsel %vm4453_vm6, %v4437_v63, %v4452_v55  ;;  %5156 = vmatprep.mubr.bf16.mxu0 %v4477_v34  ;;  %v7698_v14 = vld [vmem:[#allocation11 + $0xa8] ss:$16 sps:$4 sm:$0xff]  }
 0x356   : > { %v3764_v38 = vpop.f32.mrf.mxu1  ;;  %v8931_v21 = vpack.c.b16 %v4454_v28, %v4454_v28  ;;  %v7704_v28 = vld [vmem:[#allocation11 + $0x88] ss:$16 sps:$4 sm:$0xff]  }
 0x357   : > { %vm3803_vm7 = vcmp.gt.f32.partialorder %v3763_v31, 0.0  ;;  %v3835_v56 = vmul.f32 0.2, %v3763_v31  ;;  %v3765_v29 = vadd.f32 %v3764_v38, %v3692_v54  ;;  %v7700_v54 = vld [vmem:[#allocation11 + $0xac] ss:$16 sps:$4 sm:$0xff]  }
 0x358   : > { %v3766_v11 = vpop.f32.mrf.mxu1  ;;  %5157 = vmatmul.mubr.bf16.vlgmr.msra.gmra.mxu0 %v8931_v21 }
 0x359   : > { %v3867_v35 = vsel %vm3803_vm7, %v3763_v31, %v3835_v56  ;;  %vm3804_vm8 = vcmp.gt.f32.partialorder %v3765_v29, 0.0  ;;  %v3836_v16 = vmul.f32 0.2, %v3765_v29  ;;  %v3767_v39 = vadd.f32 %v3766_v11, %v3694_v1  ;;  %5207 = vmatpush1.bf16.msra.mxu0 %v7686_v24  ;;  %5238 = vmatprep.mubr.bf16.mxu0 %v4477_v34  ;;  %v3719_v31 = vpop.f32.mrf.mxu0 }
 0x35a   : > { %v3909_v25 = vrot.slane %v3867_v35, 4  ;;  %v3768_v37 = vpop.f32.mrf.mxu1  ;;  %5208 = vmatprep.subr.bf16.mxu0 %v7694_v42  ;;  %v3710_v34 = vadd.f32 %v8908_v22, %v8846_v2 }
 0x35b   : > { %v3868_v10 = vsel %vm3804_vm8, %v3765_v29, %v3836_v16  ;;  %v3769_v41 = vadd.f32 %v3768_v37, %v3696_v19  ;;  %vm3807_vm9 = vcmp.gt.f32.partialorder %v3767_v39, 0.0  ;;  %v3839_v43 = vmul.f32 0.2, %v3767_v39  ;;  %v3721_v18 = vpop.f32.mrf.mxu0 }
 0x35c   : > { %v3910_v44 = vadd.f32 %v3909_v25, %v3867_v35  ;;  %v3915_v27 = vrot.slane %v3868_v10, 4  ;;  %v3772_v45 = vpop.f32.mrf.mxu1 }
 0x35d   : > { %vm3808_vm10 = vcmp.gt.f32.partialorder %v3769_v41, 0.0  ;;  %v3840_v62 = vmul.f32 0.2, %v3769_v41  ;;  %v3773_v23 = vadd.f32 %v3772_v45, %v3700_v46  ;;  %v3871_v4 = vsel %vm3807_vm9, %v3767_v39, %v3839_v43  ;;  %5209 = vmatpush1.bf16.msra.mxu0 %v7692_v13 }
 0x35e   : > { %v3911_v50 = vrot.slane %v3910_v44, 2  ;;  %v3774_v48 = vpop.f32.mrf.mxu1  ;;  %v3916_v7 = vadd.f32 %v3915_v27, %v3868_v10  ;;  %v3933_v60 = vrot.slane %v3871_v4, 4  ;;  %5210 = vmatprep.subr.bf16.mxu0 %v7700_v54  ;;  %v7710_v10 = vld [vmem:[#allocation11 + $0x68] ss:$16 sps:$4 sm:$0xff]   ;;  %v3723_v27 = vpop.f32.mrf.mxu0  ;;  %v3714_v13 = vadd.f32 %v8929_v0, %v8846_v2 }
 0x35f   : > { %v3872_v32 = vsel %vm3808_vm10, %v3769_v41, %v3840_v62  ;;  %v3843_v53 = vmul.f32 0.2, %v3773_v23  ;;  %vm3811_vm11 = vcmp.gt.f32.partialorder %v3773_v23, 0.0  ;;  %v3775_v38 = vadd.f32 %v3774_v48, %v3702_v59  ;;  %v7718_v62 = vld [vmem:[#allocation11 + $0x4c] ss:$16 sps:$4 sm:$0xff]  }
 0x360   : > { %v3776_v63 = vpop.f32.mrf.mxu1  ;;  %v3912_v51 = vadd.f32 %v3911_v50, %v3910_v44  ;;  %v3939_v55 = vrot.slane %v3872_v32, 4  ;;  %v3917_v12 = vrot.slane %v3916_v7, 2  ;;  %v3934_v29 = vadd.f32 %v3933_v60, %v3871_v4  ;;  %v7716_v59 = vld [vmem:[#allocation11 + $0x48] ss:$16 sps:$4 sm:$0xff]   ;;  %v3725_v0 = vpop.f32.mrf.mxu0 }
 0x361   : > { %v3875_v56 = vsel %vm3811_vm11, %v3773_v23, %v3843_v53  ;;  %v3777_v1 = vadd.f32 %v3776_v63, %v3704_v17  ;;  %5211 = vmatpush1.bf16.msra.mxu0 %v7698_v14  ;;  %v3844_v16 = vmul.f32 0.2, %v3775_v38  ;;  %vm3812_vm12 = vcmp.gt.f32.partialorder %v3775_v38, 0.0  ;;  %v7724_v17 = vld [vmem:[#allocation11 + $0x2c] ss:$16 sps:$4 sm:$0xff]  }
 0x362   : > { %v3778_v3 = vpop.f32.mrf.mxu1  ;;  %v3913_v26 = vrot.slane %v3912_v51, 1  ;;  %5212 = vmatprep.subr.bf16.mxu0 %v7706_v30  ;;  %v3940_v6 = vadd.f32 %v3939_v55, %v3872_v32  ;;  %v3957_v35 = vrot.slane %v3875_v56, 4  ;;  %v3918_v24 = vadd.f32 %v3917_v12, %v3916_v7 }
 0x363   : > { %v3779_v19 = vadd.f32 %v3778_v3, %v3706_v47  ;;  %v3935_v39 = vrot.slane %v3934_v29, 2  ;;  %v3847_v37 = vmul.f32 0.2, %v3777_v1  ;;  %vm3815_vm13 = vcmp.gt.f32.partialorder %v3777_v1, 0.0 }
 0x364   : > { %v3782_v57 = vpop.f32.mrf.mxu1  ;;  %v3914_v42 = vadd.f32 %v3913_v26, %v3912_v51  ;;  %v3712_v44 = vadd.f32 %v8918_v15, %v8850_v58  ;;  %v3941_v43 = vrot.slane %v3940_v6, 2  ;;  %v3958_v45 = vadd.f32 %v3957_v35, %v3875_v56  ;;  %v7722_v26 = vld [vmem:[#allocation11 + $0x28] ss:$16 sps:$4 sm:$0xff]  }
 0x365   : > { %v3848_v46 = vmul.f32 0.2, %v3779_v19  ;;  %5213 = vmatpush1.bf16.msra.mxu0 %v7704_v28  ;;  %vm3816_vm14 = vcmp.gt.f32.partialorder %v3779_v19, 0.0  ;;  %v3783_v41 = vadd.f32 %v3782_v57, %v3710_v34  ;;  %v3876_v22 = vsel %vm3812_vm12, %v3775_v38, %v3844_v16 }
 0x366   : > { %v3784_v11 = vpop.f32.mrf.mxu1  ;;  %5214 = vmatprep.subr.bf16.mxu0 %v7712_v40  ;;  %v3716_v50 = vadd.f32 %v3715_v20, %v8850_v58  ;;  %v3919_v4 = vrot.slane %v3918_v24, 1  ;;  %v3936_v48 = vadd.f32 %v3935_v39, %v3934_v29  ;;  %v3879_v54 = vsel %vm3815_vm13, %v3777_v1, %v3847_v37 }
 0x367   : > { %vm3819_vm0 = vcmp.gt.f32.partialorder %v3783_v41, 0.0  ;;  %v3880_v15 = vsel %vm3816_vm14, %v3779_v19, %v3848_v46  ;;  %v3851_v7 = vmul.f32 0.2, %v3783_v41  ;;  %v3720_v32 = vadd.f32 %v3719_v31, %v8846_v2 }
 0x368   : > { %v3786_v25 = vpop.f32.mrf.mxu1  ;;  %v4219_v53 = vpack.c.bf16 %v3914_v42, %v3914_v42  ;;  %v3963_v63 = vrot.slane %v3876_v22, 4  ;;  %v3785_v60 = vadd.f32 %v3784_v11, %v3712_v44  ;;  %v3722_v51 = vadd.f32 %v3721_v18, %v8850_v58 }
 0x369   : > { %5215 = vmatpush1.bf16.msra.mxu0 %v7710_v10  ;;  %v3942_v14 = vadd.f32 %v3941_v43, %v3940_v6  ;;  %v3959_v20 = vrot.slane %v3958_v45, 2  ;;  %v3883_v3 = vsel %vm3819_vm0, %v3783_v41, %v3851_v7  ;;  %v8954_v30 = vadd.f32 %v3723_v27, %v8846_v2  ;;  %v7730_v6 = vld [vmem:[#allocation11 + $0xc] ss:$16 sps:$4 sm:$0xff]   ;;  %v7728_v10 = vld [vmem:[#allocation11 + $0x8] ss:$16 sps:$4 sm:$0xff]  }
 0x36a   : > { %v3788_v23 = vpop.f32.mrf.mxu1  ;;  %5216 = vmatprep.subr.bf16.mxu0 %v7718_v62  ;;  %v8956_v55 = vadd.f32 %v3919_v4, %v3918_v24  ;;  %v3981_v31 = vrot.slane %v3879_v54, 4  ;;  %v3987_v38 = vrot.slane %v3880_v15, 4  ;;  %v3937_v12 = vrot.slane %v3936_v48, 1 }
 0x36b   : > { %v4005_v56 = vrot.slane %v3883_v3, 4  ;;  %vm3820_vm7 = vcmp.gt.f32.partialorder %v3785_v60, 0.0  ;;  %v3852_v57 = vmul.f32 0.2, %v3785_v60  ;;  %v8959_v29 = vadd.f32 %v3725_v0, %v8850_v58 }
 0x36c   : > { %v3792_v47 = vpop.f32.mrf.mxu1  ;;  %v8961_v1 = vunpack.c.l.b16 %v4219_v53  ;;  %v3964_v19 = vadd.f32 %v3963_v63, %v3876_v22  ;;  %v3787_v28 = vadd.f32 %v3786_v25, %v3714_v13  ;;  %v3943_v11 = vrot.slane %v3942_v14, 1 }
 0x36d   : > { %5217 = vmatpush1.bf16.msra.mxu0 %v7716_v59  ;;  %v8963_v2 = vadd.f32 %v3959_v20, %v3958_v45  ;;  %v3884_v18 = vsel %vm3820_vm7, %v3785_v60, %v3852_v57  ;;  %v3789_v35 = vadd.f32 %v3788_v23, %v3716_v50  ;;  %v3982_v16 = vadd.f32 %v3981_v31, %v3879_v54  ;;  %v7736_v45 = vld [vmem:[#allocation11 + $0x1ec] ss:$16 sps:$4 sm:$0xff]  }
 0x36e   : > { %5218 = vmatprep.subr.bf16.mxu0 %v7724_v17  ;;  %v3794_v40 = vpop.f32.mrf.mxu1  ;;  %v3988_v34 = vadd.f32 %v3987_v38, %v3880_v15  ;;  %v4011_v24 = vrot.slane %v3884_v18, 4  ;;  %vm3823_vm8 = vcmp.gt.f32.partialorder %v3787_v28, 0.0  ;;  %v4220_v58 = vpack.c.bf16 %v8956_v55, %v8956_v55 }
 0x36f   : > { %v8967_v39 = vadd.f32 %v3937_v12, %v3936_v48  ;;  %v4006_v37 = vadd.f32 %v4005_v56, %v3883_v3  ;;  %v3855_v46 = vmul.f32 0.2, %v3787_v28  ;;  %v3965_v25 = vrot.slane %v3964_v19, 2 }
 0x370   : > { %v4012_v42 = vadd.f32 %v4011_v24, %v3884_v18  ;;  %vm3824_vm9 = vcmp.gt.f32.partialorder %v3789_v35, 0.0  ;;  %v3856_v41 = vmul.f32 0.2, %v3789_v35  ;;  %v8969_v44 = vadd.f32 %v3943_v11, %v3942_v14  ;;  %v3796_v62 = vpop.f32.mrf.mxu1  ;;  %v7742_v14 = vld [vmem:[#allocation11 + $0x1cc] ss:$16 sps:$4 sm:$0xff]  }
 0x371   : > { %5219 = vmatpush1.bf16.msra.mxu0 %v7722_v26  ;;  %v3887_v27 = vsel %vm3823_vm8, %v3787_v28, %v3855_v46  ;;  %v3793_v43 = vadd.f32 %v3792_v47, %v3720_v32  ;;  %v3795_v22 = vadd.f32 %v3794_v40, %v3722_v51  ;;  %v3961_v23 = vrot.slane %v8963_v2, 1  ;;  %v7734_v32 = vld [vmem:[#allocation11 + $0x1e8] ss:$16 sps:$4 sm:$0xff]  }
 0x372   : > { %5220 = vmatprep.subr.bf16.mxu0 %v7730_v6  ;;  %v3983_v13 = vrot.slane %v3982_v16, 2  ;;  %v3989_v50 = vrot.slane %v3988_v34, 2  ;;  %v4029_v4 = vrot.slane %v3887_v27, 4  ;;  %v4007_v48 = vrot.slane %v4006_v37, 2  ;;  %v3798_v20 = vpop.f32.mrf.mxu1  ;;  %v7740_v11 = vld [vmem:[#allocation11 + $0x1c8] ss:$16 sps:$4 sm:$0xff]  }
 0x373   : > { %v3888_v54 = vsel %vm3824_vm9, %v3789_v35, %v3856_v41  ;;  %vm3827_vm10 = vcmp.gt.f32.partialorder %v3793_v43, 0.0  ;;  %v3859_v15 = vmul.f32 0.2, %v3793_v43  ;;  %v4223_v7 = vpack.c.bf16 %v8967_v39, %v8967_v39  ;;  %v7748_v6 = vld [vmem:[#allocation11 + $0x1ac] ss:$16 sps:$4 sm:$0xff]  }
 0x374   : > { %v3966_v53 = vadd.f32 %v3965_v25, %v3964_v19  ;;  %v4013_v63 = vrot.slane %v4012_v42, 2  ;;  %v4030_v59 = vadd.f32 %v4029_v4, %v3887_v27  ;;  %v4035_v60 = vrot.slane %v3888_v54, 4  ;;  %v7746_v41 = vld [vmem:[#allocation11 + $0x1a8] ss:$16 sps:$4 sm:$0xff]  }
 0x375   : > { %5221 = vmatpush1.bf16.msra.mxu0 %v7728_v10  ;;  %v3891_v51 = vsel %vm3827_vm10, %v3793_v43, %v3859_v15  ;;  %vm3828_vm11 = vcmp.gt.f32.partialorder %v3795_v22, 0.0  ;;  %v3860_v0 = vmul.f32 0.2, %v3795_v22  ;;  %v3984_v3 = vadd.f32 %v3983_v13, %v3982_v16 }
 0x376   : > { %5222 = vmatprep.subr.bf16.mxu0 %v7736_v45  ;;  %v3990_v17 = vadd.f32 %v3989_v50, %v3988_v34  ;;  %v4031_v47 = vrot.slane %v4030_v59, 2  ;;  %v4053_v31 = vrot.slane %v3891_v51, 4  ;;  %v4008_v38 = vadd.f32 %v4007_v48, %v4006_v37 }
 0x377   : > { %v4036_v12 = vadd.f32 %v4035_v60, %v3888_v54  ;;  %v3892_v56 = vsel %vm3828_vm11, %v3795_v22, %v3860_v0  ;;  %v3797_v57 = vadd.f32 %v3796_v62, %v8954_v30  ;;  %v4014_v19 = vadd.f32 %v4013_v63, %v4012_v42 }
 0x378   : > { %v4032_v26 = vadd.f32 %v4031_v47, %v4030_v59  ;;  %v4054_v28 = vadd.f32 %v4053_v31, %v3891_v51  ;;  %v3799_v18 = vadd.f32 %v3798_v20, %v8959_v29  ;;  %v4059_v40 = vrot.slane %v3892_v56, 4  ;;  %v7754_v29 = vld [vmem:[#allocation11 + $0x18c] ss:$16 sps:$4 sm:$0xff]  }
 0x379   : > { %5223 = vmatpush2.bf16.msra.mxu0 %v7734_v32  ;;  %v4037_v35 = vrot.slane %v4036_v12, 2  ;;  %vm3831_vm12 = vcmp.gt.f32.partialorder %v3797_v57, 0.0  ;;  %v3863_v16 = vmul.f32 0.2, %v3797_v57  ;;  %v3962_v34 = vadd.f32 %v3961_v23, %v8963_v2 }
 0x37a   : > { %5224 = vmatprep.subr.bf16.mxu0 %v7742_v14  ;;  %v3967_v24 = vrot.slane %v3966_v53, 1  ;;  %v3985_v37 = vrot.slane %v3984_v3, 1  ;;  %v4055_v46 = vrot.slane %v4054_v28, 2  ;;  %v3991_v25 = vrot.slane %v3990_v17, 1  ;;  %v7752_v14 = vld [vmem:[#allocation11 + $0x188] ss:$16 sps:$4 sm:$0xff]  }
 0x37b   : > { %v4038_v30 = vadd.f32 %v4037_v35, %v4036_v12  ;;  %v4060_v42 = vadd.f32 %v4059_v40, %v3892_v56  ;;  %v3895_v10 = vsel %vm3831_vm12, %v3797_v57, %v3863_v16  ;;  %v4009_v27 = vrot.slane %v4008_v38, 1  ;;  %v7760_v56 = vld [vmem:[#allocation11 + $0x16c] ss:$16 sps:$4 sm:$0xff]  }
 0x37c   : > { %v4056_v43 = vadd.f32 %v4055_v46, %v4054_v28  ;;  %v4077_v45 = vrot.slane %v3895_v10, 4  ;;  %vm3832_vm13 = vcmp.gt.f32.partialorder %v3799_v18, 0.0  ;;  %v4015_v22 = vrot.slane %v4014_v19, 1 }
 0x37d   : > { %5225 = vmatpush2.bf16.msra.mxu0 %v7740_v11  ;;  %v4033_v62 = vrot.slane %v4032_v26, 1  ;;  %v4061_v13 = vrot.slane %v4060_v42, 2  ;;  %v3864_v50 = vmul.f32 0.2, %v3799_v18  ;;  %v4224_v2 = vpack.c.bf16 %v8969_v44, %v8969_v44 }
 0x37e   : > { %5226 = vmatprep.subr.bf16.mxu0 %v7748_v6  ;;  %v4039_v23 = vrot.slane %v4038_v30, 1  ;;  %v4057_v4 = vrot.slane %v4056_v43, 1  ;;  %v4078_v48 = vadd.f32 %v4077_v45, %v3895_v10  ;;  %v3968_v54 = vadd.f32 %v3967_v24, %v3966_v53 }
 0x37f   : > { %v3986_v15 = vadd.f32 %v3985_v37, %v3984_v3  ;;  %v4062_v63 = vadd.f32 %v4061_v13, %v4060_v42  ;;  %v3896_v59 = vsel %vm3832_vm13, %v3799_v18, %v3864_v50  ;;  %v3992_v32 = vadd.f32 %v3991_v25, %v3990_v17  ;;  %v7766_v37 = vld [vmem:[#allocation11 + $0x14c] ss:$16 sps:$4 sm:$0xff]  }
 0x380   : > { %v4010_v60 = vadd.f32 %v4009_v27, %v4008_v38  ;;  %v4079_v51 = vrot.slane %v4078_v48, 2  ;;  %v4083_v0 = vrot.slane %v3896_v59, 4  ;;  %v4227_v20 = vpack.c.bf16 %v3962_v34, %v3962_v34 }
 0x381   : > { %5227 = vmatpush2.bf16.msra.mxu0 %v7746_v41  ;;  %v4016_v47 = vadd.f32 %v4015_v22, %v4014_v19  ;;  %v4034_v31 = vadd.f32 %v4033_v62, %v4032_v26  ;;  %v4063_v12 = vrot.slane %v4062_v63, 1  ;;  %v4040_v44 = vadd.f32 %v4039_v23, %v4038_v30  ;;  %v7758_v19 = vld [vmem:[#allocation11 + $0x168] ss:$16 sps:$4 sm:$0xff]   ;;  %v7772_v23 = vld [vmem:[#allocation11 + $0x12c] ss:$16 sps:$4 sm:$0xff]  }
 0x382   : > { %5228 = vmatprep.subr.bf16.mxu0 %v7754_v29  ;;  %v4058_v57 = vadd.f32 %v4057_v4, %v4056_v43  ;;  %v4080_v28 = vadd.f32 %v4079_v51, %v4078_v48  ;;  %v4084_v11 = vadd.f32 %v4083_v0, %v3896_v59  ;;  %v4415_v53 = vunpack.c.l.b16 %v4223_v7  ;;  %v7764_v22 = vld [vmem:[#allocation11 + $0x148] ss:$16 sps:$4 sm:$0xff]  }
 0x383   : > { %v4228_v3 = vpack.c.bf16 %v3968_v54, %v3968_v54  ;;  %v4231_v17 = vpack.c.bf16 %v3986_v15, %v3986_v15  ;;  %v4064_v38 = vadd.f32 %v4063_v12, %v4062_v63  ;;  %v4232_v18 = vpack.c.bf16 %v3992_v32, %v3992_v32 }
 0x384   : > { %v4235_v6 = vpack.c.bf16 %v4010_v60, %v4010_v60  ;;  %v4081_v35 = vrot.slane %v4080_v28, 1  ;;  %v4085_v40 = vrot.slane %v4084_v11, 2  ;;  %v4416_v26 = vunpack.c.l.b16 %v4224_v2 }
 0x385   : > { %5229 = vmatpush2.bf16.msra.mxu0 %v7752_v14  ;;  %v4419_v16 = vunpack.c.l.b16 %v4227_v20  ;;  %v4236_v34 = vpack.c.bf16 %v4016_v47, %v4016_v47  ;;  %v4239_v24 = vpack.c.bf16 %v4034_v31, %v4034_v31  ;;  %v4240_v46 = vpack.c.bf16 %v4040_v44, %v4040_v44  ;;  %v7778_v14 = vld [vmem:[#allocation11 + $0x10c] ss:$16 sps:$4 sm:$0xff]  }
 0x386   : > { %5230 = vmatprep.subr.bf16.mxu0 %v7760_v56  ;;  %v4243_v25 = vpack.c.bf16 %v4058_v57, %v4058_v57  ;;  %v4082_v30 = vadd.f32 %v4081_v35, %v4080_v28  ;;  %v4086_v39 = vadd.f32 %v4085_v40, %v4084_v11  ;;  %v4412_v7 = vunpack.c.l.b16 %v4220_v58  ;;  %v7776_v57 = vld [vmem:[#allocation11 + $0x108] ss:$16 sps:$4 sm:$0xff]   ;;  %v7790_v35 = vld [vmem:[#allocation10 + $0xc4] ss:$16 sps:$4 sm:$0xff]   ;;  %v7793_v40 = vld [vmem:[#allocation11 + $0x2ac] ss:$16 sps:$4 sm:$0xff]  }
 0x387   : > { %v4420_v42 = vunpack.c.l.b16 %v4228_v3  ;;  %v4423_v10 = vunpack.c.l.b16 %v4231_v17  ;;  %v4244_v41 = vpack.c.bf16 %v4064_v38, %v4064_v38  ;;  %v4424_v27 = vunpack.c.l.b16 %v4232_v18  ;;  %v7784_v3 = vld [vmem:[#allocation10 + $0xe4] ss:$16 sps:$4 sm:$0xff]   ;;  %v7787_v38 = vld [vmem:[#allocation11 + $0x2cc] ss:$16 sps:$4 sm:$0xff]   ;;  %v7782_v18 = vld [vmem:[#allocation10 + $0xe0] ss:$16 sps:$4 sm:$0xff]  }
 0x388   : > { %v4427_v43 = vunpack.c.l.b16 %v4235_v6  ;;  %v4247_v45 = vpack.c.bf16 %v4082_v30, %v4082_v30  ;;  %v4087_v29 = vrot.slane %v4086_v39, 1  ;;  %v4462_v62 = vsel %vm4441_vm15, %v4415_v53, %v8961_v1  ;;  %v7770_v1 = vld [vmem:[#allocation11 + $0x128] ss:$16 sps:$4 sm:$0xff]  }
 0x389   : > { %5231 = vmatpush2.bf16.msra.mxu0 %v7758_v19  ;;  %v4469_v13 = vsel %vm4441_vm15, %v4416_v26, %v4412_v7  ;;  %v4428_v50 = vunpack.c.l.b16 %v4236_v34  ;;  %v4431_v2 = vunpack.c.l.b16 %v4239_v24  ;;  %v4463_v55 = vsel %vm4443_vm1, %v4419_v16, %v4462_v62  ;;  %v7779_v53 = vld [vmem:[#allocation11 + $0x2e8] ss:$16 sps:$4 sm:$0xff]   ;;  %v7788_v19 = vld [vmem:[#allocation10 + $0xc0] ss:$16 sps:$4 sm:$0xff]   ;;  %v7796_v16 = vld [vmem:[#allocation10 + $0xa4] ss:$16 sps:$4 sm:$0xff]  }
 0x38a   : > { %5232 = vmatprep.subr.bf16.mxu0 %v7766_v37  ;;  %v4432_v58 = vunpack.c.l.b16 %v4240_v46  ;;  %v4435_v4 = vunpack.c.l.b16 %v4243_v25  ;;  %v4088_v48 = vadd.f32 %v4087_v29, %v4086_v39  ;;  %v4464_v54 = vsel %vm4445_vm2, %v4423_v10, %v4463_v55  ;;  %v7785_v6 = vld [vmem:[#allocation11 + $0x2c8] ss:$16 sps:$4 sm:$0xff]   ;;  %v7799_v34 = vld [vmem:[#allocation11 + $0x28c] ss:$16 sps:$4 sm:$0xff]   ;;  %v7794_v24 = vld [vmem:[#allocation10 + $0xa0] ss:$16 sps:$4 sm:$0xff]  }
 0x38b   : > { %v4439_v15 = vunpack.c.l.b16 %v4247_v45  ;;  %v4436_v63 = vunpack.c.l.b16 %v4244_v41  ;;  %v4470_v59 = vsel %vm4443_vm1, %v4420_v42, %v4469_v13  ;;  %v4465_v32 = vsel %vm4447_vm3, %v4427_v43, %v4464_v54  ;;  %v7791_v26 = vld [vmem:[#allocation11 + $0x2a8] ss:$16 sps:$4 sm:$0xff]   ;;  %v7802_v46 = vld [vmem:[#allocation10 + $0x84] ss:$16 sps:$4 sm:$0xff]   ;;  %v7805_v25 = vld [vmem:[#allocation11 + $0x26c] ss:$16 sps:$4 sm:$0xff]  }
 0x38c   : > { %v4248_v60 = vpack.c.bf16 %v4088_v48, %v4088_v48  ;;  %v4471_v51 = vsel %vm4445_vm2, %v4424_v27, %v4470_v59  ;;  %v4466_v0 = vsel %vm4449_vm4, %v4431_v2, %v4465_v32  ;;  %v7797_v37 = vld [vmem:[#allocation11 + $0x288] ss:$16 sps:$4 sm:$0xff]   ;;  %v7808_v39 = vld [vmem:[#allocation10 + $0x64] ss:$16 sps:$4 sm:$0xff]   ;;  %v7811_v7 = vld [vmem:[#allocation11 + $0x24c] ss:$16 sps:$4 sm:$0xff]  }
 0x38d   : > { %5233 = vmatpush2.bf16.msra.mxu0 %v7764_v22  ;;  %v4472_v20 = vsel %vm4447_vm3, %v4428_v50, %v4471_v51  ;;  %v4467_v12 = vsel %vm4451_vm5, %v4435_v4, %v4466_v0  ;;  %v7803_v30 = vld [vmem:[#allocation11 + $0x268] ss:$16 sps:$4 sm:$0xff]   ;;  %v7806_v42 = vld [vmem:[#allocation10 + $0x60] ss:$16 sps:$4 sm:$0xff]   ;;  %v7814_v41 = vld [vmem:[#allocation10 + $0x44] ss:$16 sps:$4 sm:$0xff]  }
 0x38e   : > { %5234 = vmatprep.subr.bf16.mxu0 %v7772_v23  ;;  %v4440_v47 = vunpack.c.l.b16 %v4248_v60  ;;  %v4473_v31 = vsel %vm4449_vm4, %v4432_v58, %v4472_v20  ;;  %v4468_v44 = vsel %vm4453_vm6, %v4439_v15, %v4467_v12  ;;  %v7809_v10 = vld [vmem:[#allocation11 + $0x248] ss:$16 sps:$4 sm:$0xff]   ;;  %v7817_v27 = vld [vmem:[#allocation11 + $0x22c] ss:$16 sps:$4 sm:$0xff]   ;;  %v7812_v43 = vld [vmem:[#allocation10 + $0x40] ss:$16 sps:$4 sm:$0xff]  }
 0x38f   : > { %v4474_v56 = vsel %vm4451_vm5, %v4436_v63, %v4473_v31  ;;  %v9000_v17 = vpack.c.b16 %v4468_v44, %v4468_v44  ;;  %v7815_v45 = vld [vmem:[#allocation11 + $0x228] ss:$16 sps:$4 sm:$0xff]   ;;  %v7820_v29 = vld [vmem:[#allocation10 + $0x24] ss:$16 sps:$4 sm:$0xff]   ;;  %v7823_v22 = vld [vmem:[#allocation11 + $0x20c] ss:$16 sps:$4 sm:$0xff]  }
 0x390   : > { %v4475_v28 = vsel %vm4453_vm6, %v4440_v47, %v4474_v56  ;;  %v7818_v62 = vld [vmem:[#allocation10 + $0x20] ss:$16 sps:$4 sm:$0xff]   ;;  %v7821_v13 = vld [vmem:[#allocation11 + $0x208] ss:$16 sps:$4 sm:$0xff]   ;;  %v7826_v50 = vld [vmem:[#allocation10 + $0x4] ss:$16 sps:$4 sm:$0xff]  }
 0x391   : > { %5235 = vmatpush2.bf16.msra.mxu0 %v7770_v1  ;;  %v4479_v11 = vpack.c.b16 %v4475_v28, %v4475_v28  ;;  %v7829_v2 = vld [vmem:[#allocation11 + $0x3ec] ss:$16 sps:$4 sm:$0xff]   ;;  %v7824_v23 = vld [vmem:[#allocation10] ss:$16 sps:$4 sm:$0xff]   ;;  %v7827_v55 = vld [vmem:[#allocation11 + $0x3e8] ss:$16 sps:$4 sm:$0xff]  }
 0x392   : > { %5236 = vmatprep.subr.bf16.mxu0 %v7778_v14  ;;  %v7832_v58 = vld [vmem:[#allocation10 + $0x1e4] ss:$16 sps:$4 sm:$0xff]   ;;  %v7835_v4 = vld [vmem:[#allocation11 + $0x3cc] ss:$16 sps:$4 sm:$0xff]   ;;  %v7830_v48 = vld [vmem:[#allocation10 + $0x1e0] ss:$16 sps:$4 sm:$0xff]  }
 0x393   : > { %5197 = vmatprep.mubr.bf16.mxu1 %v4479_v11  ;;  %v7833_v54 = vld [vmem:[#allocation11 + $0x3c8] ss:$16 sps:$4 sm:$0xff]   ;;  %v7838_v15 = vld [vmem:[#allocation10 + $0x1c4] ss:$16 sps:$4 sm:$0xff]   ;;  %v7841_v63 = vld [vmem:[#allocation11 + $0x3ac] ss:$16 sps:$4 sm:$0xff]  }
 0x394   : > { %5198 = vmatmul.mubr.bf16.vlgmr.msra.gmra.mxu1 %v9000_v17  ;;  %v7836_v59 = vld [vmem:[#allocation10 + $0x1c0] ss:$16 sps:$4 sm:$0xff]   ;;  %v7839_v32 = vld [vmem:[#allocation11 + $0x3a8] ss:$16 sps:$4 sm:$0xff]   ;;  %v7844_v1 = vld [vmem:[#allocation10 + $0x1a4] ss:$16 sps:$4 sm:$0xff]  }
 0x395   : > { %5237 = vmatpush2.bf16.msra.mxu0 %v7776_v57  ;;  %5248 = vmatpush1.bf16.msra.mxu1 %v7779_v53  ;;  %v7847_v60 = vld [vmem:[#allocation11 + $0x38c] ss:$16 sps:$4 sm:$0xff]   ;;  %v7842_v51 = vld [vmem:[#allocation10 + $0x1a0] ss:$16 sps:$4 sm:$0xff]   ;;  %v7845_v0 = vld [vmem:[#allocation11 + $0x388] ss:$16 sps:$4 sm:$0xff]  }
 0x396   : > { %5928 = vmatprep.subr.bf16.mxu0 %v7784_v3  ;;  %5279 = vmatprep.mubr.bf16.mxu1 %v4479_v11  ;;  %v7850_v14 = vld [vmem:[#allocation10 + $0x184] ss:$16 sps:$4 sm:$0xff]   ;;  %v7853_v20 = vld [vmem:[#allocation11 + $0x36c] ss:$16 sps:$4 sm:$0xff]   ;;  %v7848_v47 = vld [vmem:[#allocation10 + $0x180] ss:$16 sps:$4 sm:$0xff]  }
 0x397   : > { %5249 = vmatprep.subr.bf16.mxu1 %v7787_v38  ;;  %v7851_v31 = vld [vmem:[#allocation11 + $0x368] ss:$16 sps:$4 sm:$0xff]   ;;  %v7856_v12 = vld [vmem:[#allocation10 + $0x164] ss:$16 sps:$4 sm:$0xff]   ;;  %v7859_v56 = vld [vmem:[#allocation11 + $0x34c] ss:$16 sps:$4 sm:$0xff]  }
 0x398   : > { %5239 = vmatmul.mubr.bf16.vlgmr.msra.gmra.mxu0 %v8931_v21  ;;  %v7800_v21 = vld [vmem:[#allocation10 + $0x80] ss:$16 sps:$4 sm:$0xff]   ;;  %v7857_v57 = vld [vmem:[#allocation11 + $0x348] ss:$16 sps:$4 sm:$0xff]   ;;  %v7862_v28 = vld [vmem:[#allocation10 + $0x144] ss:$16 sps:$4 sm:$0xff]  }
 0x399   : > { %5929 = vmatpush1.bf16.msra.mxu0 %v7782_v18  ;;  %5960 = vmatprep.mubr.bf16.mxu0 %v8513_v49  ;;  %v7854_v44 = vld [vmem:[#allocation10 + $0x160] ss:$16 sps:$4 sm:$0xff]   ;;  %v7865_v11 = vld [vmem:[#allocation11 + $0x32c] ss:$16 sps:$4 sm:$0xff]   ;;  %v7863_v3 = vld [vmem:[#allocation11 + $0x328] ss:$16 sps:$4 sm:$0xff]  }
 0x39a   : > { %5250 = vmatpush1.bf16.msra.mxu1 %v7785_v6  ;;  %5930 = vmatprep.subr.bf16.mxu0 %v7790_v35  ;;  %v7860_v53 = vld [vmem:[#allocation10 + $0x140] ss:$16 sps:$4 sm:$0xff]   ;;  %v7868_v38 = vld [vmem:[#allocation10 + $0x124] ss:$16 sps:$4 sm:$0xff]   ;;  %v7871_v18 = vld [vmem:[#allocation11 + $0x30c] ss:$16 sps:$4 sm:$0xff]  }
 0x39b   : > { %5251 = vmatprep.subr.bf16.mxu1 %v7793_v40  ;;  %v7866_v6 = vld [vmem:[#allocation10 + $0x120] ss:$16 sps:$4 sm:$0xff]   ;;  %v7869_v35 = vld [vmem:[#allocation11 + $0x308] ss:$16 sps:$4 sm:$0xff]   ;;  %v7874_v40 = vld [vmem:[#allocation10 + $0x104] ss:$16 sps:$4 sm:$0xff]  }
 0x39d   : > { %5931 = vmatpush1.bf16.msra.mxu0 %v7788_v19  ;;  %v7877_v19 = vld [vmem:[#allocation10 + $0x2e4] ss:$16 sps:$4 sm:$0xff]  }
 0x39e   : > { %5252 = vmatpush1.bf16.msra.mxu1 %v7791_v26  ;;  %5932 = vmatprep.subr.bf16.mxu0 %v7796_v16  ;;  %v7872_v26 = vld [vmem:[#allocation10 + $0x100] ss:$16 sps:$4 sm:$0xff]  }
 0x39f   : > { %5253 = vmatprep.subr.bf16.mxu1 %v7799_v34  ;;  %v7875_v16 = vld [vmem:[#allocation10 + $0x2e0] ss:$16 sps:$4 sm:$0xff]   ;;  %v7880_v34 = vld [vmem:[#allocation10 + $0xec] ss:$16 sps:$4 sm:$0xff]  }
 0x3a1   : > { %5933 = vmatpush1.bf16.msra.mxu0 %v7794_v24  ;;  %v7883_v24 = vld [vmem:[#allocation10 + $0x2c4] ss:$16 sps:$4 sm:$0xff]  }
 0x3a2   : > { %5254 = vmatpush1.bf16.msra.mxu1 %v7797_v37  ;;  %5934 = vmatprep.subr.bf16.mxu0 %v7802_v46  ;;  %v7878_v37 = vld [vmem:[#allocation10 + $0xe8] ss:$16 sps:$4 sm:$0xff]   ;;  %v7881_v46 = vld [vmem:[#allocation10 + $0x2c0] ss:$16 sps:$4 sm:$0xff]  }
 0x3a3   : > { %5255 = vmatprep.subr.bf16.mxu1 %v7805_v25  ;;  %v7886_v25 = vld [vmem:[#allocation10 + $0xcc] ss:$16 sps:$4 sm:$0xff]  }
 0x3a5   : > { %5935 = vmatpush1.bf16.msra.mxu0 %v7800_v21  ;;  %v7889_v21 = vld [vmem:[#allocation10 + $0x2a4] ss:$16 sps:$4 sm:$0xff]  }
 0x3a6   : > { %5256 = vmatpush1.bf16.msra.mxu1 %v7803_v30  ;;  %5936 = vmatprep.subr.bf16.mxu0 %v7808_v39  ;;  %v7884_v30 = vld [vmem:[#allocation10 + $0xc8] ss:$16 sps:$4 sm:$0xff]   ;;  %v7887_v39 = vld [vmem:[#allocation10 + $0x2a0] ss:$16 sps:$4 sm:$0xff]  }
 0x3a7   : > { %5257 = vmatprep.subr.bf16.mxu1 %v7811_v7  ;;  %v7892_v7 = vld [vmem:[#allocation10 + $0xac] ss:$16 sps:$4 sm:$0xff]  }
 0x3a9   : > { %5937 = vmatpush1.bf16.msra.mxu0 %v7806_v42  ;;  %v7890_v42 = vld [vmem:[#allocation10 + $0xa8] ss:$16 sps:$4 sm:$0xff]  }
 0x3aa   : > { %5258 = vmatpush1.bf16.msra.mxu1 %v7809_v10  ;;  %5938 = vmatprep.subr.bf16.mxu0 %v7814_v41  ;;  %v7893_v10 = vld [vmem:[#allocation10 + $0x280] ss:$16 sps:$4 sm:$0xff]   ;;  %v7898_v41 = vld [vmem:[#allocation10 + $0x8c] ss:$16 sps:$4 sm:$0xff]  }
 0x3ab   : > { %5259 = vmatprep.subr.bf16.mxu1 %v7817_v27  ;;  %v7901_v27 = vld [vmem:[#allocation10 + $0x264] ss:$16 sps:$4 sm:$0xff]  }
 0x3ad   : > { %5939 = vmatpush1.bf16.msra.mxu0 %v7812_v43  ;;  %v7896_v43 = vld [vmem:[#allocation10 + $0x88] ss:$16 sps:$4 sm:$0xff]  }
 0x3ae   : > { %5260 = vmatpush1.bf16.msra.mxu1 %v7815_v45  ;;  %5940 = vmatprep.subr.bf16.mxu0 %v7820_v29  ;;  %v7899_v45 = vld [vmem:[#allocation10 + $0x260] ss:$16 sps:$4 sm:$0xff]   ;;  %v7907_v29 = vld [vmem:[#allocation10 + $0x244] ss:$16 sps:$4 sm:$0xff]  }
 0x3af   : > { %5261 = vmatprep.subr.bf16.mxu1 %v7823_v22  ;;  %v7902_v22 = vld [vmem:[#allocation10 + $0x68] ss:$16 sps:$4 sm:$0xff]  }
 0x3b1   : > { %5941 = vmatpush1.bf16.msra.mxu0 %v7818_v62  ;;  %v7905_v62 = vld [vmem:[#allocation10 + $0x240] ss:$16 sps:$4 sm:$0xff]  }
 0x3b2   : > { %5262 = vmatpush1.bf16.msra.mxu1 %v7821_v13  ;;  %5942 = vmatprep.subr.bf16.mxu0 %v7826_v50  ;;  %v7910_v13 = vld [vmem:[#allocation10 + $0x4c] ss:$16 sps:$4 sm:$0xff]   ;;  %v7913_v50 = vld [vmem:[#allocation10 + $0x224] ss:$16 sps:$4 sm:$0xff]  }
 0x3b3   : > { %5263 = vmatprep.subr.bf16.mxu1 %v7829_v2  ;;  %v7908_v2 = vld [vmem:[#allocation10 + $0x48] ss:$16 sps:$4 sm:$0xff]  }
 0x3b5   : > { %5943 = vmatpush1.bf16.msra.mxu0 %v7824_v23  ;;  %v7911_v23 = vld [vmem:[#allocation10 + $0x220] ss:$16 sps:$4 sm:$0xff]  }
 0x3b6   : > { %5264 = vmatpush2.bf16.msra.mxu1 %v7827_v55  ;;  %5944 = vmatprep.subr.bf16.mxu0 %v7832_v58  ;;  %v7916_v55 = vld [vmem:[#allocation10 + $0x2c] ss:$16 sps:$4 sm:$0xff]   ;;  %v7919_v58 = vld [vmem:[#allocation10 + $0x204] ss:$16 sps:$4 sm:$0xff]  }
 0x3b7   : > { %5265 = vmatprep.subr.bf16.mxu1 %v7835_v4  ;;  %v7914_v4 = vld [vmem:[#allocation10 + $0x28] ss:$16 sps:$4 sm:$0xff]  }
 0x3b9   : > { %5945 = vmatpush2.bf16.msra.mxu0 %v7830_v48  ;;  %v7917_v48 = vld [vmem:[#allocation10 + $0x200] ss:$16 sps:$4 sm:$0xff]  }
 0x3ba   : > { %5266 = vmatpush2.bf16.msra.mxu1 %v7833_v54  ;;  %5946 = vmatprep.subr.bf16.mxu0 %v7838_v15  ;;  %v7922_v54 = vld [vmem:[#allocation10 + $0xc] ss:$16 sps:$4 sm:$0xff]   ;;  %v7925_v15 = vld [vmem:[#allocation10 + $0x3e4] ss:$16 sps:$4 sm:$0xff]  }
 0x3bb   : > { %5267 = vmatprep.subr.bf16.mxu1 %v7841_v63  ;;  %v7920_v63 = vld [vmem:[#allocation10 + $0x8] ss:$16 sps:$4 sm:$0xff]  }
 0x3bd   : > { %5947 = vmatpush2.bf16.msra.mxu0 %v7836_v59  ;;  %v7923_v59 = vld [vmem:[#allocation10 + $0x3e0] ss:$16 sps:$4 sm:$0xff]  }
 0x3be   : > { %5268 = vmatpush2.bf16.msra.mxu1 %v7839_v32  ;;  %5948 = vmatprep.subr.bf16.mxu0 %v7844_v1  ;;  %v7928_v32 = vld [vmem:[#allocation10 + $0x1ec] ss:$16 sps:$4 sm:$0xff]   ;;  %v7931_v1 = vld [vmem:[#allocation10 + $0x3c4] ss:$16 sps:$4 sm:$0xff]  }
 0x3bf   : > { %5269 = vmatprep.subr.bf16.mxu1 %v7847_v60  ;;  %v7926_v60 = vld [vmem:[#allocation10 + $0x1e8] ss:$16 sps:$4 sm:$0xff]  }
 0x3c1   : > { %5949 = vmatpush2.bf16.msra.mxu0 %v7842_v51  ;;  %v7929_v51 = vld [vmem:[#allocation10 + $0x3c0] ss:$16 sps:$4 sm:$0xff]  }
 0x3c2   : > { %5270 = vmatpush2.bf16.msra.mxu1 %v7845_v0  ;;  %5950 = vmatprep.subr.bf16.mxu0 %v7850_v14  ;;  %v7934_v0 = vld [vmem:[#allocation10 + $0x1cc] ss:$16 sps:$4 sm:$0xff]   ;;  %v7937_v14 = vld [vmem:[#allocation10 + $0x3a4] ss:$16 sps:$4 sm:$0xff]  }
 0x3c3   : > { %5271 = vmatprep.subr.bf16.mxu1 %v7853_v20  ;;  %v7932_v20 = vld [vmem:[#allocation10 + $0x1c8] ss:$16 sps:$4 sm:$0xff]  }
 0x3c5   : > { %5951 = vmatpush2.bf16.msra.mxu0 %v7848_v47  ;;  %v7935_v47 = vld [vmem:[#allocation10 + $0x3a0] ss:$16 sps:$4 sm:$0xff]  }
 0x3c6   : > { %5272 = vmatpush2.bf16.msra.mxu1 %v7851_v31  ;;  %5952 = vmatprep.subr.bf16.mxu0 %v7856_v12  ;;  %v7940_v31 = vld [vmem:[#allocation10 + $0x1ac] ss:$16 sps:$4 sm:$0xff]   ;;  %v7943_v12 = vld [vmem:[#allocation10 + $0x384] ss:$16 sps:$4 sm:$0xff]  }
 0x3c7   : > { %5273 = vmatprep.subr.bf16.mxu1 %v7859_v56  ;;  %v7938_v56 = vld [vmem:[#allocation10 + $0x1a8] ss:$16 sps:$4 sm:$0xff]  }
 0x3c9   : > { %5953 = vmatpush2.bf16.msra.mxu0 %v7854_v44  ;;  %v7941_v44 = vld [vmem:[#allocation10 + $0x380] ss:$16 sps:$4 sm:$0xff]  }
 0x3ca   : > { %5274 = vmatpush2.bf16.msra.mxu1 %v7857_v57  ;;  %5954 = vmatprep.subr.bf16.mxu0 %v7862_v28  ;;  %v7946_v57 = vld [vmem:[#allocation10 + $0x18c] ss:$16 sps:$4 sm:$0xff]   ;;  %v7949_v28 = vld [vmem:[#allocation10 + $0x364] ss:$16 sps:$4 sm:$0xff]  }
 0x3cb   : > { %5275 = vmatprep.subr.bf16.mxu1 %v7865_v11  ;;  %v7944_v11 = vld [vmem:[#allocation10 + $0x188] ss:$16 sps:$4 sm:$0xff]  }
 0x3cd   : > { %5955 = vmatpush2.bf16.msra.mxu0 %v7860_v53  ;;  %v7947_v53 = vld [vmem:[#allocation10 + $0x360] ss:$16 sps:$4 sm:$0xff]  }
 0x3ce   : > { %5276 = vmatpush2.bf16.msra.mxu1 %v7863_v3  ;;  %5956 = vmatprep.subr.bf16.mxu0 %v7868_v38  ;;  %v7952_v3 = vld [vmem:[#allocation10 + $0x16c] ss:$16 sps:$4 sm:$0xff]   ;;  %v7955_v38 = vld [vmem:[#allocation10 + $0x344] ss:$16 sps:$4 sm:$0xff]  }
 0x3cf   : > { %5277 = vmatprep.subr.bf16.mxu1 %v7871_v18  ;;  %v7950_v18 = vld [vmem:[#allocation10 + $0x168] ss:$16 sps:$4 sm:$0xff]  }
 0x3d1   : > { %5957 = vmatpush2.bf16.msra.mxu0 %v7866_v6  ;;  %v7953_v6 = vld [vmem:[#allocation10 + $0x340] ss:$16 sps:$4 sm:$0xff]  }
 0x3d2   : > { %5278 = vmatpush2.bf16.msra.mxu1 %v7869_v35  ;;  %5958 = vmatprep.subr.bf16.mxu0 %v7874_v40  ;;  %v7958_v35 = vld [vmem:[#allocation10 + $0x14c] ss:$16 sps:$4 sm:$0xff]   ;;  %v7961_v40 = vld [vmem:[#allocation10 + $0x324] ss:$16 sps:$4 sm:$0xff]  }
 0x3d3   : > { %5969 = vmatprep.subr.bf16.mxu1 %v7877_v19  ;;  %v7956_v19 = vld [vmem:[#allocation10 + $0x148] ss:$16 sps:$4 sm:$0xff]  }
 0x3d5   : > { %5959 = vmatpush2.bf16.msra.mxu0 %v7872_v26  ;;  %5280 = vmatmul.mubr.bf16.vlgmr.msra.gmra.mxu1 %v9000_v17  ;;  %v7895_v17 = vld [vmem:[#allocation10 + $0x284] ss:$16 sps:$4 sm:$0xff]   ;;  %v7959_v26 = vld [vmem:[#allocation10 + $0x320] ss:$16 sps:$4 sm:$0xff]  }
 0x3d6   : > { %5970 = vmatpush1.bf16.msra.mxu1 %v7875_v16  ;;  %6010 = vmatprep.subr.bf16.mxu0 %v7880_v34  ;;  %v7964_v16 = vld [vmem:[#allocation10 + $0x12c] ss:$16 sps:$4 sm:$0xff]   ;;  %v7967_v34 = vld [vmem:[#allocation10 + $0x304] ss:$16 sps:$4 sm:$0xff]  }
 0x3d7   : > { %5971 = vmatprep.subr.bf16.mxu1 %v7883_v24  ;;  %6001 = vmatprep.mubr.bf16.mxu1 %v8516_v52  ;;  %v7962_v24 = vld [vmem:[#allocation10 + $0x128] ss:$16 sps:$4 sm:$0xff]  }
 0x3d8   : > { %5961 = vmatmul.mubr.bf16.vlgmr.msra.gmra.mxu0 %v8522_v8 }
 0x3d9   : > { %6011 = vmatpush1.bf16.msra.mxu0 %v7878_v37  ;;  %6042 = vmatprep.mubr.bf16.mxu0 %v8513_v49  ;;  %v7904_v49 = vld [vmem:[#allocation10 + $0x6c] ss:$16 sps:$4 sm:$0xff]   ;;  %v7965_v37 = vld [vmem:[#allocation10 + $0x300] ss:$16 sps:$4 sm:$0xff]  }
 0x3da   : > { %5972 = vmatpush1.bf16.msra.mxu1 %v7881_v46  ;;  %6012 = vmatprep.subr.bf16.mxu0 %v7886_v25  ;;  %v7970_v46 = vld [vmem:[#allocation10 + $0x10c] ss:$16 sps:$4 sm:$0xff]  }
 0x3db   : > { %5973 = vmatprep.subr.bf16.mxu1 %v7889_v21  ;;  %v7973_v25 = vld [vmem:[#allocation10 + $0x2ec] ss:$16 sps:$4 sm:$0xff]   ;;  %v7968_v21 = vld [vmem:[#allocation10 + $0x108] ss:$16 sps:$4 sm:$0xff]  }
 0x3dd   : > { %6013 = vmatpush1.bf16.msra.mxu0 %v7884_v30  ;;  %v7971_v30 = vld [vmem:[#allocation10 + $0x2e8] ss:$16 sps:$4 sm:$0xff]  }
 0x3de   : > { %5974 = vmatpush1.bf16.msra.mxu1 %v7887_v39  ;;  %6014 = vmatprep.subr.bf16.mxu0 %v7892_v7  ;;  %v7976_v39 = vld [vmem:[#allocation10 + $0x2cc] ss:$16 sps:$4 sm:$0xff]   ;;  %v7974_v7 = vld [vmem:[#allocation10 + $0x2c8] ss:$16 sps:$4 sm:$0xff]  }
 0x3df   : > { %5975 = vmatprep.subr.bf16.mxu1 %v7895_v17  ;;  %v7979_v17 = vld [vmem:[#allocation10 + $0x2ac] ss:$16 sps:$4 sm:$0xff]  }
 0x3e1   : > { %6015 = vmatpush1.bf16.msra.mxu0 %v7890_v42 }
 0x3e2   : > { %5976 = vmatpush1.bf16.msra.mxu1 %v7893_v10  ;;  %6016 = vmatprep.subr.bf16.mxu0 %v7898_v41  ;;  %v7977_v41 = vld [vmem:[#allocation10 + $0x2a8] ss:$16 sps:$4 sm:$0xff]  }
 0x3e3   : > { %5977 = vmatprep.subr.bf16.mxu1 %v7901_v27  ;;  %v7982_v27 = vld [vmem:[#allocation10 + $0x28c] ss:$16 sps:$4 sm:$0xff]  }
 0x3e5   : > { %6017 = vmatpush1.bf16.msra.mxu0 %v7896_v43 }
 0x3e6   : > { %5978 = vmatpush1.bf16.msra.mxu1 %v7899_v45  ;;  %6018 = vmatprep.subr.bf16.mxu0 %v7904_v49  ;;  %v7980_v49 = vld [vmem:[#allocation10 + $0x288] ss:$16 sps:$4 sm:$0xff]  }
 0x3e7   : > { %5979 = vmatprep.subr.bf16.mxu1 %v7907_v29  ;;  %v7985_v29 = vld [vmem:[#allocation10 + $0x26c] ss:$16 sps:$4 sm:$0xff]  }
 0x3e9   : > { %6019 = vmatpush1.bf16.msra.mxu0 %v7902_v22  ;;  %v7983_v22 = vld [vmem:[#allocation10 + $0x268] ss:$16 sps:$4 sm:$0xff]  }
 0x3ea   : > { %5980 = vmatpush1.bf16.msra.mxu1 %v7905_v62  ;;  %6020 = vmatprep.subr.bf16.mxu0 %v7910_v13  ;;  %v7986_v62 = vld [vmem:[#allocation10 + $0x248] ss:$16 sps:$4 sm:$0xff]  }
 0x3eb   : > { %5981 = vmatprep.subr.bf16.mxu1 %v7913_v50  ;;  %v7989_v13 = vld [vmem:[#allocation10 + $0x228] ss:$16 sps:$4 sm:$0xff]   ;;  %v7994_v50 = vld [vmem:[#allocation10 + $0x20c] ss:$16 sps:$4 sm:$0xff]  }
 0x3ed   : > { %6021 = vmatpush1.bf16.msra.mxu0 %v7908_v2  ;;  %v7992_v2 = vld [vmem:[#allocation10 + $0x208] ss:$16 sps:$4 sm:$0xff]  }
 0x3ee   : > { %5982 = vmatpush1.bf16.msra.mxu1 %v7911_v23  ;;  %6022 = vmatprep.subr.bf16.mxu0 %v7916_v55  ;;  %v7997_v23 = vld [vmem:[#allocation10 + $0x3ec] ss:$16 sps:$4 sm:$0xff]   ;;  %v7995_v55 = vld [vmem:[#allocation10 + $0x3e8] ss:$16 sps:$4 sm:$0xff]  }
 0x3ef   : > { %5983 = vmatprep.subr.bf16.mxu1 %v7919_v58  ;;  %v8000_v58 = vld [vmem:[#allocation10 + $0x3cc] ss:$16 sps:$4 sm:$0xff]  }
 0x3f1   : > { %6023 = vmatpush1.bf16.msra.mxu0 %v7914_v4  ;;  %v7998_v4 = vld [vmem:[#allocation10 + $0x3c8] ss:$16 sps:$4 sm:$0xff]  }
 0x3f2   : > { %5984 = vmatpush1.bf16.msra.mxu1 %v7917_v48  ;;  %6024 = vmatprep.subr.bf16.mxu0 %v7922_v54  ;;  %v8003_v48 = vld [vmem:[#allocation10 + $0x3ac] ss:$16 sps:$4 sm:$0xff]   ;;  %v8001_v54 = vld [vmem:[#allocation10 + $0x3a8] ss:$16 sps:$4 sm:$0xff]  }
 0x3f3   : > { %5985 = vmatprep.subr.bf16.mxu1 %v7925_v15  ;;  %v8006_v15 = vld [vmem:[#allocation10 + $0x38c] ss:$16 sps:$4 sm:$0xff]  }
 0x3f5   : > { %6025 = vmatpush1.bf16.msra.mxu0 %v7920_v63  ;;  %v8004_v63 = vld [vmem:[#allocation10 + $0x388] ss:$16 sps:$4 sm:$0xff]  }
 0x3f6   : > { %5986 = vmatpush2.bf16.msra.mxu1 %v7923_v59  ;;  %6026 = vmatprep.subr.bf16.mxu0 %v7928_v32  ;;  %v8009_v59 = vld [vmem:[#allocation10 + $0x36c] ss:$16 sps:$4 sm:$0xff]   ;;  %v8007_v32 = vld [vmem:[#allocation10 + $0x368] ss:$16 sps:$4 sm:$0xff]  }
 0x3f7   : > { %5987 = vmatprep.subr.bf16.mxu1 %v7931_v1  ;;  %v8012_v1 = vld [vmem:[#allocation10 + $0x34c] ss:$16 sps:$4 sm:$0xff]  }
 0x3f9   : > { %6027 = vmatpush2.bf16.msra.mxu0 %v7926_v60  ;;  %v8010_v60 = vld [vmem:[#allocation10 + $0x348] ss:$16 sps:$4 sm:$0xff]  }
 0x3fa   : > { %5988 = vmatpush2.bf16.msra.mxu1 %v7929_v51  ;;  %6028 = vmatprep.subr.bf16.mxu0 %v7934_v0  ;;  %v8015_v51 = vld [vmem:[#allocation10 + $0x32c] ss:$16 sps:$4 sm:$0xff]   ;;  %v8013_v0 = vld [vmem:[#allocation10 + $0x328] ss:$16 sps:$4 sm:$0xff]  }
 0x3fb   : > { %5989 = vmatprep.subr.bf16.mxu1 %v7937_v14  ;;  %v8018_v14 = vld [vmem:[#allocation10 + $0x30c] ss:$16 sps:$4 sm:$0xff]  }
 0x3fd   : > { %6029 = vmatpush2.bf16.msra.mxu0 %v7932_v20  ;;  %v8016_v20 = vld [vmem:[#allocation10 + $0x308] ss:$16 sps:$4 sm:$0xff]  }
 0x3fe   : > { %5990 = vmatpush2.bf16.msra.mxu1 %v7935_v47  ;;  %6030 = vmatprep.subr.bf16.mxu0 %v7940_v31 }
 0x3ff   : > { %5991 = vmatprep.subr.bf16.mxu1 %v7943_v12 }
 0x401   : > { %6031 = vmatpush2.bf16.msra.mxu0 %v7938_v56 }
 0x402   : > { %5992 = vmatpush2.bf16.msra.mxu1 %v7941_v44  ;;  %6032 = vmatprep.subr.bf16.mxu0 %v7946_v57 }
 0x403   : > { %5993 = vmatprep.subr.bf16.mxu1 %v7949_v28 }
 0x405   : > { %6033 = vmatpush2.bf16.msra.mxu0 %v7944_v11 }
 0x406   : > { %5994 = vmatpush2.bf16.msra.mxu1 %v7947_v53  ;;  %6034 = vmatprep.subr.bf16.mxu0 %v7952_v3 }
 0x407   : > { %5995 = vmatprep.subr.bf16.mxu1 %v7955_v38 }
 0x409   : > { %6035 = vmatpush2.bf16.msra.mxu0 %v7950_v18 }
 0x40a   : > { %5996 = vmatpush2.bf16.msra.mxu1 %v7953_v6  ;;  %6036 = vmatprep.subr.bf16.mxu0 %v7958_v35 }
 0x40b   : > { %5997 = vmatprep.subr.bf16.mxu1 %v7961_v40 }
 0x40d   : > { %6037 = vmatpush2.bf16.msra.mxu0 %v7956_v19 }
 0x40e   : > { %5998 = vmatpush2.bf16.msra.mxu1 %v7959_v26  ;;  %6038 = vmatprep.subr.bf16.mxu0 %v7964_v16 }
 0x40f   : > { %5999 = vmatprep.subr.bf16.mxu1 %v7967_v34 }
 0x411   : > { %6039 = vmatpush2.bf16.msra.mxu0 %v7962_v24  ;;  %v6092_v24 = vld [vmem:[%s9088_s8] sm:$0xf] }
 0x412   : > { %6000 = vmatpush2.bf16.msra.mxu1 %v7965_v37  ;;  %6040 = vmatprep.subr.bf16.mxu0 %v7970_v46  ;;  %v6118_v37 = vld [vmem:[%s9089_s9] sm:$0xf] }
 0x413   : > { %6051 = vmatprep.subr.bf16.mxu1 %v7973_v25  ;;  %v6097_v25 = vrot.slane %v6092_v24, %v8563_v5 }
 0x415   : > { %6041 = vmatpush2.bf16.msra.mxu0 %v7968_v21  ;;  %6002 = vmatmul.mubr.bf16.vlgmr.msra.gmra.mxu1 %v8524_v9 }
 0x416   : > { %6052 = vmatpush1.bf16.msra.mxu1 %v7971_v30  ;;  %6083 = vmatprep.mubr.bf16.mxu1 %v8516_v52  ;;  %v7988_v52 = vld [vmem:[#allocation10 + $0x24c] ss:$16 sps:$4 sm:$0xff]  }
 0x417   : > { %6053 = vmatprep.subr.bf16.mxu1 %v7976_v39 }
 0x418   : > { %6043 = vmatmul.mubr.bf16.vlgmr.msra.gmra.mxu0 %v8522_v8  ;;  %v5158_v42 = vpop.f32.mrf.mxu0  ;;  %v7991_v8 = vld [vmem:[#allocation10 + $0x22c] ss:$16 sps:$4 sm:$0xff]  }
 0x41a   : > { %v9012_v10 = vpop.f32.mrf.mxu0  ;;  %6054 = vmatpush1.bf16.msra.mxu1 %v7974_v7  ;;  %v6123_v7 = vrot.slane %v6118_v37, %v8563_v5 }
 0x41b   : > { %6055 = vmatprep.subr.bf16.mxu1 %v7979_v17  ;;  %v6101_v17 = vrot.slane %v6092_v24, %v8568_v33 }
 0x41c   : > { %v5162_v43 = vpop.f32.mrf.mxu0 }
 0x41d   : > { %v6127_v43 = vrot.slane %v6118_v37, %v8568_v33 }
 0x41e   : > { %v5163_v45 = vpop.f32.mrf.mxu0  ;;  %6056 = vmatpush1.bf16.msra.mxu1 %v7977_v41 }
 0x41f   : > { %6057 = vmatprep.subr.bf16.mxu1 %v7982_v27 }
 0x422   : > { %6058 = vmatpush1.bf16.msra.mxu1 %v7980_v49 }
 0x423   : > { %6059 = vmatprep.subr.bf16.mxu1 %v7985_v29 }
 0x426   : > { %6060 = vmatpush1.bf16.msra.mxu1 %v7983_v22 }
 0x427   : > { %6061 = vmatprep.subr.bf16.mxu1 %v7988_v52 }
 0x42a   : > { %6062 = vmatpush1.bf16.msra.mxu1 %v7986_v62 }
 0x42b   : > { %6063 = vmatprep.subr.bf16.mxu1 %v7991_v8 }
 0x42e   : > { %6064 = vmatpush1.bf16.msra.mxu1 %v7989_v13 }
 0x42f   : > { %6065 = vmatprep.subr.bf16.mxu1 %v7994_v50 }
 0x432   : > { %6066 = vmatpush1.bf16.msra.mxu1 %v7992_v2 }
 0x433   : > { %6067 = vmatprep.subr.bf16.mxu1 %v7997_v23 }
 0x436   : > { %6068 = vmatpush2.bf16.msra.mxu1 %v7995_v55  ;;  %v6105_v55 = vrot.slane %v6092_v24, %v8674_v61 }
 0x437   : > { %6069 = vmatprep.subr.bf16.mxu1 %v8000_v58 }
 0x43a   : > { %6070 = vmatpush2.bf16.msra.mxu1 %v7998_v4 }
 0x43b   : > { %6071 = vmatprep.subr.bf16.mxu1 %v8003_v48 }
 0x43e   : > { %6072 = vmatpush2.bf16.msra.mxu1 %v8001_v54  ;;  %v6131_v54 = vrot.slane %v6118_v37, %v8674_v61 }
 0x43f   : > { %6073 = vmatprep.subr.bf16.mxu1 %v8006_v15  ;;  %v6109_v15 = vrot.slane %v6092_v24, %v8677_v36 }
 0x442   : > { %6074 = vmatpush2.bf16.msra.mxu1 %v8004_v63 }
 0x443   : > { %6075 = vmatprep.subr.bf16.mxu1 %v8009_v59 }
 0x446   : > { %6076 = vmatpush2.bf16.msra.mxu1 %v8007_v32 }
 0x447   : > { %6077 = vmatprep.subr.bf16.mxu1 %v8012_v1  ;;  %v6135_v1 = vrot.slane %v6118_v37, %v8677_v36 }
 0x44a   : > { %6078 = vmatpush2.bf16.msra.mxu1 %v8010_v60 }
 0x44b   : > { %6079 = vmatprep.subr.bf16.mxu1 %v8015_v51 }
 0x44e   : > { %6080 = vmatpush2.bf16.msra.mxu1 %v8013_v0 }
 0x44f   : > { %6081 = vmatprep.subr.bf16.mxu1 %v8018_v14 }
 0x452   : > { %6082 = vmatpush2.bf16.msra.mxu1 %v8016_v20 }
 0x454   : > { %v5199_v47 = vpop.f32.mrf.mxu1 }
 0x455   : > { %6084 = vmatmul.mubr.bf16.vlgmr.msra.gmra.mxu1 %v8524_v9  ;;  %v5200_v31 = vadd.f32 %v5199_v47, %v5158_v42 }
 0x456   : > { %v5201_v12 = vpop.f32.mrf.mxu1 }
 0x457   : > { %v5202_v44 = vadd.f32 %v5201_v12, %v9012_v10 }
 0x458   : > { %v5240_v56 = vpop.f32.mrf.mxu0  ;;  %v5203_v57 = vpop.f32.mrf.mxu1 }
 0x45a   : > { %v5242_v28 = vpop.f32.mrf.mxu0  ;;  %v5204_v11 = vpop.f32.mrf.mxu1 }
 0x45c   : > { %v5244_v53 = vpop.f32.mrf.mxu0 }
 0x45e   : > { %v5245_v3 = vpop.f32.mrf.mxu0 }
 0x495   : > { %v5281_v38 = vpop.f32.mrf.mxu1 }
 0x496   : > { %v5282_v18 = vadd.f32 %v5281_v38, %v5240_v56 }
 0x497   : > { %v5283_v6 = vpop.f32.mrf.mxu1 }
 0x498   : > { %v5962_v35 = vpop.f32.mrf.mxu0  ;;  %v5284_v40 = vadd.f32 %v5283_v6, %v5242_v28 }
 0x499   : > { %v5285_v19 = vpop.f32.mrf.mxu1  ;;  %v5963_v46 = vadd.f32 %v5962_v35, %v5200_v31 }
 0x49a   : > { %v5964_v26 = vpop.f32.mrf.mxu0 }
 0x49b   : > { %v5286_v16 = vpop.f32.mrf.mxu1  ;;  %v5965_v30 = vadd.f32 %v5964_v26, %v5202_v44 }
 0x49c   : > { %v5966_v9 = vpop.f32.mrf.mxu0 }
 0x49e   : > { %v5967_v34 = vpop.f32.mrf.mxu0 }
 0x4d5   : > { %v6003_v21 = vpop.f32.mrf.mxu1 }
 0x4d6   : > { %v6004_v39 = vadd.f32 %v6003_v21, %v5963_v46 }
 0x4d7   : > { %v6005_v42 = vpop.f32.mrf.mxu1 }
 0x4d8   : > { %v6114_v10 = vmul.f32 %v6097_v25, %v6004_v39  ;;  %v6044_v41 = vpop.f32.mrf.mxu0  ;;  %v6006_v27 = vadd.f32 %v6005_v42, %v5965_v30 }
 0x4d9   : > { %v6007_v45 = vpop.f32.mrf.mxu1  ;;  %v6045_v23 = vadd.f32 %v6044_v41, %v5282_v18 }
 0x4da   : > { %v6140_v49 = vadd.f32 %v6123_v7, %v6114_v10  ;;  %v6115_v29 = vmul.f32 %v6101_v17, %v6006_v27  ;;  %v6046_v22 = vpop.f32.mrf.mxu0 }
 0x4db   : > { %v6008_v52 = vpop.f32.mrf.mxu1  ;;  %v6047_v4 = vadd.f32 %v6046_v22, %v5284_v40 }
 0x4dc   : > { %vm6144_vm15 = vcmp.gt.f32.partialorder %v6140_v49, 0.0  ;;  %v6148_v62 = vmul.f32 0.2, %v6140_v49  ;;  %v6141_v8 = vadd.f32 %v6127_v43, %v6115_v29  ;;  %v6048_v13 = vpop.f32.mrf.mxu0 }
 0x4de   : > { %v6152_v50 = vsel %vm6144_vm15, %v6140_v49, %v6148_v62  ;;  %vm6145_vm1 = vcmp.gt.f32.partialorder %v6141_v8, 0.0  ;;  %v6149_v5 = vmul.f32 0.2, %v6141_v8  ;;  %v6049_v2 = vpop.f32.mrf.mxu0 }
 0x4df   : > { %6156 = vst [vmem:[%s9028_s24] sm:$0xff] %v6152_v50 }
 0x4e0   : > { %v6153_v33 = vsel %vm6145_vm1, %v6141_v8, %v6149_v5 }
 0x4e1   : > { %6157 = vst [vmem:[%s9028_s24 + $0x8] sm:$0xff] %v6153_v33 }
 0x515   : > { %v6085_v58 = vpop.f32.mrf.mxu1 }
 0x516   : > { %v6086_v48 = vadd.f32 %v6085_v58, %v6045_v23 }
 0x517   : > { %v6087_v63 = vpop.f32.mrf.mxu1 }
 0x518   : > { %v6116_v59 = vmul.f32 %v6105_v55, %v6086_v48  ;;  %v6088_v32 = vadd.f32 %v6087_v63, %v6047_v4 }
 0x519   : > { %v6089_v60 = vpop.f32.mrf.mxu1 }
 0x51a   : > { %v6142_v51 = vadd.f32 %v6131_v54, %v6116_v59  ;;  %v6117_v0 = vmul.f32 %v6109_v15, %v6088_v32 }
 0x51b   : > { %v6090_v14 = vpop.f32.mrf.mxu1 }
 0x51c   : > { %vm6146_vm2 = vcmp.gt.f32.partialorder %v6142_v51, 0.0  ;;  %v6150_v20 = vmul.f32 0.2, %v6142_v51  ;;  %v6143_v47 = vadd.f32 %v6135_v1, %v6117_v0 }
 0x51e   : > { %v6154_v61 = vsel %vm6146_vm2, %v6142_v51, %v6150_v20  ;;  %vm6147_vm3 = vcmp.gt.f32.partialorder %v6143_v47, 0.0  ;;  %v6151_v31 = vmul.f32 0.2, %v6143_v47 }
 0x51f   : > { %6158 = vst [vmem:[%s9028_s24 + $0x10] sm:$0xff] %v6154_v61 }
 0x520   : > { %v6155_v36 = vsel %vm6147_vm3, %v6143_v47, %v6151_v31 }
 0x521   : > { %6159 = vst [vmem:[%s9028_s24 + $0x18] sm:$0xff] %v6155_v36 }
 0x522   : > { %8190 = shalt.err (!%p8187_p1)
}
 0x523   : > { %s8191_s27 = scalar_lea.hbm %s9042_s6, 512  ;;  %s8195_s23 = scalar_lea.hbm %s9090_s10, 1024 }
 0x524   : > { %p8192_p3 = scmp.ne.s32.totalorder %s9042_s6, %s8191_s27  ;;  %p8196_p6 = scmp.lt.s32.totalorder %s9042_s6, %s9090_s10 }
 0x525   : > { %p8197_p2 = scmp.lt.s32.totalorder %s8195_s23, %s8191_s27 }
 0x526   : > { %p8193_p4 = pnand %p8192_p3, %p9120_p11 }
 0x527   : > { %p8198_p7 = por %p8197_p2, %p8196_p6 }
 0x528   : > { %p8194_p12 = pneg %p8193_p4 }
 0x52a   : > { %p8199_p8 = pnand %p8198_p7, %p8194_p12 }
 0x52c   : > { %8202 = shalt.err (!%p8199_p8)
}
 0x52d   : > { %6981 = dma.vmem_to_hbm [thread:$0]  (%p9120_p11), %s6176_s22, 512, %s9042_s6, %s6161_s7  }
 0x52e PF: > { %s6187_s24 = sand.u32 1, %s8241_s13   ;;  %p9121_p0 = scmp.ne.s32.totalorder %s9110_s12, 0 }
 0x52f   : > { %p9122_p13 = scmp.ge.s32.totalorder %s8253_s16, 2  ;;  %s6188_s25 = scalar_lea.sflag [#allocation4], %s6187_s24 }
 0x531   : > { %p7004_p5 = pnand %p9122_p13, %p9121_p0 }
 0x533   : > { %p7005_p9 = pneg %p7004_p5 }
 0x535   : > { %8236 = dma.done.wait (%p7005_p9), %s6188_s25, 512  }
 0x536   : > { %8238 = vsyncadd (%p7005_p9), %s6188_s25, 4294966784  ;;  %p26_p10 = scmp.ge.s32.totalorder %s8431_s26, 4   ;;  %s9123_s13 = smov %s8245_s14 }
 0x537   : > { %s9124_s14 = smov %s8249_s15  ;;  %s9125_s15 = smov %s8443_s11 }
 0x538   : > { %s9126_s16 = smov %s8431_s26  ;;  %28 = sbr.rel (!%p26_p10) target bundleno = 14 (0xe), region = 125 }
 0x53d   :  { %6193 = vsyncpa [#allocation3], 1 }
 0x53e   :  { %6195 = vsyncpa [#allocation3 + $0x1], 1 }
 0x53f   :  { %6196 = vsyncpa [#allocation6], 1 }
 0x540   :  { %6197 = vsyncpa [#allocation9], 1 }
 0x541   :  { %6198 = vsyncpa [#allocation12], 1 }
 0x542   :  { %6199 = vsyncpa [#allocation4], 1 }
 0x543   :  { %6201 = vsyncpa [#allocation4 + $0x1], 1 }

</bundles_post_ra>
